<compile_context>
chip_gen: v7x
topology: tpu7x:2x2x1
jax: 0.10.0
libtpu: 0.0.40
codegen_flags: <defaults>
</compile_context>

<pallas_src>
import functools
import math

import jax
import jax.numpy as jnp
from jax.experimental import pallas as pl
from jax.experimental.pallas import tpu as pltpu

_MXU_DTYPE = jnp.bfloat16     # MXU-native operand dtype (v5e/v6e/v7x)
_LN_EPS = 1e-5
_NEG_INF = -1e9               # matches PyTorch masked_fill(-1e9)


# ------------------------------------------------------------------
# Small helpers
# ------------------------------------------------------------------
def _nbytes(shape, dtype):
    return math.prod(shape) * jnp.dtype(dtype).itemsize


def _pick_tile(dim, pref, align):
    """Largest tile <= pref that is a multiple of `align` and divides `dim`;
    falls back to the full dim (always legal for a BlockSpec).  NOTE: for huge
    prime-ish dims the fallback is one giant block; fine for shapes here."""
    if dim <= pref:
        return dim
    t = (pref // align) * align
    while t >= align:
        if dim % t == 0:
            return t
        t -= align
    return dim


def _row_tile(m, pref=256):
    """Row tile for the row-parallel kernels.  Prefers 256-class tiles, but
    guarantees >= 2 grid steps when possible so v7x's two TensorCores both get
    work (no effect on single-TC v5e/v6e)."""
    tm = _pick_tile(m, pref, 8)
    if m // tm < 2 and m >= 16:
        tm = _pick_tile(m, max(8, (m // 2) // 8 * 8), 8)
    return tm


def _compiler_params(dim_sems, vmem_bytes):
    """Explicit per-kernel scoped-VMEM budget computed from the block sizes."""
    limit = int(min(max(vmem_bytes + (4 << 20), 16 << 20), 100 << 20))
    return pltpu.CompilerParams(
        dimension_semantics=dim_sems, vmem_limit_bytes=limit)


@functools.lru_cache(maxsize=1)
def _single_buffer_ok():
    """Feature probe: single-buffered resident blocks via
    pipeline_mode=pl.Buffered(1).  Halves resident weight VMEM (matters on
    v7x's 64 MiB); falls back to default double buffering if unsupported."""
    if not hasattr(pl, "Buffered"):
        return False
    try:
        def _k(x_ref, o_ref):
            o_ref[...] = x_ref[...] + 1.0

        out = pl.pallas_call(
            _k,
            out_shape=jax.ShapeDtypeStruct((8, 128), jnp.float32),
            grid=(2,),
            in_specs=[pl.BlockSpec((8, 128), lambda i: (0, 0),
                                   pipeline_mode=pl.Buffered(1))],
            out_specs=pl.BlockSpec((8, 128), lambda i: (0, 0)),
        )(jnp.zeros((8, 128), jnp.float32))
        jax.block_until_ready(out)
        return bool(jnp.all(out == 1.0))
    except Exception:  # feature probe -- fall back to default buffering
        return False


def _resident_spec(block_shape, index_map):
    """BlockSpec for blocks whose index never changes across the grid
    (weights / biases / LN params): single-buffer them when supported."""
    if _single_buffer_ok():
        return pl.BlockSpec(block_shape, index_map, pipeline_mode=pl.Buffered(1))
    return pl.BlockSpec(block_shape, index_map)


# ------------------------------------------------------------------
# Kernels
# ------------------------------------------------------------------
def _matmul_bias_kernel(x_ref, w_ref, b_ref, o_ref, acc_ref, *, activation):
    """Tiled y = x @ W + b (optional ReLU).  Grid=(M, N, K), K last (reduction);
    bf16 MXU operands, f32 VMEM accumulator."""

    @pl.when(pl.program_id(2) == 0)
    def _init():
        acc_ref[...] = jnp.zeros_like(acc_ref)

    acc_ref[...] += jnp.dot(
        x_ref[...].astype(_MXU_DTYPE), w_ref[...],
        preferred_element_type=jnp.float32)

    @pl.when(pl.program_id(2) == pl.num_programs(2) - 1)
    def _finalize():
        y = acc_ref[...] + b_ref[...]
        if activation:
            y = jnp.maximum(y, 0.0)
        o_ref[...] = y.astype(o_ref.dtype)


def _mha_core(q, k, v, allow, num_heads, dk):
    """Scaled dot-product attention over all heads at once.

    q: (Lq, H*dk) f32, k/v: (Lk, H*dk) f32, allow: bool broadcastable to
    (Lq, Lk).  Returns (H, Lq, dk) f32.  Heads are stacked into a leading
    batch dim so one batched MXU matmul serves all heads -- a single
    (H, Lq, Lk) score tensor is live instead of H unrolled (L, L) matrices."""
    scale = 1.0 / math.sqrt(dk)
    qh = jnp.stack([q[:, h * dk:(h + 1) * dk] for h in range(num_heads)],
                   axis=0).astype(_MXU_DTYPE)
    kh = jnp.stack([k[:, h * dk:(h + 1) * dk] for h in range(num_heads)],
                   axis=0).astype(_MXU_DTYPE)
    vh = jnp.stack([v[:, h * dk:(h + 1) * dk] for h in range(num_heads)],
                   axis=0).astype(_MXU_DTYPE)
    s = jnp.einsum("hqd,hkd->hqk", qh, kh,
                   preferred_element_type=jnp.float32) * scale
    s = jnp.where(allow[None], s, _NEG_INF)
    s = s - jnp.max(s, axis=-1, keepdims=True)
    p = jnp.exp(s)
    p = p * pl.reciprocal(jnp.sum(p, axis=-1, keepdims=True), approx=True)
    return jnp.einsum("hqk,hkd->hqd", p.astype(_MXU_DTYPE), vh,
                      preferred_element_type=jnp.float32)


def _self_attn_kernel(x_ref, wqkv_ref, bqkv_ref, valid_ref, o_ref, *,
                      num_heads, d_model, causal):
    """Fused QKV projection + multi-head self-attention for one batch element.
    x (1, L, D), Wqkv (D, 3D) bf16 resident, valid (1, 1, L) -> ctx (1, L, D)."""
    L = x_ref.shape[1]
    dk = d_model // num_heads
    x = x_ref[0].astype(_MXU_DTYPE)                           # (L, D)
    qkv = jnp.dot(x, wqkv_ref[...],
                  preferred_element_type=jnp.float32) + bqkv_ref[...]
    q = qkv[:, :d_model]
    k = qkv[:, d_model:2 * d_model]
    v = qkv[:, 2 * d_model:]
    key_ok = valid_ref[0] != 0                                # (1, L) bool
    if causal:
        # Built once per grid step (per batch element), not per kv block.
        row = jax.lax.broadcasted_iota(jnp.int32, (L, L), 0)
        col = jax.lax.broadcasted_iota(jnp.int32, (L, L), 1)
        allow = jnp.logical_and(key_ok, col <= row)           # (L, L)
    else:
        allow = key_ok
    ctx = _mha_core(q, k, v, allow, num_heads, dk)            # (H, L, dk) f32
    for h in range(num_heads):                                # stores only
        o_ref[0, :, h * dk:(h + 1) * dk] = ctx[h].astype(o_ref.dtype)


def _cross_attn_kernel(x_ref, enc_ref, wq_ref, bq_ref, wkv_ref, bkv_ref,
                       valid_ref, o_ref, *, num_heads, d_model):
    """Fused Q / KV projections + multi-head cross-attention for one batch
    element.  x (1, Lq, D), enc (1, Lk, D), valid (1, 1, Lk) -> (1, Lq, D)."""
    dk = d_model // num_heads
    x = x_ref[0].astype(_MXU_DTYPE)
    enc = enc_ref[0].astype(_MXU_DTYPE)
    q = jnp.dot(x, wq_ref[...],
                preferred_element_type=jnp.float32) + bq_ref[...]
    kv = jnp.dot(enc, wkv_ref[...],
                 preferred_element_type=jnp.float32) + bkv_ref[...]
    k = kv[:, :d_model]
    v = kv[:, d_model:]
    key_ok = valid_ref[0] != 0                                # (1, Lk)
    ctx = _mha_core(q, k, v, key_ok, num_heads, dk)           # (H, Lq, dk)
    for h in range(num_heads):
        o_ref[0, :, h * dk:(h + 1) * dk] = ctx[h].astype(o_ref.dtype)


def _proj_add_ln_kernel(ctx_ref, w_ref, b_ref, res_ref, g_ref, beta_ref, o_ref):
    """LayerNorm(res + ctx @ Wo + bo), row-tiled.  bf16 matmul, f32 LN."""
    y = jnp.dot(ctx_ref[...].astype(_MXU_DTYPE), w_ref[...],
                preferred_element_type=jnp.float32) + b_ref[...]
    z = res_ref[...] + y
    mean = jnp.mean(z, axis=-1, keepdims=True)
    var = jnp.mean(jnp.square(z - mean), axis=-1, keepdims=True)
    o_ref[...] = ((z - mean) * jax.lax.rsqrt(var + _LN_EPS) * g_ref[...]
                  + beta_ref[...]).astype(o_ref.dtype)


def _ffn_add_ln_kernel(x_ref, w1_ref, b1_ref, w2_ref, b2_ref, g_ref, beta_ref,
                       o_ref):
    """LayerNorm(x + relu(x@W1+b1)@W2+b2), row-tiled; the (tm, d_ff) hidden
    activation never leaves VMEM."""
    # TODO(synk): tile d_ff with an in-kernel reduction for very large d_ff so
    # the hidden slab and W1/W2 slices stay small on v7x (64 MiB VMEM).
    x = x_ref[...]
    h = jnp.maximum(
        jnp.dot(x.astype(_MXU_DTYPE), w1_ref[...],
                preferred_element_type=jnp.float32) + b1_ref[...], 0.0)
    y = jnp.dot(h.astype(_MXU_DTYPE), w2_ref[...],
                preferred_element_type=jnp.float32) + b2_ref[...]
    z = x + y
    mean = jnp.mean(z, axis=-1, keepdims=True)
    var = jnp.mean(jnp.square(z - mean), axis=-1, keepdims=True)
    o_ref[...] = ((z - mean) * jax.lax.rsqrt(var + _LN_EPS) * g_ref[...]
                  + beta_ref[...]).astype(o_ref.dtype)


# ------------------------------------------------------------------
# pallas_call wrappers
# ------------------------------------------------------------------
def pallas_linear(x2d, W, b, activation=False):
    """y = x @ W + b.  W is stored pre-transposed (Din, Dout) in bf16."""
    M, K = x2d.shape
    N = W.shape[1]
    tm = _row_tile(M, 256)
    tn = _pick_tile(N, 512, 128)
    tk = _pick_tile(K, 512, 128)
    grid = (M // tm, N // tn, K // tk)
    vmem = (2 * (_nbytes((tm, tk), jnp.float32) + _nbytes((tk, tn), _MXU_DTYPE)
                 + _nbytes((1, tn), jnp.float32) + _nbytes((tm, tn), jnp.float32))
            + _nbytes((tm, tn), jnp.float32))
    kern = functools.partial(_matmul_bias_kernel, activation=activation)
    return pl.pallas_call(
        kern,
        out_shape=jax.ShapeDtypeStruct((M, N), jnp.float32),
        grid=grid,
        in_specs=[
            pl.BlockSpec((tm, tk), lambda i, j, k: (i, k)),
            pl.BlockSpec((tk, tn), lambda i, j, k: (k, j)),
            pl.BlockSpec((1, tn), lambda i, j, k: (0, j)),
        ],
        out_specs=pl.BlockSpec((tm, tn), lambda i, j, k: (i, j)),
        scratch_shapes=[pltpu.VMEM((tm, tn), jnp.float32)],
        compiler_params=_compiler_params(
            ("parallel", "parallel", "arbitrary"), vmem),
    )(x2d, W, b.reshape(1, N))


def pallas_self_attention(x, wqkv, bqkv, key_valid, *, num_heads, causal):
    """Fused QKV projection + self-attention.  x (B, L, D) f32, wqkv (D, 3D)
    bf16, key_valid (B, 1, L) int32 -> (B, L, D) f32."""
    # TODO(synk): add flash-style Lq/Lk tiling (online softmax) for long
    # sequences; the full per-head (L, L) score tensor is materialized here.
    B, L, D = x.shape
    dk = D // num_heads
    kern = functools.partial(_self_attn_kernel, num_heads=num_heads,
                             d_model=D, causal=causal)
    vmem = (2 * 2 * _nbytes((1, L, D), jnp.float32)
            + 2 * _nbytes((D, 3 * D), _MXU_DTYPE)
            + 2 * _nbytes((1, 3 * D), jnp.float32)
            + 2 * _nbytes((1, 1, L), jnp.int32)
            + _nbytes((L, 3 * D), jnp.float32)
            + 3 * _nbytes((num_heads, L, L), jnp.float32)
            + 4 * _nbytes((num_heads, L, dk), jnp.float32))
    return pl.pallas_call(
        kern,
        out_shape=jax.ShapeDtypeStruct((B, L, D), jnp.float32),
        grid=(B,),
        in_specs=[
            pl.BlockSpec((1, L, D), lambda b: (b, 0, 0)),
            _resident_spec((D, 3 * D), lambda b: (0, 0)),
            _resident_spec((1, 3 * D), lambda b: (0, 0)),
            pl.BlockSpec((1, 1, L), lambda b: (b, 0, 0)),
        ],
        out_specs=pl.BlockSpec((1, L, D), lambda b: (b, 0, 0)),
        compiler_params=_compiler_params(("parallel",), vmem),
    )(x, wqkv, bqkv.reshape(1, 3 * D), key_valid)


def pallas_cross_attention(x, enc, wq, bq, wkv, bkv, key_valid, *, num_heads):
    """Fused Q/KV projections + cross-attention.  x (B, Lq, D), enc (B, Lk, D),
    key_valid (B, 1, Lk) int32 -> (B, Lq, D) f32."""
    B, Lq, D = x.shape
    Lk = enc.shape[1]
    dk = D // num_heads
    kern = functools.partial(_cross_attn_kernel, num_heads=num_heads, d_model=D)
    vmem = (2 * (2 * _nbytes((1, Lq, D), jnp.float32)
                 + _nbytes((1, Lk, D), jnp.float32))
            + 2 * (_nbytes((D, D), _MXU_DTYPE) + _nbytes((D, 2 * D), _MXU_DTYPE))
            + 2 * (_nbytes((1, D), jnp.float32) + _nbytes((1, 2 * D), jnp.float32))
            + 2 * _nbytes((1, 1, Lk), jnp.int32)
            + _nbytes((Lk, 2 * D), jnp.float32)
            + 3 * _nbytes((num_heads, Lq, Lk), jnp.float32)
            + 4 * _nbytes((num_heads, Lq, dk), jnp.float32))
    return pl.pallas_call(
        kern,
        out_shape=jax.ShapeDtypeStruct((B, Lq, D), jnp.float32),
        grid=(B,),
        in_specs=[
            pl.BlockSpec((1, Lq, D), lambda b: (b, 0, 0)),
            pl.BlockSpec((1, Lk, D), lambda b: (b, 0, 0)),
            _resident_spec((D, D), lambda b: (0, 0)),
            _resident_spec((1, D), lambda b: (0, 0)),
            _resident_spec((D, 2 * D), lambda b: (0, 0)),
            _resident_spec((1, 2 * D), lambda b: (0, 0)),
            pl.BlockSpec((1, 1, Lk), lambda b: (b, 0, 0)),
        ],
        out_specs=pl.BlockSpec((1, Lq, D), lambda b: (b, 0, 0)),
        compiler_params=_compiler_params(("parallel",), vmem),
    )(x, enc, wq, bq.reshape(1, D), wkv, bkv.reshape(1, 2 * D), key_valid)


def pallas_proj_add_ln(ctx2d, Wo, bo, res2d, gamma, beta):
    """LayerNorm(res + ctx @ Wo + bo); row-tiled, Wo VMEM-resident."""
    M, D = res2d.shape
    tm = _row_tile(M, 256)
    vmem = (2 * 3 * _nbytes((tm, D), jnp.float32)
            + 2 * _nbytes((D, D), _MXU_DTYPE)
            + 2 * 3 * _nbytes((1, D), jnp.float32))
    return pl.pallas_call(
        _proj_add_ln_kernel,
        out_shape=jax.ShapeDtypeStruct((M, D), jnp.float32),
        grid=(M // tm,),
        in_specs=[
            pl.BlockSpec((tm, D), lambda i: (i, 0)),
            _resident_spec((D, D), lambda i: (0, 0)),
            _resident_spec((1, D), lambda i: (0, 0)),
            pl.BlockSpec((tm, D), lambda i: (i, 0)),
            _resident_spec((1, D), lambda i: (0, 0)),
            _resident_spec((1, D), lambda i: (0, 0)),
        ],
        out_specs=pl.BlockSpec((tm, D), lambda i: (i, 0)),
        compiler_params=_compiler_params(("parallel",), vmem),
    )(ctx2d, Wo, bo.reshape(1, D), res2d, gamma.reshape(1, D), beta.reshape(1, D))


def pallas_ffn_add_ln(x2d, W1, b1, W2, b2, gamma, beta):
    """LayerNorm(x + relu(x@W1+b1)@W2+b2); row-tiled, W1/W2 VMEM-resident."""
    M, D = x2d.shape
    Dff = W1.shape[1]
    tm = _row_tile(M, 256)
    vmem = (2 * 2 * _nbytes((tm, D), jnp.float32)
            + 2 * (_nbytes((D, Dff), _MXU_DTYPE) + _nbytes((Dff, D), _MXU_DTYPE))
            + 2 * (_nbytes((1, Dff), jnp.float32) + 3 * _nbytes((1, D), jnp.float32))
            + _nbytes((tm, Dff), jnp.float32))
    return pl.pallas_call(
        _ffn_add_ln_kernel,
        out_shape=jax.ShapeDtypeStruct((M, D), jnp.float32),
        grid=(M // tm,),
        in_specs=[
            pl.BlockSpec((tm, D), lambda i: (i, 0)),
            _resident_spec((D, Dff), lambda i: (0, 0)),
            _resident_spec((1, Dff), lambda i: (0, 0)),
            _resident_spec((Dff, D), lambda i: (0, 0)),
            _resident_spec((1, D), lambda i: (0, 0)),
            _resident_spec((1, D), lambda i: (0, 0)),
            _resident_spec((1, D), lambda i: (0, 0)),
        ],
        out_specs=pl.BlockSpec((tm, D), lambda i: (i, 0)),
        compiler_params=_compiler_params(("parallel",), vmem),
    )(x2d, W1, b1.reshape(1, Dff), W2, b2.reshape(1, D),
      gamma.reshape(1, D), beta.reshape(1, D))


# ------------------------------------------------------------------
# Model glue (plain JAX between kernels; dropout = identity / eval mode)
# ------------------------------------------------------------------
def encoder_layer(p, x, src_key_valid, num_heads):
    B, L, D = x.shape
    ctx = pallas_self_attention(x, p["sa"]["Wqkv"], p["sa"]["bqkv"],
                                src_key_valid, num_heads=num_heads, causal=False)
    x2d = pallas_proj_add_ln(ctx.reshape(-1, D), p["sa"]["Wo"], p["sa"]["bo"],
                             x.reshape(-1, D), p["ln1_g"], p["ln1_b"])
    x2d = pallas_ffn_add_ln(x2d, p["ffn"]["W1"], p["ffn"]["b1"],
                            p["ffn"]["W2"], p["ffn"]["b2"],
                            p["ln2_g"], p["ln2_b"])
    return x2d.reshape(B, L, D)


def decoder_layer(p, x, enc, src_key_valid, tgt_key_valid, num_heads):
    B, Lt, D = x.shape
    # masked (causal) self-attention
    ctx = pallas_self_attention(x, p["sa"]["Wqkv"], p["sa"]["bqkv"],
                                tgt_key_valid, num_heads=num_heads, causal=True)
    x2d = pallas_proj_add_ln(ctx.reshape(-1, D), p["sa"]["Wo"], p["sa"]["bo"],
                             x.reshape(-1, D), p["ln1_g"], p["ln1_b"])
    # cross-attention over the encoder output
    ctx = pallas_cross_attention(x2d.reshape(B, Lt, D), enc,
                                 p["ca"]["Wq"], p["ca"]["bq"],
                                 p["ca"]["Wkv"], p["ca"]["bkv"],
                                 src_key_valid, num_heads=num_heads)
    x2d = pallas_proj_add_ln(ctx.reshape(-1, D), p["ca"]["Wo"], p["ca"]["bo"],
                             x2d, p["ln2_g"], p["ln2_b"])
    # position-wise feed-forward
    x2d = pallas_ffn_add_ln(x2d, p["ffn"]["W1"], p["ffn"]["b1"],
                            p["ffn"]["W2"], p["ffn"]["b2"],
                            p["ln3_g"], p["ln3_b"])
    return x2d.reshape(B, Lt, D)


def positional_encoding(max_len, d_model):
    position = jnp.arange(max_len, dtype=jnp.float32)[:, None]
    div_term = jnp.exp(jnp.arange(0, d_model, 2, dtype=jnp.float32)
                       * (-math.log(10000.0) / d_model))
    pe = jnp.zeros((max_len, d_model), jnp.float32)
    pe = pe.at[:, 0::2].set(jnp.sin(position * div_term))
    pe = pe.at[:, 1::2].set(jnp.cos(position * div_term))
    return pe


@functools.partial(jax.jit, static_argnames=("num_heads",))
def transformer_forward(params, src, tgt, num_heads):
    d_model = params["src_emb"].shape[1]
    B, Ls = src.shape
    Lt = tgt.shape[1]
    pe = params["pe"]

    # Embedding gather + positional encoding (plain JAX; dropout = identity).
    src_x = params["src_emb"][src] * math.sqrt(d_model) + pe[None, :Ls, :]
    tgt_x = params["tgt_emb"][tgt] * math.sqrt(d_model) + pe[None, :Lt, :]

    # Compact masks: per-key validity (pad_idx=0); the causal part of the
    # decoder mask is built inside the kernel from iota.
    src_key_valid = (src != 0).astype(jnp.int32).reshape(B, 1, Ls)
    # TODO(synk): plumb a real target padding mask (tgt_key_padding_mask);
    # decoder self-attention currently applies the causal mask only.
    tgt_key_valid = jnp.ones((B, 1, Lt), jnp.int32)

    enc = src_x
    for lp in params["encoder_layers"]:
        enc = encoder_layer(lp, enc, src_key_valid, num_heads)

    dec = tgt_x
    for lp in params["decoder_layers"]:
        dec = decoder_layer(lp, dec, enc, src_key_valid, tgt_key_valid, num_heads)

    D = dec.shape[-1]
    out = pallas_linear(dec.reshape(-1, D), params["Wf"], params["bf"])
    return out.reshape(B, Lt, -1)


# ------------------------------------------------------------------
# Parameter init (matmul weights pre-transposed (Din, Dout), stored bf16)
# ------------------------------------------------------------------
def _uniform(key, shape, fan_in, dtype=jnp.float32):
    scale = 1.0 / math.sqrt(fan_in)
    return jax.random.uniform(key, shape, jnp.float32, -scale, scale).astype(dtype)


def init_linear_t(key, din, dout):
    kw, kb = jax.random.split(key)
    return _uniform(kw, (din, dout), din, _MXU_DTYPE), _uniform(kb, (dout,), din)


def init_self_mha(key, d):
    k1, k2 = jax.random.split(key)
    Wqkv, bqkv = init_linear_t(k1, d, 3 * d)
    Wo, bo = init_linear_t(k2, d, d)
    return {"Wqkv": Wqkv, "bqkv": bqkv, "Wo": Wo, "bo": bo}


def init_cross_mha(key, d):
    k1, k2, k3 = jax.random.split(key, 3)
    Wq, bq = init_linear_t(k1, d, d)
    Wkv, bkv = init_linear_t(k2, d, 2 * d)
    Wo, bo = init_linear_t(k3, d, d)
    return {"Wq": Wq, "bq": bq, "Wkv": Wkv, "bkv": bkv, "Wo": Wo, "bo": bo}


def init_ffn(key, d_model, d_ff):
    k1, k2 = jax.random.split(key)
    W1, b1 = init_linear_t(k1, d_model, d_ff)
    W2, b2 = init_linear_t(k2, d_ff, d_model)
    return {"W1": W1, "b1": b1, "W2": W2, "b2": b2}


def init_encoder_layer(key, d_model, d_ff):
    k1, k2 = jax.random.split(key)
    return {
        "sa": init_self_mha(k1, d_model),
        "ffn": init_ffn(k2, d_model, d_ff),
        "ln1_g": jnp.ones((d_model,), jnp.float32),
        "ln1_b": jnp.zeros((d_model,), jnp.float32),
        "ln2_g": jnp.ones((d_model,), jnp.float32),
        "ln2_b": jnp.zeros((d_model,), jnp.float32),
    }


def init_decoder_layer(key, d_model, d_ff):
    k1, k2, k3 = jax.random.split(key, 3)
    return {
        "sa": init_self_mha(k1, d_model),
        "ca": init_cross_mha(k2, d_model),
        "ffn": init_ffn(k3, d_model, d_ff),
        "ln1_g": jnp.ones((d_model,), jnp.float32),
        "ln1_b": jnp.zeros((d_model,), jnp.float32),
        "ln2_g": jnp.ones((d_model,), jnp.float32),
        "ln2_b": jnp.zeros((d_model,), jnp.float32),
        "ln3_g": jnp.ones((d_model,), jnp.float32),
        "ln3_b": jnp.zeros((d_model,), jnp.float32),
    }


def init_transformer(key, src_vocab, tgt_vocab, d_model, num_enc, num_dec,
                     d_ff, max_len):
    keys = jax.random.split(key, 3 + num_enc + num_dec)
    params = {
        "src_emb": jax.random.normal(keys[0], (src_vocab, d_model), jnp.float32),
        "tgt_emb": jax.random.normal(keys[1], (tgt_vocab, d_model), jnp.float32),
        "pe": positional_encoding(max_len, d_model),
        "encoder_layers": [
            init_encoder_layer(keys[3 + i], d_model, d_ff) for i in range(num_enc)
        ],
        "decoder_layers": [
            init_decoder_layer(keys[3 + num_enc + i], d_model, d_ff)
            for i in range(num_dec)
        ],
    }
    Wf, bf = init_linear_t(keys[2], d_model, tgt_vocab)
    params["Wf"] = Wf
    params["bf"] = bf
    return params


# ------------------------------------------------------------------
if __name__ == "__main__":
    src_vocab, tgt_vocab = 32, 32
    d_model, num_heads = 32, 4
    num_encoder_layers, num_decoder_layers = 2, 2
    d_ff, max_len = 64, 64
    batch, src_len, tgt_len = 2, 8, 8

    # Resolve the Buffered(1) feature probe before any real kernels compile.
    _ = _single_buffer_ok()

    key = jax.random.PRNGKey(0)
    kp, ks, kt = jax.random.split(key, 3)

    params = init_transformer(
        kp, src_vocab, tgt_vocab, d_model,
        num_encoder_layers, num_decoder_layers, d_ff, max_len,
    )

    src = jax.random.randint(ks, (batch, src_len), 0, src_vocab)
    tgt = jax.random.randint(kt, (batch, tgt_len), 0, tgt_vocab)

    out = transformer_forward(params, src, tgt, num_heads)
    jax.block_until_ready(out)
    assert out.shape == (batch, tgt_len, tgt_vocab)
    assert bool(jnp.all(jnp.isfinite(out)))
    print("KERNEL_OK")
</pallas_src>

<mosaic_0001>
module attributes {stable_mosaic.version = 11 : i64} {
  func.func @_k(%arg0: i32, %arg1: memref<8x128xf32, #tpu.memory_space<vmem>>, %arg2: memref<8x128xf32, #tpu.memory_space<vmem>>) attributes {dimension_semantics = [#tpu.dimension_semantics<arbitrary>], iteration_bounds = array<i64: 2>, scalar_prefetch = 0 : i64, scratch_operands = 0 : i64, tpu.core_type = #tpu.core_type<tc>, window_params = [{pipeline_mode = #tpu.pipeline_mode<synchronous>, transform_indices = @transform_0, window_bounds = array<i64: 8, 128>}, {pipeline_mode = #tpu.pipeline_mode<synchronous>, transform_indices = @transform_1, window_bounds = array<i64: 8, 128>}]} {
    %c0 = arith.constant 0 : index
    %c0_0 = arith.constant 0 : index
    %0 = vector.load %arg1[%c0, %c0_0] : memref<8x128xf32, #tpu.memory_space<vmem>>, vector<8x128xf32>
    %cst = arith.constant 1.000000e+00 : f32
    %1 = vector.broadcast %cst : f32 to vector<8x128xf32>
    %2 = arith.addf %0, %1 : vector<8x128xf32>
    %c0_1 = arith.constant 0 : index
    %c0_2 = arith.constant 0 : index
    %3 = vector.load %arg2[%c0_1, %c0_2] : memref<8x128xf32, #tpu.memory_space<vmem>>, vector<8x128xf32>
    tpu.vector_store %arg2[%c0_1, %c0_2], %2 {strides = array<i32>} : memref<8x128xf32, #tpu.memory_space<vmem>>, vector<8x128xf32>,
    return
  }
  func.func @transform_0(%arg0: i32) -> (i32, i32) {
    %c0_i32 = arith.constant 0 : i32
    %c0_i32_0 = arith.constant 0 : i32
    %c0_i32_1 = arith.constant 0 : i32
    return %c0_i32, %c0_i32_0 : i32, i32
  }
  func.func @transform_1(%arg0: i32) -> (i32, i32) {
    %c0_i32 = arith.constant 0 : i32
    %c0_i32_0 = arith.constant 0 : i32
    %c0_i32_1 = arith.constant 0 : i32
    return %c0_i32, %c0_i32_0 : i32, i32
  }
}

module attributes {stable_mosaic.version = 11 : i64} {
  func.func @_proj_add_ln_kernel(%arg0: i32, %arg1: memref<8x32xf32, #tpu.memory_space<vmem>>, %arg2: memref<32x32xbf16, #tpu.memory_space<vmem>>, %arg3: memref<1x32xf32, #tpu.memory_space<vmem>>, %arg4: memref<8x32xf32, #tpu.memory_space<vmem>>, %arg5: memref<1x32xf32, #tpu.memory_space<vmem>>, %arg6: memref<1x32xf32, #tpu.memory_space<vmem>>, %arg7: memref<8x32xf32, #tpu.memory_space<vmem>>) attributes {dimension_semantics = [#tpu.dimension_semantics<parallel>], iteration_bounds = array<i64: 2>, scalar_prefetch = 0 : i64, scratch_operands = 0 : i64, tpu.core_type = #tpu.core_type<tc>, window_params = [{transform_indices = @transform_0, window_bounds = array<i64: 8, 32>}, {pipeline_mode = #tpu.pipeline_mode<synchronous>, transform_indices = @transform_1, window_bounds = array<i64: 32, 32>}, {pipeline_mode = #tpu.pipeline_mode<synchronous>, transform_indices = @transform_2, window_bounds = array<i64: 1, 32>}, {transform_indices = @transform_3, window_bounds = array<i64: 8, 32>}, {pipeline_mode = #tpu.pipeline_mode<synchronous>, transform_indices = @transform_4, window_bounds = array<i64: 1, 32>}, {pipeline_mode = #tpu.pipeline_mode<synchronous>, transform_indices = @transform_5, window_bounds = array<i64: 1, 32>}, {transform_indices = @transform_6, window_bounds = array<i64: 8, 32>}]} {
    %c0 = arith.constant 0 : index
    %c0_0 = arith.constant 0 : index
    %0 = vector.load %arg1[%c0, %c0_0] : memref<8x32xf32, #tpu.memory_space<vmem>>, vector<8x32xf32>
    %1 = arith.truncf %0 : vector<8x32xf32> to vector<8x32xbf16>
    %c0_1 = arith.constant 0 : index
    %c0_2 = arith.constant 0 : index
    %2 = vector.load %arg2[%c0_1, %c0_2] : memref<32x32xbf16, #tpu.memory_space<vmem>>, vector<32x32xbf16>
    %cst = arith.constant dense<0.000000e+00> : vector<8x32xf32>
    %3 = tpu.matmul %1, %2, %cst {dimension_numbers = #tpu.dot_dimension_numbers<[1], [0], [0], [1], [0, 0, 1, 1], [], []>} : vector<8x32xbf16>, vector<32x32xbf16>, vector<8x32xf32> -> vector<8x32xf32>
    %c0_3 = arith.constant 0 : index
    %c0_4 = arith.constant 0 : index
    %4 = vector.load %arg3[%c0_3, %c0_4] : memref<1x32xf32, #tpu.memory_space<vmem>>, vector<1x32xf32>
    %5 = vector.broadcast %4 : vector<1x32xf32> to vector<8x32xf32>
    %6 = arith.addf %3, %5 : vector<8x32xf32>
    %c0_5 = arith.constant 0 : index
    %c0_6 = arith.constant 0 : index
    %7 = vector.load %arg4[%c0_5, %c0_6] : memref<8x32xf32, #tpu.memory_space<vmem>>, vector<8x32xf32>
    %8 = arith.addf %7, %6 : vector<8x32xf32>
    %cst_7 = arith.constant dense<0.000000e+00> : vector<8xf32>
    %9 = vector.multi_reduction <add>, %8, %cst_7 [1] : vector<8x32xf32> to vector<8xf32>
    %10 = vector.shape_cast %9 : vector<8xf32> to vector<8x1xf32>
    %cst_8 = arith.constant 3.200000e+01 : f32
    %11 = vector.broadcast %cst_8 : f32 to vector<8x1xf32>
    %12 = arith.divf %10, %11 : vector<8x1xf32>
    %13 = vector.broadcast %12 : vector<8x1xf32> to vector<8x32xf32>
    %14 = arith.subf %8, %13 : vector<8x32xf32>
    %15 = arith.mulf %14, %14 : vector<8x32xf32>
    %cst_9 = arith.constant dense<0.000000e+00> : vector<8xf32>
    %16 = vector.multi_reduction <add>, %15, %cst_9 [1] : vector<8x32xf32> to vector<8xf32>
    %17 = vector.shape_cast %16 : vector<8xf32> to vector<8x1xf32>
    %cst_10 = arith.constant 3.200000e+01 : f32
    %18 = vector.broadcast %cst_10 : f32 to vector<8x1xf32>
    %19 = arith.divf %17, %18 : vector<8x1xf32>
    %20 = vector.broadcast %12 : vector<8x1xf32> to vector<8x32xf32>
    %21 = arith.subf %8, %20 : vector<8x32xf32>
    %cst_11 = arith.constant 9.99999974E-6 : f32
    %22 = vector.broadcast %cst_11 : f32 to vector<8x1xf32>
    %23 = arith.addf %19, %22 : vector<8x1xf32>
    %24 = math.rsqrt %23 : vector<8x1xf32>
    %25 = vector.broadcast %24 : vector<8x1xf32> to vector<8x32xf32>
    %26 = arith.mulf %21, %25 : vector<8x32xf32>
    %c0_12 = arith.constant 0 : index
    %c0_13 = arith.constant 0 : index
    %27 = vector.load %arg5[%c0_12, %c0_13] : memref<1x32xf32, #tpu.memory_space<vmem>>, vector<1x32xf32>
    %28 = vector.broadcast %27 : vector<1x32xf32> to vector<8x32xf32>
    %29 = arith.mulf %26, %28 : vector<8x32xf32>
    %c0_14 = arith.constant 0 : index
    %c0_15 = arith.constant 0 : index
    %30 = vector.load %arg6[%c0_14, %c0_15] : memref<1x32xf32, #tpu.memory_space<vmem>>, vector<1x32xf32>
    %31 = vector.broadcast %30 : vector<1x32xf32> to vector<8x32xf32>
    %32 = arith.addf %29, %31 : vector<8x32xf32>
    %c0_16 = arith.constant 0 : index
    %c0_17 = arith.constant 0 : index
    %33 = vector.load %arg7[%c0_16, %c0_17] : memref<8x32xf32, #tpu.memory_space<vmem>>, vector<8x32xf32>
    tpu.vector_store %arg7[%c0_16, %c0_17], %32 {strides = array<i32>} : memref<8x32xf32, #tpu.memory_space<vmem>>, vector<8x32xf32>,
    return
  }
  func.func @transform_0(%arg0: i32) -> (i32, i32) {
    %c0_i32 = arith.constant 0 : i32
    %c0_i32_0 = arith.constant 0 : i32
    return %arg0, %c0_i32 : i32, i32
  }
  func.func @transform_1(%arg0: i32) -> (i32, i32) {
    %c0_i32 = arith.constant 0 : i32
    %c0_i32_0 = arith.constant 0 : i32
    %c0_i32_1 = arith.constant 0 : i32
    return %c0_i32, %c0_i32_0 : i32, i32
  }
  func.func @transform_2(%arg0: i32) -> (i32, i32) {
    %c0_i32 = arith.constant 0 : i32
    %c0_i32_0 = arith.constant 0 : i32
    %c0_i32_1 = arith.constant 0 : i32
    return %c0_i32, %c0_i32_0 : i32, i32
  }
  func.func @transform_3(%arg0: i32) -> (i32, i32) {
    %c0_i32 = arith.constant 0 : i32
    %c0_i32_0 = arith.constant 0 : i32
    return %arg0, %c0_i32 : i32, i32
  }
  func.func @transform_4(%arg0: i32) -> (i32, i32) {
    %c0_i32 = arith.constant 0 : i32
    %c0_i32_0 = arith.constant 0 : i32
    %c0_i32_1 = arith.constant 0 : i32
    return %c0_i32, %c0_i32_0 : i32, i32
  }
  func.func @transform_5(%arg0: i32) -> (i32, i32) {
    %c0_i32 = arith.constant 0 : i32
    %c0_i32_0 = arith.constant 0 : i32
    %c0_i32_1 = arith.constant 0 : i32
    return %c0_i32, %c0_i32_0 : i32, i32
  }
  func.func @transform_6(%arg0: i32) -> (i32, i32) {
    %c0_i32 = arith.constant 0 : i32
    %c0_i32_0 = arith.constant 0 : i32
    return %arg0, %c0_i32 : i32, i32
  }
}

module attributes {stable_mosaic.version = 11 : i64} {
  func.func @_self_attn_kernel(%arg0: i32, %arg1: memref<1x8x32xf32, #tpu.memory_space<vmem>>, %arg2: memref<32x96xbf16, #tpu.memory_space<vmem>>, %arg3: memref<1x96xf32, #tpu.memory_space<vmem>>, %arg4: memref<1x1x8xi32, #tpu.memory_space<vmem>>, %arg5: memref<1x8x32xf32, #tpu.memory_space<vmem>>) attributes {dimension_semantics = [#tpu.dimension_semantics<parallel>], iteration_bounds = array<i64: 2>, scalar_prefetch = 0 : i64, scratch_operands = 0 : i64, tpu.core_type = #tpu.core_type<tc>, window_params = [{transform_indices = @transform_0, window_bounds = array<i64: 1, 8, 32>}, {pipeline_mode = #tpu.pipeline_mode<synchronous>, transform_indices = @transform_1, window_bounds = array<i64: 32, 96>}, {pipeline_mode = #tpu.pipeline_mode<synchronous>, transform_indices = @transform_2, window_bounds = array<i64: 1, 96>}, {transform_indices = @transform_3, window_bounds = array<i64: 1, 1, 8>}, {transform_indices = @transform_4, window_bounds = array<i64: 1, 8, 32>}]} {
    %c0 = arith.constant 0 : index
    %c0_0 = arith.constant 0 : index
    %c0_1 = arith.constant 0 : index
    %0 = vector.load %arg1[%c0, %c0_0, %c0_1] : memref<1x8x32xf32, #tpu.memory_space<vmem>>, vector<1x8x32xf32>
    %1 = vector.shape_cast %0 : vector<1x8x32xf32> to vector<8x32xf32>
    %2 = arith.truncf %1 : vector<8x32xf32> to vector<8x32xbf16>
    %c0_2 = arith.constant 0 : index
    %c0_3 = arith.constant 0 : index
    %3 = vector.load %arg2[%c0_2, %c0_3] : memref<32x96xbf16, #tpu.memory_space<vmem>>, vector<32x96xbf16>
    %cst = arith.constant dense<0.000000e+00> : vector<8x96xf32>
    %4 = tpu.matmul %2, %3, %cst {dimension_numbers = #tpu.dot_dimension_numbers<[1], [0], [0], [1], [0, 0, 1, 1], [], []>} : vector<8x32xbf16>, vector<32x96xbf16>, vector<8x96xf32> -> vector<8x96xf32>
    %c0_4 = arith.constant 0 : index
    %c0_5 = arith.constant 0 : index
    %5 = vector.load %arg3[%c0_4, %c0_5] : memref<1x96xf32, #tpu.memory_space<vmem>>, vector<1x96xf32>
    %6 = vector.broadcast %5 : vector<1x96xf32> to vector<8x96xf32>
    %7 = arith.addf %4, %6 : vector<8x96xf32>
    %8 = vector.extract_strided_slice %7 {offsets = [0, 0], sizes = [8, 32], strides = [1, 1]} : vector<8x96xf32> to vector<8x32xf32>
    %9 = vector.extract_strided_slice %7 {offsets = [0, 32], sizes = [8, 32], strides = [1, 1]} : vector<8x96xf32> to vector<8x32xf32>
    %10 = vector.extract_strided_slice %7 {offsets = [0, 64], sizes = [8, 32], strides = [1, 1]} : vector<8x96xf32> to vector<8x32xf32>
    %c0_6 = arith.constant 0 : index
    %c0_7 = arith.constant 0 : index
    %c0_8 = arith.constant 0 : index
    %11 = vector.load %arg4[%c0_6, %c0_7, %c0_8] : memref<1x1x8xi32, #tpu.memory_space<vmem>>, vector<1x1x8xi32>
    %12 = vector.shape_cast %11 : vector<1x1x8xi32> to vector<1x8xi32>
    %c0_i32 = arith.constant 0 : i32
    %13 = vector.broadcast %c0_i32 : i32 to vector<1x8xi32>
    %14 = arith.cmpi ne, %12, %13 : vector<1x8xi32>
    %15 = vector.extract_strided_slice %8 {offsets = [0, 0], sizes = [8, 8], strides = [1, 1]} : vector<8x32xf32> to vector<8x8xf32>
    %16 = vector.extract_strided_slice %8 {offsets = [0, 8], sizes = [8, 8], strides = [1, 1]} : vector<8x32xf32> to vector<8x8xf32>
    %17 = vector.extract_strided_slice %8 {offsets = [0, 16], sizes = [8, 8], strides = [1, 1]} : vector<8x32xf32> to vector<8x8xf32>
    %18 = vector.extract_strided_slice %8 {offsets = [0, 24], sizes = [8, 8], strides = [1, 1]} : vector<8x32xf32> to vector<8x8xf32>
    %19 = vector.shape_cast %15 : vector<8x8xf32> to vector<1x8x8xf32>
    %20 = vector.shape_cast %16 : vector<8x8xf32> to vector<1x8x8xf32>
    %21 = vector.shape_cast %17 : vector<8x8xf32> to vector<1x8x8xf32>
    %22 = vector.shape_cast %18 : vector<8x8xf32> to vector<1x8x8xf32>
    %23 = tpu.concatenate %19, %20, %21, %22 in 0 : vector<1x8x8xf32>, vector<1x8x8xf32>, vector<1x8x8xf32>, vector<1x8x8xf32> -> vector<4x8x8xf32>
    %24 = arith.truncf %23 : vector<4x8x8xf32> to vector<4x8x8xbf16>
    %25 = vector.extract_strided_slice %9 {offsets = [0, 0], sizes = [8, 8], strides = [1, 1]} : vector<8x32xf32> to vector<8x8xf32>
    %26 = vector.extract_strided_slice %9 {offsets = [0, 8], sizes = [8, 8], strides = [1, 1]} : vector<8x32xf32> to vector<8x8xf32>
    %27 = vector.extract_strided_slice %9 {offsets = [0, 16], sizes = [8, 8], strides = [1, 1]} : vector<8x32xf32> to vector<8x8xf32>
    %28 = vector.extract_strided_slice %9 {offsets = [0, 24], sizes = [8, 8], strides = [1, 1]} : vector<8x32xf32> to vector<8x8xf32>
    %29 = vector.shape_cast %25 : vector<8x8xf32> to vector<1x8x8xf32>
    %30 = vector.shape_cast %26 : vector<8x8xf32> to vector<1x8x8xf32>
    %31 = vector.shape_cast %27 : vector<8x8xf32> to vector<1x8x8xf32>
    %32 = vector.shape_cast %28 : vector<8x8xf32> to vector<1x8x8xf32>
    %33 = tpu.concatenate %29, %30, %31, %32 in 0 : vector<1x8x8xf32>, vector<1x8x8xf32>, vector<1x8x8xf32>, vector<1x8x8xf32> -> vector<4x8x8xf32>
    %34 = arith.truncf %33 : vector<4x8x8xf32> to vector<4x8x8xbf16>
    %35 = vector.extract_strided_slice %10 {offsets = [0, 0], sizes = [8, 8], strides = [1, 1]} : vector<8x32xf32> to vector<8x8xf32>
    %36 = vector.extract_strided_slice %10 {offsets = [0, 8], sizes = [8, 8], strides = [1, 1]} : vector<8x32xf32> to vector<8x8xf32>
    %37 = vector.extract_strided_slice %10 {offsets = [0, 16], sizes = [8, 8], strides = [1, 1]} : vector<8x32xf32> to vector<8x8xf32>
    %38 = vector.extract_strided_slice %10 {offsets = [0, 24], sizes = [8, 8], strides = [1, 1]} : vector<8x32xf32> to vector<8x8xf32>
    %39 = vector.shape_cast %35 : vector<8x8xf32> to vector<1x8x8xf32>
    %40 = vector.shape_cast %36 : vector<8x8xf32> to vector<1x8x8xf32>
    %41 = vector.shape_cast %37 : vector<8x8xf32> to vector<1x8x8xf32>
    %42 = vector.shape_cast %38 : vector<8x8xf32> to vector<1x8x8xf32>
    %43 = tpu.concatenate %39, %40, %41, %42 in 0 : vector<1x8x8xf32>, vector<1x8x8xf32>, vector<1x8x8xf32>, vector<1x8x8xf32> -> vector<4x8x8xf32>
    %44 = arith.truncf %43 : vector<4x8x8xf32> to vector<4x8x8xbf16>
    "tpu.trace_start"() <{level = 10 : i32, message = "hqd,hkd->hqk"}> : () -> ()
    %cst_9 = arith.constant dense<0.000000e+00> : vector<4x8x8xf32>
    %45 = tpu.matmul %24, %34, %cst_9 {dimension_numbers = #tpu.dot_dimension_numbers<[2], [2], [1], [1], [0, 0, 0, 1, 1, 1], [0], [0]>} : vector<4x8x8xbf16>, vector<4x8x8xbf16>, vector<4x8x8xf32> -> vector<4x8x8xf32>
    "tpu.trace_stop"() : () -> ()
    %cst_10 = arith.constant 0.353553385 : f32
    %46 = vector.broadcast %cst_10 : f32 to vector<4x8x8xf32>
    %47 = arith.mulf %45, %46 : vector<4x8x8xf32>
    %48 = vector.shape_cast %14 : vector<1x8xi1> to vector<1x1x8xi1>
    %cst_11 = arith.constant -1.000000e+09 : f32
    %49 = vector.shape_cast %48 : vector<1x1x8xi1> to vector<1x1x8xi1>
    %50 = vector.broadcast %49 : vector<1x1x8xi1> to vector<4x8x8xi1>
    %51 = vector.broadcast %cst_11 : f32 to vector<4x8x8xf32>
    %52 = arith.select %50, %47, %51 : vector<4x8x8xi1>, vector<4x8x8xf32>
    %cst_12 = arith.constant dense<0xFF800000> : vector<4x8xf32>
    %53 = vector.multi_reduction <maximumf>, %52, %cst_12 [2] : vector<4x8x8xf32> to vector<4x8xf32>
    %54 = vector.shape_cast %53 : vector<4x8xf32> to vector<4x8x1xf32>
    %55 = vector.broadcast %54 : vector<4x8x1xf32> to vector<4x8x8xf32>
    %56 = arith.subf %52, %55 : vector<4x8x8xf32>
    %57 = math.exp %56 : vector<4x8x8xf32>
    %cst_13 = arith.constant dense<0.000000e+00> : vector<4x8xf32>
    %58 = vector.multi_reduction <add>, %57, %cst_13 [2] : vector<4x8x8xf32> to vector<4x8xf32>
    %59 = vector.shape_cast %58 : vector<4x8xf32> to vector<4x8x1xf32>
    %60 = tpu.reciprocal %59 {approx = true} : vector<4x8x1xf32> -> vector<4x8x1xf32>
    %61 = vector.broadcast %60 : vector<4x8x1xf32> to vector<4x8x8xf32>
    %62 = arith.mulf %57, %61 : vector<4x8x8xf32>
    %63 = arith.truncf %62 : vector<4x8x8xf32> to vector<4x8x8xbf16>
    "tpu.trace_start"() <{level = 10 : i32, message = "hqk,hkd->hqd"}> : () -> ()
    %cst_14 = arith.constant dense<0.000000e+00> : vector<4x8x8xf32>
    %64 = tpu.matmul %63, %44, %cst_14 {dimension_numbers = #tpu.dot_dimension_numbers<[2], [1], [1], [2], [0, 0, 0, 1, 1, 2], [0], [0]>} : vector<4x8x8xbf16>, vector<4x8x8xbf16>, vector<4x8x8xf32> -> vector<4x8x8xf32>
    "tpu.trace_stop"() : () -> ()
    %65 = vector.extract_strided_slice %64 {offsets = [0, 0, 0], sizes = [1, 8, 8], strides = [1, 1, 1]} : vector<4x8x8xf32> to vector<1x8x8xf32>
    %66 = vector.shape_cast %65 : vector<1x8x8xf32> to vector<8x8xf32>
    %c0_15 = arith.constant 0 : index
    %c0_16 = arith.constant 0 : index
    %c0_17 = arith.constant 0 : index
    %67 = vector.load %arg5[%c0_15, %c0_16, %c0_17] : memref<1x8x32xf32, #tpu.memory_space<vmem>>, vector<1x8x8xf32>
    %68 = vector.shape_cast %67 : vector<1x8x8xf32> to vector<8x8xf32>
    %69 = vector.shape_cast %66 : vector<8x8xf32> to vector<1x8x8xf32>
    tpu.vector_store %arg5[%c0_15, %c0_16, %c0_17], %69 {strides = array<i32>} : memref<1x8x32xf32, #tpu.memory_space<vmem>>, vector<1x8x8xf32>,
    %70 = vector.extract_strided_slice %64 {offsets = [1, 0, 0], sizes = [1, 8, 8], strides = [1, 1, 1]} : vector<4x8x8xf32> to vector<1x8x8xf32>
    %71 = vector.shape_cast %70 : vector<1x8x8xf32> to vector<8x8xf32>
    %c0_18 = arith.constant 0 : index
    %c0_19 = arith.constant 0 : index
    %c8 = arith.constant 8 : index
    %72 = vector.load %arg5[%c0_18, %c0_19, %c8] : memref<1x8x32xf32, #tpu.memory_space<vmem>>, vector<1x8x8xf32>
    %73 = vector.shape_cast %72 : vector<1x8x8xf32> to vector<8x8xf32>
    %74 = vector.shape_cast %71 : vector<8x8xf32> to vector<1x8x8xf32>
    tpu.vector_store %arg5[%c0_18, %c0_19, %c8], %74 {strides = array<i32>} : memref<1x8x32xf32, #tpu.memory_space<vmem>>, vector<1x8x8xf32>,
    %75 = vector.extract_strided_slice %64 {offsets = [2, 0, 0], sizes = [1, 8, 8], strides = [1, 1, 1]} : vector<4x8x8xf32> to vector<1x8x8xf32>
    %76 = vector.shape_cast %75 : vector<1x8x8xf32> to vector<8x8xf32>
    %c0_20 = arith.constant 0 : index
    %c0_21 = arith.constant 0 : index
    %c16 = arith.constant 16 : index
    %77 = vector.load %arg5[%c0_20, %c0_21, %c16] : memref<1x8x32xf32, #tpu.memory_space<vmem>>, vector<1x8x8xf32>
    %78 = vector.shape_cast %77 : vector<1x8x8xf32> to vector<8x8xf32>
    %79 = vector.shape_cast %76 : vector<8x8xf32> to vector<1x8x8xf32>
    tpu.vector_store %arg5[%c0_20, %c0_21, %c16], %79 {strides = array<i32>} : memref<1x8x32xf32, #tpu.memory_space<vmem>>, vector<1x8x8xf32>,
    %80 = vector.extract_strided_slice %64 {offsets = [3, 0, 0], sizes = [1, 8, 8], strides = [1, 1, 1]} : vector<4x8x8xf32> to vector<1x8x8xf32>
    %81 = vector.shape_cast %80 : vector<1x8x8xf32> to vector<8x8xf32>
    %c0_22 = arith.constant 0 : index
    %c0_23 = arith.constant 0 : index
    %c24 = arith.constant 24 : index
    %82 = vector.load %arg5[%c0_22, %c0_23, %c24] : memref<1x8x32xf32, #tpu.memory_space<vmem>>, vector<1x8x8xf32>
    %83 = vector.shape_cast %82 : vector<1x8x8xf32> to vector<8x8xf32>
    %84 = vector.shape_cast %81 : vector<8x8xf32> to vector<1x8x8xf32>
    tpu.vector_store %arg5[%c0_22, %c0_23, %c24], %84 {strides = array<i32>} : memref<1x8x32xf32, #tpu.memory_space<vmem>>, vector<1x8x8xf32>,
    return
  }
  func.func @transform_0(%arg0: i32) -> (i32, i32, i32) {
    %c0_i32 = arith.constant 0 : i32
    %c0_i32_0 = arith.constant 0 : i32
    %c0_i32_1 = arith.constant 0 : i32
    return %arg0, %c0_i32, %c0_i32_0 : i32, i32, i32
  }
  func.func @transform_1(%arg0: i32) -> (i32, i32) {
    %c0_i32 = arith.constant 0 : i32
    %c0_i32_0 = arith.constant 0 : i32
    %c0_i32_1 = arith.constant 0 : i32
    return %c0_i32, %c0_i32_0 : i32, i32
  }
  func.func @transform_2(%arg0: i32) -> (i32, i32) {
    %c0_i32 = arith.constant 0 : i32
    %c0_i32_0 = arith.constant 0 : i32
    %c0_i32_1 = arith.constant 0 : i32
    return %c0_i32, %c0_i32_0 : i32, i32
  }
  func.func @transform_3(%arg0: i32) -> (i32, i32, i32) {
    %c0_i32 = arith.constant 0 : i32
    %c0_i32_0 = arith.constant 0 : i32
    %c0_i32_1 = arith.constant 0 : i32
    return %arg0, %c0_i32, %c0_i32_0 : i32, i32, i32
  }
  func.func @transform_4(%arg0: i32) -> (i32, i32, i32) {
    %c0_i32 = arith.constant 0 : i32
    %c0_i32_0 = arith.constant 0 : i32
    %c0_i32_1 = arith.constant 0 : i32
    return %arg0, %c0_i32, %c0_i32_0 : i32, i32, i32
  }
}

module attributes {stable_mosaic.version = 11 : i64} {
  func.func @_ffn_add_ln_kernel(%arg0: i32, %arg1: memref<8x32xf32, #tpu.memory_space<vmem>>, %arg2: memref<32x64xbf16, #tpu.memory_space<vmem>>, %arg3: memref<1x64xf32, #tpu.memory_space<vmem>>, %arg4: memref<64x32xbf16, #tpu.memory_space<vmem>>, %arg5: memref<1x32xf32, #tpu.memory_space<vmem>>, %arg6: memref<1x32xf32, #tpu.memory_space<vmem>>, %arg7: memref<1x32xf32, #tpu.memory_space<vmem>>, %arg8: memref<8x32xf32, #tpu.memory_space<vmem>>) attributes {dimension_semantics = [#tpu.dimension_semantics<parallel>], iteration_bounds = array<i64: 2>, scalar_prefetch = 0 : i64, scratch_operands = 0 : i64, tpu.core_type = #tpu.core_type<tc>, window_params = [{transform_indices = @transform_0, window_bounds = array<i64: 8, 32>}, {pipeline_mode = #tpu.pipeline_mode<synchronous>, transform_indices = @transform_1, window_bounds = array<i64: 32, 64>}, {pipeline_mode = #tpu.pipeline_mode<synchronous>, transform_indices = @transform_2, window_bounds = array<i64: 1, 64>}, {pipeline_mode = #tpu.pipeline_mode<synchronous>, transform_indices = @transform_3, window_bounds = array<i64: 64, 32>}, {pipeline_mode = #tpu.pipeline_mode<synchronous>, transform_indices = @transform_4, window_bounds = array<i64: 1, 32>}, {pipeline_mode = #tpu.pipeline_mode<synchronous>, transform_indices = @transform_5, window_bounds = array<i64: 1, 32>}, {pipeline_mode = #tpu.pipeline_mode<synchronous>, transform_indices = @transform_6, window_bounds = array<i64: 1, 32>}, {transform_indices = @transform_7, window_bounds = array<i64: 8, 32>}]} {
    %c0 = arith.constant 0 : index
    %c0_0 = arith.constant 0 : index
    %0 = vector.load %arg1[%c0, %c0_0] : memref<8x32xf32, #tpu.memory_space<vmem>>, vector<8x32xf32>
    %1 = arith.truncf %0 : vector<8x32xf32> to vector<8x32xbf16>
    %c0_1 = arith.constant 0 : index
    %c0_2 = arith.constant 0 : index
    %2 = vector.load %arg2[%c0_1, %c0_2] : memref<32x64xbf16, #tpu.memory_space<vmem>>, vector<32x64xbf16>
    %cst = arith.constant dense<0.000000e+00> : vector<8x64xf32>
    %3 = tpu.matmul %1, %2, %cst {dimension_numbers = #tpu.dot_dimension_numbers<[1], [0], [0], [1], [0, 0, 1, 1], [], []>} : vector<8x32xbf16>, vector<32x64xbf16>, vector<8x64xf32> -> vector<8x64xf32>
    %c0_3 = arith.constant 0 : index
    %c0_4 = arith.constant 0 : index
    %4 = vector.load %arg3[%c0_3, %c0_4] : memref<1x64xf32, #tpu.memory_space<vmem>>, vector<1x64xf32>
    %5 = vector.broadcast %4 : vector<1x64xf32> to vector<8x64xf32>
    %6 = arith.addf %3, %5 : vector<8x64xf32>
    %cst_5 = arith.constant 0.000000e+00 : f32
    %7 = vector.broadcast %cst_5 : f32 to vector<8x64xf32>
    %8 = arith.maximumf %6, %7 : vector<8x64xf32>
    %9 = arith.truncf %8 : vector<8x64xf32> to vector<8x64xbf16>
    %c0_6 = arith.constant 0 : index
    %c0_7 = arith.constant 0 : index
    %10 = vector.load %arg4[%c0_6, %c0_7] : memref<64x32xbf16, #tpu.memory_space<vmem>>, vector<64x32xbf16>
    %cst_8 = arith.constant dense<0.000000e+00> : vector<8x32xf32>
    %11 = tpu.matmul %9, %10, %cst_8 {dimension_numbers = #tpu.dot_dimension_numbers<[1], [0], [0], [1], [0, 0, 1, 1], [], []>} : vector<8x64xbf16>, vector<64x32xbf16>, vector<8x32xf32> -> vector<8x32xf32>
    %c0_9 = arith.constant 0 : index
    %c0_10 = arith.constant 0 : index
    %12 = vector.load %arg5[%c0_9, %c0_10] : memref<1x32xf32, #tpu.memory_space<vmem>>, vector<1x32xf32>
    %13 = vector.broadcast %12 : vector<1x32xf32> to vector<8x32xf32>
    %14 = arith.addf %11, %13 : vector<8x32xf32>
    %15 = arith.addf %0, %14 : vector<8x32xf32>
    %cst_11 = arith.constant dense<0.000000e+00> : vector<8xf32>
    %16 = vector.multi_reduction <add>, %15, %cst_11 [1] : vector<8x32xf32> to vector<8xf32>
    %17 = vector.shape_cast %16 : vector<8xf32> to vector<8x1xf32>
    %cst_12 = arith.constant 3.200000e+01 : f32
    %18 = vector.broadcast %cst_12 : f32 to vector<8x1xf32>
    %19 = arith.divf %17, %18 : vector<8x1xf32>
    %20 = vector.broadcast %19 : vector<8x1xf32> to vector<8x32xf32>
    %21 = arith.subf %15, %20 : vector<8x32xf32>
    %22 = arith.mulf %21, %21 : vector<8x32xf32>
    %cst_13 = arith.constant dense<0.000000e+00> : vector<8xf32>
    %23 = vector.multi_reduction <add>, %22, %cst_13 [1] : vector<8x32xf32> to vector<8xf32>
    %24 = vector.shape_cast %23 : vector<8xf32> to vector<8x1xf32>
    %cst_14 = arith.constant 3.200000e+01 : f32
    %25 = vector.broadcast %cst_14 : f32 to vector<8x1xf32>
    %26 = arith.divf %24, %25 : vector<8x1xf32>
    %27 = vector.broadcast %19 : vector<8x1xf32> to vector<8x32xf32>
    %28 = arith.subf %15, %27 : vector<8x32xf32>
    %cst_15 = arith.constant 9.99999974E-6 : f32
    %29 = vector.broadcast %cst_15 : f32 to vector<8x1xf32>
    %30 = arith.addf %26, %29 : vector<8x1xf32>
    %31 = math.rsqrt %30 : vector<8x1xf32>
    %32 = vector.broadcast %31 : vector<8x1xf32> to vector<8x32xf32>
    %33 = arith.mulf %28, %32 : vector<8x32xf32>
    %c0_16 = arith.constant 0 : index
    %c0_17 = arith.constant 0 : index
    %34 = vector.load %arg6[%c0_16, %c0_17] : memref<1x32xf32, #tpu.memory_space<vmem>>, vector<1x32xf32>
    %35 = vector.broadcast %34 : vector<1x32xf32> to vector<8x32xf32>
    %36 = arith.mulf %33, %35 : vector<8x32xf32>
    %c0_18 = arith.constant 0 : index
    %c0_19 = arith.constant 0 : index
    %37 = vector.load %arg7[%c0_18, %c0_19] : memref<1x32xf32, #tpu.memory_space<vmem>>, vector<1x32xf32>
    %38 = vector.broadcast %37 : vector<1x32xf32> to vector<8x32xf32>
    %39 = arith.addf %36, %38 : vector<8x32xf32>
    %c0_20 = arith.constant 0 : index
    %c0_21 = arith.constant 0 : index
    %40 = vector.load %arg8[%c0_20, %c0_21] : memref<8x32xf32, #tpu.memory_space<vmem>>, vector<8x32xf32>
    tpu.vector_store %arg8[%c0_20, %c0_21], %39 {strides = array<i32>} : memref<8x32xf32, #tpu.memory_space<vmem>>, vector<8x32xf32>,
    return
  }
  func.func @transform_0(%arg0: i32) -> (i32, i32) {
    %c0_i32 = arith.constant 0 : i32
    %c0_i32_0 = arith.constant 0 : i32
    return %arg0, %c0_i32 : i32, i32
  }
  func.func @transform_1(%arg0: i32) -> (i32, i32) {
    %c0_i32 = arith.constant 0 : i32
    %c0_i32_0 = arith.constant 0 : i32
    %c0_i32_1 = arith.constant 0 : i32
    return %c0_i32, %c0_i32_0 : i32, i32
  }
  func.func @transform_2(%arg0: i32) -> (i32, i32) {
    %c0_i32 = arith.constant 0 : i32
    %c0_i32_0 = arith.constant 0 : i32
    %c0_i32_1 = arith.constant 0 : i32
    return %c0_i32, %c0_i32_0 : i32, i32
  }
  func.func @transform_3(%arg0: i32) -> (i32, i32) {
    %c0_i32 = arith.constant 0 : i32
    %c0_i32_0 = arith.constant 0 : i32
    %c0_i32_1 = arith.constant 0 : i32
    return %c0_i32, %c0_i32_0 : i32, i32
  }
  func.func @transform_4(%arg0: i32) -> (i32, i32) {
    %c0_i32 = arith.constant 0 : i32
    %c0_i32_0 = arith.constant 0 : i32
    %c0_i32_1 = arith.constant 0 : i32
    return %c0_i32, %c0_i32_0 : i32, i32
  }
  func.func @transform_5(%arg0: i32) -> (i32, i32) {
    %c0_i32 = arith.constant 0 : i32
    %c0_i32_0 = arith.constant 0 : i32
    %c0_i32_1 = arith.constant 0 : i32
    return %c0_i32, %c0_i32_0 : i32, i32
  }
  func.func @transform_6(%arg0: i32) -> (i32, i32) {
    %c0_i32 = arith.constant 0 : i32
    %c0_i32_0 = arith.constant 0 : i32
    %c0_i32_1 = arith.constant 0 : i32
    return %c0_i32, %c0_i32_0 : i32, i32
  }
  func.func @transform_7(%arg0: i32) -> (i32, i32) {
    %c0_i32 = arith.constant 0 : i32
    %c0_i32_0 = arith.constant 0 : i32
    return %arg0, %c0_i32 : i32, i32
  }
}

module attributes {stable_mosaic.version = 11 : i64} {
  func.func @_self_attn_kernel(%arg0: i32, %arg1: memref<1x8x32xf32, #tpu.memory_space<vmem>>, %arg2: memref<32x96xbf16, #tpu.memory_space<vmem>>, %arg3: memref<1x96xf32, #tpu.memory_space<vmem>>, %arg4: memref<1x1x8xi32, #tpu.memory_space<vmem>>, %arg5: memref<1x8x32xf32, #tpu.memory_space<vmem>>) attributes {dimension_semantics = [#tpu.dimension_semantics<parallel>], iteration_bounds = array<i64: 2>, scalar_prefetch = 0 : i64, scratch_operands = 0 : i64, tpu.core_type = #tpu.core_type<tc>, window_params = [{transform_indices = @transform_0, window_bounds = array<i64: 1, 8, 32>}, {pipeline_mode = #tpu.pipeline_mode<synchronous>, transform_indices = @transform_1, window_bounds = array<i64: 32, 96>}, {pipeline_mode = #tpu.pipeline_mode<synchronous>, transform_indices = @transform_2, window_bounds = array<i64: 1, 96>}, {transform_indices = @transform_3, window_bounds = array<i64: 1, 1, 8>}, {transform_indices = @transform_4, window_bounds = array<i64: 1, 8, 32>}]} {
    %c0 = arith.constant 0 : index
    %c0_0 = arith.constant 0 : index
    %c0_1 = arith.constant 0 : index
    %0 = vector.load %arg1[%c0, %c0_0, %c0_1] : memref<1x8x32xf32, #tpu.memory_space<vmem>>, vector<1x8x32xf32>
    %1 = vector.shape_cast %0 : vector<1x8x32xf32> to vector<8x32xf32>
    %2 = arith.truncf %1 : vector<8x32xf32> to vector<8x32xbf16>
    %c0_2 = arith.constant 0 : index
    %c0_3 = arith.constant 0 : index
    %3 = vector.load %arg2[%c0_2, %c0_3] : memref<32x96xbf16, #tpu.memory_space<vmem>>, vector<32x96xbf16>
    %cst = arith.constant dense<0.000000e+00> : vector<8x96xf32>
    %4 = tpu.matmul %2, %3, %cst {dimension_numbers = #tpu.dot_dimension_numbers<[1], [0], [0], [1], [0, 0, 1, 1], [], []>} : vector<8x32xbf16>, vector<32x96xbf16>, vector<8x96xf32> -> vector<8x96xf32>
    %c0_4 = arith.constant 0 : index
    %c0_5 = arith.constant 0 : index
    %5 = vector.load %arg3[%c0_4, %c0_5] : memref<1x96xf32, #tpu.memory_space<vmem>>, vector<1x96xf32>
    %6 = vector.broadcast %5 : vector<1x96xf32> to vector<8x96xf32>
    %7 = arith.addf %4, %6 : vector<8x96xf32>
    %8 = vector.extract_strided_slice %7 {offsets = [0, 0], sizes = [8, 32], strides = [1, 1]} : vector<8x96xf32> to vector<8x32xf32>
    %9 = vector.extract_strided_slice %7 {offsets = [0, 32], sizes = [8, 32], strides = [1, 1]} : vector<8x96xf32> to vector<8x32xf32>
    %10 = vector.extract_strided_slice %7 {offsets = [0, 64], sizes = [8, 32], strides = [1, 1]} : vector<8x96xf32> to vector<8x32xf32>
    %c0_6 = arith.constant 0 : index
    %c0_7 = arith.constant 0 : index
    %c0_8 = arith.constant 0 : index
    %11 = vector.load %arg4[%c0_6, %c0_7, %c0_8] : memref<1x1x8xi32, #tpu.memory_space<vmem>>, vector<1x1x8xi32>
    %12 = vector.shape_cast %11 : vector<1x1x8xi32> to vector<1x8xi32>
    %c0_i32 = arith.constant 0 : i32
    %13 = vector.broadcast %c0_i32 : i32 to vector<1x8xi32>
    %14 = arith.cmpi ne, %12, %13 : vector<1x8xi32>
    %15 = tpu.iota {dimensions = array<i32: 0>} : vector<8x8xi32>
    %16 = tpu.iota {dimensions = array<i32: 1>} : vector<8x8xi32>
    %17 = arith.cmpi sle, %16, %15 : vector<8x8xi32>
    %18 = vector.broadcast %14 : vector<1x8xi1> to vector<8x8xi1>
    %19 = arith.andi %18, %17 : vector<8x8xi1>
    %20 = vector.extract_strided_slice %8 {offsets = [0, 0], sizes = [8, 8], strides = [1, 1]} : vector<8x32xf32> to vector<8x8xf32>
    %21 = vector.extract_strided_slice %8 {offsets = [0, 8], sizes = [8, 8], strides = [1, 1]} : vector<8x32xf32> to vector<8x8xf32>
    %22 = vector.extract_strided_slice %8 {offsets = [0, 16], sizes = [8, 8], strides = [1, 1]} : vector<8x32xf32> to vector<8x8xf32>
    %23 = vector.extract_strided_slice %8 {offsets = [0, 24], sizes = [8, 8], strides = [1, 1]} : vector<8x32xf32> to vector<8x8xf32>
    %24 = vector.shape_cast %20 : vector<8x8xf32> to vector<1x8x8xf32>
    %25 = vector.shape_cast %21 : vector<8x8xf32> to vector<1x8x8xf32>
    %26 = vector.shape_cast %22 : vector<8x8xf32> to vector<1x8x8xf32>
    %27 = vector.shape_cast %23 : vector<8x8xf32> to vector<1x8x8xf32>
    %28 = tpu.concatenate %24, %25, %26, %27 in 0 : vector<1x8x8xf32>, vector<1x8x8xf32>, vector<1x8x8xf32>, vector<1x8x8xf32> -> vector<4x8x8xf32>
    %29 = arith.truncf %28 : vector<4x8x8xf32> to vector<4x8x8xbf16>
    %30 = vector.extract_strided_slice %9 {offsets = [0, 0], sizes = [8, 8], strides = [1, 1]} : vector<8x32xf32> to vector<8x8xf32>
    %31 = vector.extract_strided_slice %9 {offsets = [0, 8], sizes = [8, 8], strides = [1, 1]} : vector<8x32xf32> to vector<8x8xf32>
    %32 = vector.extract_strided_slice %9 {offsets = [0, 16], sizes = [8, 8], strides = [1, 1]} : vector<8x32xf32> to vector<8x8xf32>
    %33 = vector.extract_strided_slice %9 {offsets = [0, 24], sizes = [8, 8], strides = [1, 1]} : vector<8x32xf32> to vector<8x8xf32>
    %34 = vector.shape_cast %30 : vector<8x8xf32> to vector<1x8x8xf32>
    %35 = vector.shape_cast %31 : vector<8x8xf32> to vector<1x8x8xf32>
    %36 = vector.shape_cast %32 : vector<8x8xf32> to vector<1x8x8xf32>
    %37 = vector.shape_cast %33 : vector<8x8xf32> to vector<1x8x8xf32>
    %38 = tpu.concatenate %34, %35, %36, %37 in 0 : vector<1x8x8xf32>, vector<1x8x8xf32>, vector<1x8x8xf32>, vector<1x8x8xf32> -> vector<4x8x8xf32>
    %39 = arith.truncf %38 : vector<4x8x8xf32> to vector<4x8x8xbf16>
    %40 = vector.extract_strided_slice %10 {offsets = [0, 0], sizes = [8, 8], strides = [1, 1]} : vector<8x32xf32> to vector<8x8xf32>
    %41 = vector.extract_strided_slice %10 {offsets = [0, 8], sizes = [8, 8], strides = [1, 1]} : vector<8x32xf32> to vector<8x8xf32>
    %42 = vector.extract_strided_slice %10 {offsets = [0, 16], sizes = [8, 8], strides = [1, 1]} : vector<8x32xf32> to vector<8x8xf32>
    %43 = vector.extract_strided_slice %10 {offsets = [0, 24], sizes = [8, 8], strides = [1, 1]} : vector<8x32xf32> to vector<8x8xf32>
    %44 = vector.shape_cast %40 : vector<8x8xf32> to vector<1x8x8xf32>
    %45 = vector.shape_cast %41 : vector<8x8xf32> to vector<1x8x8xf32>
    %46 = vector.shape_cast %42 : vector<8x8xf32> to vector<1x8x8xf32>
    %47 = vector.shape_cast %43 : vector<8x8xf32> to vector<1x8x8xf32>
    %48 = tpu.concatenate %44, %45, %46, %47 in 0 : vector<1x8x8xf32>, vector<1x8x8xf32>, vector<1x8x8xf32>, vector<1x8x8xf32> -> vector<4x8x8xf32>
    %49 = arith.truncf %48 : vector<4x8x8xf32> to vector<4x8x8xbf16>
    "tpu.trace_start"() <{level = 10 : i32, message = "hqd,hkd->hqk"}> : () -> ()
    %cst_9 = arith.constant dense<0.000000e+00> : vector<4x8x8xf32>
    %50 = tpu.matmul %29, %39, %cst_9 {dimension_numbers = #tpu.dot_dimension_numbers<[2], [2], [1], [1], [0, 0, 0, 1, 1, 1], [0], [0]>} : vector<4x8x8xbf16>, vector<4x8x8xbf16>, vector<4x8x8xf32> -> vector<4x8x8xf32>
    "tpu.trace_stop"() : () -> ()
    %cst_10 = arith.constant 0.353553385 : f32
    %51 = vector.broadcast %cst_10 : f32 to vector<4x8x8xf32>
    %52 = arith.mulf %50, %51 : vector<4x8x8xf32>
    %53 = vector.shape_cast %19 : vector<8x8xi1> to vector<1x8x8xi1>
    %cst_11 = arith.constant -1.000000e+09 : f32
    %54 = vector.shape_cast %53 : vector<1x8x8xi1> to vector<1x8x8xi1>
    %55 = vector.broadcast %54 : vector<1x8x8xi1> to vector<4x8x8xi1>
    %56 = vector.broadcast %cst_11 : f32 to vector<4x8x8xf32>
    %57 = arith.select %55, %52, %56 : vector<4x8x8xi1>, vector<4x8x8xf32>
    %cst_12 = arith.constant dense<0xFF800000> : vector<4x8xf32>
    %58 = vector.multi_reduction <maximumf>, %57, %cst_12 [2] : vector<4x8x8xf32> to vector<4x8xf32>
    %59 = vector.shape_cast %58 : vector<4x8xf32> to vector<4x8x1xf32>
    %60 = vector.broadcast %59 : vector<4x8x1xf32> to vector<4x8x8xf32>
    %61 = arith.subf %57, %60 : vector<4x8x8xf32>
    %62 = math.exp %61 : vector<4x8x8xf32>
    %cst_13 = arith.constant dense<0.000000e+00> : vector<4x8xf32>
    %63 = vector.multi_reduction <add>, %62, %cst_13 [2] : vector<4x8x8xf32> to vector<4x8xf32>
    %64 = vector.shape_cast %63 : vector<4x8xf32> to vector<4x8x1xf32>
    %65 = tpu.reciprocal %64 {approx = true} : vector<4x8x1xf32> -> vector<4x8x1xf32>
    %66 = vector.broadcast %65 : vector<4x8x1xf32> to vector<4x8x8xf32>
    %67 = arith.mulf %62, %66 : vector<4x8x8xf32>
    %68 = arith.truncf %67 : vector<4x8x8xf32> to vector<4x8x8xbf16>
    "tpu.trace_start"() <{level = 10 : i32, message = "hqk,hkd->hqd"}> : () -> ()
    %cst_14 = arith.constant dense<0.000000e+00> : vector<4x8x8xf32>
    %69 = tpu.matmul %68, %49, %cst_14 {dimension_numbers = #tpu.dot_dimension_numbers<[2], [1], [1], [2], [0, 0, 0, 1, 1, 2], [0], [0]>} : vector<4x8x8xbf16>, vector<4x8x8xbf16>, vector<4x8x8xf32> -> vector<4x8x8xf32>
    "tpu.trace_stop"() : () -> ()
    %70 = vector.extract_strided_slice %69 {offsets = [0, 0, 0], sizes = [1, 8, 8], strides = [1, 1, 1]} : vector<4x8x8xf32> to vector<1x8x8xf32>
    %71 = vector.shape_cast %70 : vector<1x8x8xf32> to vector<8x8xf32>
    %c0_15 = arith.constant 0 : index
    %c0_16 = arith.constant 0 : index
    %c0_17 = arith.constant 0 : index
    %72 = vector.load %arg5[%c0_15, %c0_16, %c0_17] : memref<1x8x32xf32, #tpu.memory_space<vmem>>, vector<1x8x8xf32>
    %73 = vector.shape_cast %72 : vector<1x8x8xf32> to vector<8x8xf32>
    %74 = vector.shape_cast %71 : vector<8x8xf32> to vector<1x8x8xf32>
    tpu.vector_store %arg5[%c0_15, %c0_16, %c0_17], %74 {strides = array<i32>} : memref<1x8x32xf32, #tpu.memory_space<vmem>>, vector<1x8x8xf32>,
    %75 = vector.extract_strided_slice %69 {offsets = [1, 0, 0], sizes = [1, 8, 8], strides = [1, 1, 1]} : vector<4x8x8xf32> to vector<1x8x8xf32>
    %76 = vector.shape_cast %75 : vector<1x8x8xf32> to vector<8x8xf32>
    %c0_18 = arith.constant 0 : index
    %c0_19 = arith.constant 0 : index
    %c8 = arith.constant 8 : index
    %77 = vector.load %arg5[%c0_18, %c0_19, %c8] : memref<1x8x32xf32, #tpu.memory_space<vmem>>, vector<1x8x8xf32>
    %78 = vector.shape_cast %77 : vector<1x8x8xf32> to vector<8x8xf32>
    %79 = vector.shape_cast %76 : vector<8x8xf32> to vector<1x8x8xf32>
    tpu.vector_store %arg5[%c0_18, %c0_19, %c8], %79 {strides = array<i32>} : memref<1x8x32xf32, #tpu.memory_space<vmem>>, vector<1x8x8xf32>,
    %80 = vector.extract_strided_slice %69 {offsets = [2, 0, 0], sizes = [1, 8, 8], strides = [1, 1, 1]} : vector<4x8x8xf32> to vector<1x8x8xf32>
    %81 = vector.shape_cast %80 : vector<1x8x8xf32> to vector<8x8xf32>
    %c0_20 = arith.constant 0 : index
    %c0_21 = arith.constant 0 : index
    %c16 = arith.constant 16 : index
    %82 = vector.load %arg5[%c0_20, %c0_21, %c16] : memref<1x8x32xf32, #tpu.memory_space<vmem>>, vector<1x8x8xf32>
    %83 = vector.shape_cast %82 : vector<1x8x8xf32> to vector<8x8xf32>
    %84 = vector.shape_cast %81 : vector<8x8xf32> to vector<1x8x8xf32>
    tpu.vector_store %arg5[%c0_20, %c0_21, %c16], %84 {strides = array<i32>} : memref<1x8x32xf32, #tpu.memory_space<vmem>>, vector<1x8x8xf32>,
    %85 = vector.extract_strided_slice %69 {offsets = [3, 0, 0], sizes = [1, 8, 8], strides = [1, 1, 1]} : vector<4x8x8xf32> to vector<1x8x8xf32>
    %86 = vector.shape_cast %85 : vector<1x8x8xf32> to vector<8x8xf32>
    %c0_22 = arith.constant 0 : index
    %c0_23 = arith.constant 0 : index
    %c24 = arith.constant 24 : index
    %87 = vector.load %arg5[%c0_22, %c0_23, %c24] : memref<1x8x32xf32, #tpu.memory_space<vmem>>, vector<1x8x8xf32>
    %88 = vector.shape_cast %87 : vector<1x8x8xf32> to vector<8x8xf32>
    %89 = vector.shape_cast %86 : vector<8x8xf32> to vector<1x8x8xf32>
    tpu.vector_store %arg5[%c0_22, %c0_23, %c24], %89 {strides = array<i32>} : memref<1x8x32xf32, #tpu.memory_space<vmem>>, vector<1x8x8xf32>,
    return
  }
  func.func @transform_0(%arg0: i32) -> (i32, i32, i32) {
    %c0_i32 = arith.constant 0 : i32
    %c0_i32_0 = arith.constant 0 : i32
    %c0_i32_1 = arith.constant 0 : i32
    return %arg0, %c0_i32, %c0_i32_0 : i32, i32, i32
  }
  func.func @transform_1(%arg0: i32) -> (i32, i32) {
    %c0_i32 = arith.constant 0 : i32
    %c0_i32_0 = arith.constant 0 : i32
    %c0_i32_1 = arith.constant 0 : i32
    return %c0_i32, %c0_i32_0 : i32, i32
  }
  func.func @transform_2(%arg0: i32) -> (i32, i32) {
    %c0_i32 = arith.constant 0 : i32
    %c0_i32_0 = arith.constant 0 : i32
    %c0_i32_1 = arith.constant 0 : i32
    return %c0_i32, %c0_i32_0 : i32, i32
  }
  func.func @transform_3(%arg0: i32) -> (i32, i32, i32) {
    %c0_i32 = arith.constant 0 : i32
    %c0_i32_0 = arith.constant 0 : i32
    %c0_i32_1 = arith.constant 0 : i32
    return %arg0, %c0_i32, %c0_i32_0 : i32, i32, i32
  }
  func.func @transform_4(%arg0: i32) -> (i32, i32, i32) {
    %c0_i32 = arith.constant 0 : i32
    %c0_i32_0 = arith.constant 0 : i32
    %c0_i32_1 = arith.constant 0 : i32
    return %arg0, %c0_i32, %c0_i32_0 : i32, i32, i32
  }
}

module attributes {stable_mosaic.version = 11 : i64} {
  func.func @_cross_attn_kernel(%arg0: i32, %arg1: memref<1x8x32xf32, #tpu.memory_space<vmem>>, %arg2: memref<1x8x32xf32, #tpu.memory_space<vmem>>, %arg3: memref<32x32xbf16, #tpu.memory_space<vmem>>, %arg4: memref<1x32xf32, #tpu.memory_space<vmem>>, %arg5: memref<32x64xbf16, #tpu.memory_space<vmem>>, %arg6: memref<1x64xf32, #tpu.memory_space<vmem>>, %arg7: memref<1x1x8xi32, #tpu.memory_space<vmem>>, %arg8: memref<1x8x32xf32, #tpu.memory_space<vmem>>) attributes {dimension_semantics = [#tpu.dimension_semantics<parallel>], iteration_bounds = array<i64: 2>, scalar_prefetch = 0 : i64, scratch_operands = 0 : i64, tpu.core_type = #tpu.core_type<tc>, window_params = [{transform_indices = @transform_0, window_bounds = array<i64: 1, 8, 32>}, {transform_indices = @transform_1, window_bounds = array<i64: 1, 8, 32>}, {pipeline_mode = #tpu.pipeline_mode<synchronous>, transform_indices = @transform_2, window_bounds = array<i64: 32, 32>}, {pipeline_mode = #tpu.pipeline_mode<synchronous>, transform_indices = @transform_3, window_bounds = array<i64: 1, 32>}, {pipeline_mode = #tpu.pipeline_mode<synchronous>, transform_indices = @transform_4, window_bounds = array<i64: 32, 64>}, {pipeline_mode = #tpu.pipeline_mode<synchronous>, transform_indices = @transform_5, window_bounds = array<i64: 1, 64>}, {transform_indices = @transform_6, window_bounds = array<i64: 1, 1, 8>}, {transform_indices = @transform_7, window_bounds = array<i64: 1, 8, 32>}]} {
    %c0 = arith.constant 0 : index
    %c0_0 = arith.constant 0 : index
    %c0_1 = arith.constant 0 : index
    %0 = vector.load %arg1[%c0, %c0_0, %c0_1] : memref<1x8x32xf32, #tpu.memory_space<vmem>>, vector<1x8x32xf32>
    %1 = vector.shape_cast %0 : vector<1x8x32xf32> to vector<8x32xf32>
    %2 = arith.truncf %1 : vector<8x32xf32> to vector<8x32xbf16>
    %c0_2 = arith.constant 0 : index
    %c0_3 = arith.constant 0 : index
    %c0_4 = arith.constant 0 : index
    %3 = vector.load %arg2[%c0_2, %c0_3, %c0_4] : memref<1x8x32xf32, #tpu.memory_space<vmem>>, vector<1x8x32xf32>
    %4 = vector.shape_cast %3 : vector<1x8x32xf32> to vector<8x32xf32>
    %5 = arith.truncf %4 : vector<8x32xf32> to vector<8x32xbf16>
    %c0_5 = arith.constant 0 : index
    %c0_6 = arith.constant 0 : index
    %6 = vector.load %arg3[%c0_5, %c0_6] : memref<32x32xbf16, #tpu.memory_space<vmem>>, vector<32x32xbf16>
    %cst = arith.constant dense<0.000000e+00> : vector<8x32xf32>
    %7 = tpu.matmul %2, %6, %cst {dimension_numbers = #tpu.dot_dimension_numbers<[1], [0], [0], [1], [0, 0, 1, 1], [], []>} : vector<8x32xbf16>, vector<32x32xbf16>, vector<8x32xf32> -> vector<8x32xf32>
    %c0_7 = arith.constant 0 : index
    %c0_8 = arith.constant 0 : index
    %8 = vector.load %arg4[%c0_7, %c0_8] : memref<1x32xf32, #tpu.memory_space<vmem>>, vector<1x32xf32>
    %9 = vector.broadcast %8 : vector<1x32xf32> to vector<8x32xf32>
    %10 = arith.addf %7, %9 : vector<8x32xf32>
    %c0_9 = arith.constant 0 : index
    %c0_10 = arith.constant 0 : index
    %11 = vector.load %arg5[%c0_9, %c0_10] : memref<32x64xbf16, #tpu.memory_space<vmem>>, vector<32x64xbf16>
    %cst_11 = arith.constant dense<0.000000e+00> : vector<8x64xf32>
    %12 = tpu.matmul %5, %11, %cst_11 {dimension_numbers = #tpu.dot_dimension_numbers<[1], [0], [0], [1], [0, 0, 1, 1], [], []>} : vector<8x32xbf16>, vector<32x64xbf16>, vector<8x64xf32> -> vector<8x64xf32>
    %c0_12 = arith.constant 0 : index
    %c0_13 = arith.constant 0 : index
    %13 = vector.load %arg6[%c0_12, %c0_13] : memref<1x64xf32, #tpu.memory_space<vmem>>, vector<1x64xf32>
    %14 = vector.broadcast %13 : vector<1x64xf32> to vector<8x64xf32>
    %15 = arith.addf %12, %14 : vector<8x64xf32>
    %16 = vector.extract_strided_slice %15 {offsets = [0, 0], sizes = [8, 32], strides = [1, 1]} : vector<8x64xf32> to vector<8x32xf32>
    %17 = vector.extract_strided_slice %15 {offsets = [0, 32], sizes = [8, 32], strides = [1, 1]} : vector<8x64xf32> to vector<8x32xf32>
    %c0_14 = arith.constant 0 : index
    %c0_15 = arith.constant 0 : index
    %c0_16 = arith.constant 0 : index
    %18 = vector.load %arg7[%c0_14, %c0_15, %c0_16] : memref<1x1x8xi32, #tpu.memory_space<vmem>>, vector<1x1x8xi32>
    %19 = vector.shape_cast %18 : vector<1x1x8xi32> to vector<1x8xi32>
    %c0_i32 = arith.constant 0 : i32
    %20 = vector.broadcast %c0_i32 : i32 to vector<1x8xi32>
    %21 = arith.cmpi ne, %19, %20 : vector<1x8xi32>
    %22 = vector.extract_strided_slice %10 {offsets = [0, 0], sizes = [8, 8], strides = [1, 1]} : vector<8x32xf32> to vector<8x8xf32>
    %23 = vector.extract_strided_slice %10 {offsets = [0, 8], sizes = [8, 8], strides = [1, 1]} : vector<8x32xf32> to vector<8x8xf32>
    %24 = vector.extract_strided_slice %10 {offsets = [0, 16], sizes = [8, 8], strides = [1, 1]} : vector<8x32xf32> to vector<8x8xf32>
    %25 = vector.extract_strided_slice %10 {offsets = [0, 24], sizes = [8, 8], strides = [1, 1]} : vector<8x32xf32> to vector<8x8xf32>
    %26 = vector.shape_cast %22 : vector<8x8xf32> to vector<1x8x8xf32>
    %27 = vector.shape_cast %23 : vector<8x8xf32> to vector<1x8x8xf32>
    %28 = vector.shape_cast %24 : vector<8x8xf32> to vector<1x8x8xf32>
    %29 = vector.shape_cast %25 : vector<8x8xf32> to vector<1x8x8xf32>
    %30 = tpu.concatenate %26, %27, %28, %29 in 0 : vector<1x8x8xf32>, vector<1x8x8xf32>, vector<1x8x8xf32>, vector<1x8x8xf32> -> vector<4x8x8xf32>
    %31 = arith.truncf %30 : vector<4x8x8xf32> to vector<4x8x8xbf16>
    %32 = vector.extract_strided_slice %16 {offsets = [0, 0], sizes = [8, 8], strides = [1, 1]} : vector<8x32xf32> to vector<8x8xf32>
    %33 = vector.extract_strided_slice %16 {offsets = [0, 8], sizes = [8, 8], strides = [1, 1]} : vector<8x32xf32> to vector<8x8xf32>
    %34 = vector.extract_strided_slice %16 {offsets = [0, 16], sizes = [8, 8], strides = [1, 1]} : vector<8x32xf32> to vector<8x8xf32>
    %35 = vector.extract_strided_slice %16 {offsets = [0, 24], sizes = [8, 8], strides = [1, 1]} : vector<8x32xf32> to vector<8x8xf32>
    %36 = vector.shape_cast %32 : vector<8x8xf32> to vector<1x8x8xf32>
    %37 = vector.shape_cast %33 : vector<8x8xf32> to vector<1x8x8xf32>
    %38 = vector.shape_cast %34 : vector<8x8xf32> to vector<1x8x8xf32>
    %39 = vector.shape_cast %35 : vector<8x8xf32> to vector<1x8x8xf32>
    %40 = tpu.concatenate %36, %37, %38, %39 in 0 : vector<1x8x8xf32>, vector<1x8x8xf32>, vector<1x8x8xf32>, vector<1x8x8xf32> -> vector<4x8x8xf32>
    %41 = arith.truncf %40 : vector<4x8x8xf32> to vector<4x8x8xbf16>
    %42 = vector.extract_strided_slice %17 {offsets = [0, 0], sizes = [8, 8], strides = [1, 1]} : vector<8x32xf32> to vector<8x8xf32>
    %43 = vector.extract_strided_slice %17 {offsets = [0, 8], sizes = [8, 8], strides = [1, 1]} : vector<8x32xf32> to vector<8x8xf32>
    %44 = vector.extract_strided_slice %17 {offsets = [0, 16], sizes = [8, 8], strides = [1, 1]} : vector<8x32xf32> to vector<8x8xf32>
    %45 = vector.extract_strided_slice %17 {offsets = [0, 24], sizes = [8, 8], strides = [1, 1]} : vector<8x32xf32> to vector<8x8xf32>
    %46 = vector.shape_cast %42 : vector<8x8xf32> to vector<1x8x8xf32>
    %47 = vector.shape_cast %43 : vector<8x8xf32> to vector<1x8x8xf32>
    %48 = vector.shape_cast %44 : vector<8x8xf32> to vector<1x8x8xf32>
    %49 = vector.shape_cast %45 : vector<8x8xf32> to vector<1x8x8xf32>
    %50 = tpu.concatenate %46, %47, %48, %49 in 0 : vector<1x8x8xf32>, vector<1x8x8xf32>, vector<1x8x8xf32>, vector<1x8x8xf32> -> vector<4x8x8xf32>
    %51 = arith.truncf %50 : vector<4x8x8xf32> to vector<4x8x8xbf16>
    "tpu.trace_start"() <{level = 10 : i32, message = "hqd,hkd->hqk"}> : () -> ()
    %cst_17 = arith.constant dense<0.000000e+00> : vector<4x8x8xf32>
    %52 = tpu.matmul %31, %41, %cst_17 {dimension_numbers = #tpu.dot_dimension_numbers<[2], [2], [1], [1], [0, 0, 0, 1, 1, 1], [0], [0]>} : vector<4x8x8xbf16>, vector<4x8x8xbf16>, vector<4x8x8xf32> -> vector<4x8x8xf32>
    "tpu.trace_stop"() : () -> ()
    %cst_18 = arith.constant 0.353553385 : f32
    %53 = vector.broadcast %cst_18 : f32 to vector<4x8x8xf32>
    %54 = arith.mulf %52, %53 : vector<4x8x8xf32>
    %55 = vector.shape_cast %21 : vector<1x8xi1> to vector<1x1x8xi1>
    %cst_19 = arith.constant -1.000000e+09 : f32
    %56 = vector.shape_cast %55 : vector<1x1x8xi1> to vector<1x1x8xi1>
    %57 = vector.broadcast %56 : vector<1x1x8xi1> to vector<4x8x8xi1>
    %58 = vector.broadcast %cst_19 : f32 to vector<4x8x8xf32>
    %59 = arith.select %57, %54, %58 : vector<4x8x8xi1>, vector<4x8x8xf32>
    %cst_20 = arith.constant dense<0xFF800000> : vector<4x8xf32>
    %60 = vector.multi_reduction <maximumf>, %59, %cst_20 [2] : vector<4x8x8xf32> to vector<4x8xf32>
    %61 = vector.shape_cast %60 : vector<4x8xf32> to vector<4x8x1xf32>
    %62 = vector.broadcast %61 : vector<4x8x1xf32> to vector<4x8x8xf32>
    %63 = arith.subf %59, %62 : vector<4x8x8xf32>
    %64 = math.exp %63 : vector<4x8x8xf32>
    %cst_21 = arith.constant dense<0.000000e+00> : vector<4x8xf32>
    %65 = vector.multi_reduction <add>, %64, %cst_21 [2] : vector<4x8x8xf32> to vector<4x8xf32>
    %66 = vector.shape_cast %65 : vector<4x8xf32> to vector<4x8x1xf32>
    %67 = tpu.reciprocal %66 {approx = true} : vector<4x8x1xf32> -> vector<4x8x1xf32>
    %68 = vector.broadcast %67 : vector<4x8x1xf32> to vector<4x8x8xf32>
    %69 = arith.mulf %64, %68 : vector<4x8x8xf32>
    %70 = arith.truncf %69 : vector<4x8x8xf32> to vector<4x8x8xbf16>
    "tpu.trace_start"() <{level = 10 : i32, message = "hqk,hkd->hqd"}> : () -> ()
    %cst_22 = arith.constant dense<0.000000e+00> : vector<4x8x8xf32>
    %71 = tpu.matmul %70, %51, %cst_22 {dimension_numbers = #tpu.dot_dimension_numbers<[2], [1], [1], [2], [0, 0, 0, 1, 1, 2], [0], [0]>} : vector<4x8x8xbf16>, vector<4x8x8xbf16>, vector<4x8x8xf32> -> vector<4x8x8xf32>
    "tpu.trace_stop"() : () -> ()
    %72 = vector.extract_strided_slice %71 {offsets = [0, 0, 0], sizes = [1, 8, 8], strides = [1, 1, 1]} : vector<4x8x8xf32> to vector<1x8x8xf32>
    %73 = vector.shape_cast %72 : vector<1x8x8xf32> to vector<8x8xf32>
    %c0_23 = arith.constant 0 : index
    %c0_24 = arith.constant 0 : index
    %c0_25 = arith.constant 0 : index
    %74 = vector.load %arg8[%c0_23, %c0_24, %c0_25] : memref<1x8x32xf32, #tpu.memory_space<vmem>>, vector<1x8x8xf32>
    %75 = vector.shape_cast %74 : vector<1x8x8xf32> to vector<8x8xf32>
    %76 = vector.shape_cast %73 : vector<8x8xf32> to vector<1x8x8xf32>
    tpu.vector_store %arg8[%c0_23, %c0_24, %c0_25], %76 {strides = array<i32>} : memref<1x8x32xf32, #tpu.memory_space<vmem>>, vector<1x8x8xf32>,
    %77 = vector.extract_strided_slice %71 {offsets = [1, 0, 0], sizes = [1, 8, 8], strides = [1, 1, 1]} : vector<4x8x8xf32> to vector<1x8x8xf32>
    %78 = vector.shape_cast %77 : vector<1x8x8xf32> to vector<8x8xf32>
    %c0_26 = arith.constant 0 : index
    %c0_27 = arith.constant 0 : index
    %c8 = arith.constant 8 : index
    %79 = vector.load %arg8[%c0_26, %c0_27, %c8] : memref<1x8x32xf32, #tpu.memory_space<vmem>>, vector<1x8x8xf32>
    %80 = vector.shape_cast %79 : vector<1x8x8xf32> to vector<8x8xf32>
    %81 = vector.shape_cast %78 : vector<8x8xf32> to vector<1x8x8xf32>
    tpu.vector_store %arg8[%c0_26, %c0_27, %c8], %81 {strides = array<i32>} : memref<1x8x32xf32, #tpu.memory_space<vmem>>, vector<1x8x8xf32>,
    %82 = vector.extract_strided_slice %71 {offsets = [2, 0, 0], sizes = [1, 8, 8], strides = [1, 1, 1]} : vector<4x8x8xf32> to vector<1x8x8xf32>
    %83 = vector.shape_cast %82 : vector<1x8x8xf32> to vector<8x8xf32>
    %c0_28 = arith.constant 0 : index
    %c0_29 = arith.constant 0 : index
    %c16 = arith.constant 16 : index
    %84 = vector.load %arg8[%c0_28, %c0_29, %c16] : memref<1x8x32xf32, #tpu.memory_space<vmem>>, vector<1x8x8xf32>
    %85 = vector.shape_cast %84 : vector<1x8x8xf32> to vector<8x8xf32>
    %86 = vector.shape_cast %83 : vector<8x8xf32> to vector<1x8x8xf32>
    tpu.vector_store %arg8[%c0_28, %c0_29, %c16], %86 {strides = array<i32>} : memref<1x8x32xf32, #tpu.memory_space<vmem>>, vector<1x8x8xf32>,
    %87 = vector.extract_strided_slice %71 {offsets = [3, 0, 0], sizes = [1, 8, 8], strides = [1, 1, 1]} : vector<4x8x8xf32> to vector<1x8x8xf32>
    %88 = vector.shape_cast %87 : vector<1x8x8xf32> to vector<8x8xf32>
    %c0_30 = arith.constant 0 : index
    %c0_31 = arith.constant 0 : index
    %c24 = arith.constant 24 : index
    %89 = vector.load %arg8[%c0_30, %c0_31, %c24] : memref<1x8x32xf32, #tpu.memory_space<vmem>>, vector<1x8x8xf32>
    %90 = vector.shape_cast %89 : vector<1x8x8xf32> to vector<8x8xf32>
    %91 = vector.shape_cast %88 : vector<8x8xf32> to vector<1x8x8xf32>
    tpu.vector_store %arg8[%c0_30, %c0_31, %c24], %91 {strides = array<i32>} : memref<1x8x32xf32, #tpu.memory_space<vmem>>, vector<1x8x8xf32>,
    return
  }
  func.func @transform_0(%arg0: i32) -> (i32, i32, i32) {
    %c0_i32 = arith.constant 0 : i32
    %c0_i32_0 = arith.constant 0 : i32
    %c0_i32_1 = arith.constant 0 : i32
    return %arg0, %c0_i32, %c0_i32_0 : i32, i32, i32
  }
  func.func @transform_1(%arg0: i32) -> (i32, i32, i32) {
    %c0_i32 = arith.constant 0 : i32
    %c0_i32_0 = arith.constant 0 : i32
    %c0_i32_1 = arith.constant 0 : i32
    return %arg0, %c0_i32, %c0_i32_0 : i32, i32, i32
  }
  func.func @transform_2(%arg0: i32) -> (i32, i32) {
    %c0_i32 = arith.constant 0 : i32
    %c0_i32_0 = arith.constant 0 : i32
    %c0_i32_1 = arith.constant 0 : i32
    return %c0_i32, %c0_i32_0 : i32, i32
  }
  func.func @transform_3(%arg0: i32) -> (i32, i32) {
    %c0_i32 = arith.constant 0 : i32
    %c0_i32_0 = arith.constant 0 : i32
    %c0_i32_1 = arith.constant 0 : i32
    return %c0_i32, %c0_i32_0 : i32, i32
  }
  func.func @transform_4(%arg0: i32) -> (i32, i32) {
    %c0_i32 = arith.constant 0 : i32
    %c0_i32_0 = arith.constant 0 : i32
    %c0_i32_1 = arith.constant 0 : i32
    return %c0_i32, %c0_i32_0 : i32, i32
  }
  func.func @transform_5(%arg0: i32) -> (i32, i32) {
    %c0_i32 = arith.constant 0 : i32
    %c0_i32_0 = arith.constant 0 : i32
    %c0_i32_1 = arith.constant 0 : i32
    return %c0_i32, %c0_i32_0 : i32, i32
  }
  func.func @transform_6(%arg0: i32) -> (i32, i32, i32) {
    %c0_i32 = arith.constant 0 : i32
    %c0_i32_0 = arith.constant 0 : i32
    %c0_i32_1 = arith.constant 0 : i32
    return %arg0, %c0_i32, %c0_i32_0 : i32, i32, i32
  }
  func.func @transform_7(%arg0: i32) -> (i32, i32, i32) {
    %c0_i32 = arith.constant 0 : i32
    %c0_i32_0 = arith.constant 0 : i32
    %c0_i32_1 = arith.constant 0 : i32
    return %arg0, %c0_i32, %c0_i32_0 : i32, i32, i32
  }
}

module attributes {stable_mosaic.version = 11 : i64} {
  func.func @_matmul_bias_kernel(%arg0: i32, %arg1: i32, %arg2: i32, %arg3: memref<8x32xf32, #tpu.memory_space<vmem>>, %arg4: memref<32x32xbf16, #tpu.memory_space<vmem>>, %arg5: memref<1x32xf32, #tpu.memory_space<vmem>>, %arg6: memref<8x32xf32, #tpu.memory_space<vmem>>, %arg7: memref<8x32xf32, #tpu.memory_space<vmem>>) attributes {dimension_semantics = [#tpu.dimension_semantics<parallel>, #tpu.dimension_semantics<parallel>, #tpu.dimension_semantics<arbitrary>], iteration_bounds = array<i64: 2, 1, 1>, scalar_prefetch = 0 : i64, scratch_operands = 1 : i64, tpu.core_type = #tpu.core_type<tc>, window_params = [{transform_indices = @transform_0, window_bounds = array<i64: 8, 32>}, {transform_indices = @transform_1, window_bounds = array<i64: 32, 32>}, {transform_indices = @transform_2, window_bounds = array<i64: 1, 32>}, {transform_indices = @transform_3, window_bounds = array<i64: 8, 32>}]} {
    %c0_i32 = arith.constant 0 : i32
    %0 = arith.cmpi eq, %arg2, %c0_i32 : i32
    %1 = arith.extui %0 : i1 to i32
    %c0_i32_0 = arith.constant 0 : i32
    %2 = arith.cmpi ne, %1, %c0_i32_0 : i32
    scf.if %2 {
      %cst_10 = arith.constant 0.000000e+00 : f32
      %13 = vector.broadcast %cst_10 : f32 to vector<8x32xf32>
      %c0_11 = arith.constant 0 : index
      %c0_12 = arith.constant 0 : index
      %14 = vector.load %arg7[%c0_11, %c0_12] : memref<8x32xf32, #tpu.memory_space<vmem>>, vector<8x32xf32>
      tpu.vector_store %arg7[%c0_11, %c0_12], %13 {strides = array<i32>} : memref<8x32xf32, #tpu.memory_space<vmem>>, vector<8x32xf32>,
    } else {
    }
    %c0 = arith.constant 0 : index
    %c0_1 = arith.constant 0 : index
    %3 = vector.load %arg7[%c0, %c0_1] : memref<8x32xf32, #tpu.memory_space<vmem>>, vector<8x32xf32>
    %c0_2 = arith.constant 0 : index
    %c0_3 = arith.constant 0 : index
    %4 = vector.load %arg3[%c0_2, %c0_3] : memref<8x32xf32, #tpu.memory_space<vmem>>, vector<8x32xf32>
    %5 = arith.truncf %4 : vector<8x32xf32> to vector<8x32xbf16>
    %c0_4 = arith.constant 0 : index
    %c0_5 = arith.constant 0 : index
    %6 = vector.load %arg4[%c0_4, %c0_5] : memref<32x32xbf16, #tpu.memory_space<vmem>>, vector<32x32xbf16>
    %cst = arith.constant dense<0.000000e+00> : vector<8x32xf32>
    %7 = tpu.matmul %5, %6, %cst {dimension_numbers = #tpu.dot_dimension_numbers<[1], [0], [0], [1], [0, 0, 1, 1], [], []>} : vector<8x32xbf16>, vector<32x32xbf16>, vector<8x32xf32> -> vector<8x32xf32>
    %8 = arith.addf %3, %7 : vector<8x32xf32>
    %c0_6 = arith.constant 0 : index
    %c0_7 = arith.constant 0 : index
    %9 = vector.load %arg7[%c0_6, %c0_7] : memref<8x32xf32, #tpu.memory_space<vmem>>, vector<8x32xf32>
    tpu.vector_store %arg7[%c0_6, %c0_7], %8 {strides = array<i32>} : memref<8x32xf32, #tpu.memory_space<vmem>>, vector<8x32xf32>,
    %c0_i32_8 = arith.constant 0 : i32
    %10 = arith.cmpi eq, %arg2, %c0_i32_8 : i32
    %11 = arith.extui %10 : i1 to i32
    %c0_i32_9 = arith.constant 0 : i32
    %12 = arith.cmpi ne, %11, %c0_i32_9 : i32
    scf.if %12 {
      %c0_10 = arith.constant 0 : index
      %c0_11 = arith.constant 0 : index
      %13 = vector.load %arg7[%c0_10, %c0_11] : memref<8x32xf32, #tpu.memory_space<vmem>>, vector<8x32xf32>
      %c0_12 = arith.constant 0 : index
      %c0_13 = arith.constant 0 : index
      %14 = vector.load %arg5[%c0_12, %c0_13] : memref<1x32xf32, #tpu.memory_space<vmem>>, vector<1x32xf32>
      %15 = vector.broadcast %14 : vector<1x32xf32> to vector<8x32xf32>
      %16 = arith.addf %13, %15 : vector<8x32xf32>
      %c0_14 = arith.constant 0 : index
      %c0_15 = arith.constant 0 : index
      %17 = vector.load %arg6[%c0_14, %c0_15] : memref<8x32xf32, #tpu.memory_space<vmem>>, vector<8x32xf32>
      tpu.vector_store %arg6[%c0_14, %c0_15], %16 {strides = array<i32>} : memref<8x32xf32, #tpu.memory_space<vmem>>, vector<8x32xf32>,
    } else {
    }
    return
  }
  func.func @transform_0(%arg0: i32, %arg1: i32, %arg2: i32) -> (i32, i32) {
    %c0_i32 = arith.constant 0 : i32
    return %arg0, %arg2 : i32, i32
  }
  func.func @transform_1(%arg0: i32, %arg1: i32, %arg2: i32) -> (i32, i32) {
    %c0_i32 = arith.constant 0 : i32
    return %arg2, %arg1 : i32, i32
  }
  func.func @transform_2(%arg0: i32, %arg1: i32, %arg2: i32) -> (i32, i32) {
    %c0_i32 = arith.constant 0 : i32
    %c0_i32_0 = arith.constant 0 : i32
    return %c0_i32, %arg1 : i32, i32
  }
  func.func @transform_3(%arg0: i32, %arg1: i32, %arg2: i32) -> (i32, i32) {
    %c0_i32 = arith.constant 0 : i32
    return %arg0, %arg1 : i32, i32
  }
}

</mosaic_0001>

<bundles_post_ra>
// kernel: tpu_custom_call.1
= control target key start
LH: loop header
LB: loop body
LE: loop exit
PB: predicated region body
PF: predicated region fallthrough
CT: control target
= control target key end

     0   :  { %6 = vsyncpa [#allocation3], 0  ;;  %s341_s0 = inlined_call_operand.hbm [shape: f32[8,128], index: 0, kind: input, shape index: {}]   ;;  %s342_s1 = inlined_call_operand.hbm [shape: f32[8,128], index: 1, kind: output, shape index: {}]  }
   0x1   :  { %7 = vsyncpa [#allocation4], 0  ;;  %s262_s6 = smov 0  }
   0x2 LB: > { %s145_s7 = sadd.s32 4294967295, %s248_s6   ;;  %p146_p0 = scmp.ge.s32.totalorder %s248_s6, 1  ;;  %s248_s6 = sphi %s262_s6, %s13_s6  }
   0x3   : > { %p60_p1 = scmp.lt.s32.totalorder %s248_s6, 3  ;;  %p276_p3 = scmp.eq.s32.totalorder %s145_s7, 0 }
   0x4   : > { %s250_s10 = smov [#allocation2]   ;;  %s180_s15 = scalar_lea.hbm %s341_s0, 128 }
   0x5   : > { %p270_p2 = pnand %p146_p0, %p60_p1  ;;  %s73_s11 = sshll.u32 %s250_s10, 4  ;;  %s74_s11 = int_to_ptr.vmem [resolvable:$true] %s73_s11 }
   0x6   : > { %s347_s9 = scalar_select %p276_p3, 1, 0 }
   0x7   : > { %s346_s8 = scalar_select %p270_p2, 1, 0 }
   0x8   : > { %p162_p4 = pneg %p270_p2  ;;  %p181_p6 = scmp.ne.s32.totalorder %s341_s0, %s180_s15 }
   0x9   : > { %p187_p10 = scmp.lt.u32.totalorder %s180_s15, %s341_s0 }
   0xa   : > { %p284_p5 = pnand %p276_p3, %p162_p4 }
   0xc   : > { %p182_p7 = pneg %p284_p5 }
   0xe   : > { %p183_p8 = pnand %p182_p7, %p181_p6 }
  0x10   : > { %p184_p9 = pneg %p183_p8 }
  0x12   : > { %p189_p11 = pnand %p187_p10, %p184_p9 }
  0x14   : > { %192 = shalt.err (!%p189_p11)
}
  0x15   : > { %s193_s20 = scalar_lea.vmem %s74_s11, 128  ;;  %p201_p1 = scmp.lt.s32.totalorder %s74_s11, %s74_s11 }
  0x16   : > { %p194_p12 = scmp.ne.s32.totalorder %s74_s11, %s193_s20  ;;  %p202_p4 = scmp.lt.s32.totalorder %s193_s20, %s193_s20 }
  0x18   : > { %p196_p13 = pnand %p194_p12, %p182_p7  ;;  %p203_p3 = por %p202_p4, %p201_p1 }
  0x1a   : > { %p197_p0 = pneg %p196_p13 }
  0x1c   : > { %p204_p2 = pnand %p203_p3, %p197_p0 }
  0x1e   : > { %207 = shalt.err (!%p204_p2)
}
  0x1f   : > { %165 = dma.hbm_to_vmem [thread:$0]  (!%p284_p5), %s341_s0, 128, %s74_s11, [#allocation3]  }
  0x20   : > { %p349_p6 = scmp.ne.s32.totalorder %s346_s8, 0 }
  0x21   : > { %p350_p8 = scmp.ne.s32.totalorder (!%p349_p6), %s347_s9, 0 }
  0x22   : > { %86 = sbr.rel (%p349_p6) target bundleno = 67 (0x43), region = 24 }
  0x29   : > { %239 = dma.done.wait (%p350_p8), [#allocation3], 128  }
  0x2a   : > { %241 = vsyncadd (%p350_p8), [#allocation3], 4294967168  ;;  %s251_s23 = smov [#allocation5]   ;;  %v96_v0 = vld [vmem:[#allocation2] sm:$0xff]  ;;  %p312_p2 = scmp.eq.s32.totalorder %s145_s7, 1 }
  0x2b   : > { %s106_s24 = sshll.u32 %s251_s23, 4  ;;  %v97_v1 = vadd.f32 1.0, %v96_v0  ;;  %s107_s24 = int_to_ptr.vmem [resolvable:$true] %s106_s24 }
  0x2c   : > { %s208_s26 = scalar_lea.vmem %s107_s24, 128  ;;  %p215_p9 = scmp.lt.s32.totalorder %s107_s24, %s107_s24 }
  0x2d   : > { %98 = vst [vmem:[#allocation5] sm:$0xff] %v97_v1  ;;  %p209_p3 = scmp.ne.s32.totalorder %s107_s24, %s208_s26  ;;  %p216_p10 = scmp.lt.s32.totalorder %s208_s26, %s208_s26 }
  0x2f   : > { %p210_p5 = pnand %p209_p3, %p312_p2  ;;  %p217_p11 = por %p216_p10, %p215_p9 }
  0x31   : > { %p211_p7 = pneg %p210_p5 }
  0x33   : > { %p218_p12 = pnand %p217_p11, %p211_p7 }
  0x35   : > { %221 = shalt.err (!%p218_p12)
}
  0x36   : > { %s222_s29 = scalar_lea.hbm %s342_s1, 128 }
  0x37   : > { %p223_p13 = scmp.ne.s32.totalorder %s342_s1, %s222_s29  ;;  %p228_p4 = scmp.lt.u32.totalorder %s222_s29, %s342_s1 }
  0x39   : > { %p224_p0 = pnand %p223_p13, %p312_p2 }
  0x3b   : > { %p225_p1 = pneg %p224_p0 }
  0x3d   : > { %p230_p6 = pnand %p228_p4, %p225_p1 }
  0x3f   : > { %233 = shalt.err (!%p230_p6)
}
  0x40   : > { %159 = dma.vmem_to_hbm [thread:$0]  (%p312_p2), %s107_s24, 128, %s342_s1, [#allocation4]  }
  0x41   : > { %243 = dma.done.wait (%p312_p2), [#allocation4], 128  }
  0x42   : > { %245 = vsyncadd (%p312_p2), [#allocation4], 4294967168 }
  0x43 PF: > { %s13_s6 = sadd.s32 1, %s248_s6  }
  0x44   : > { %p10_p8 = scmp.ge.s32.totalorder %s13_s6, 4  }
  0x46   :  { %12 = sbr.rel (!%p10_p8) target bundleno = 2 (0x2), region = 53 }
  0x4d   :  { %119 = vsyncpa [#allocation3], 1 }
  0x4e   :  { %121 = vsyncpa [#allocation3 + $0x1], 1 }
  0x4f   :  { %122 = vsyncpa [#allocation4], 1 }
  0x50   :  { %124 = vsyncpa [#allocation4 + $0x1], 1 }

// kernel: transformer_forward.18
= control target key start
LH: loop header
LB: loop body
LE: loop exit
PB: predicated region body
PF: predicated region fallthrough
CT: control target
= control target key end

     0   :  { %s518_s21 = smov 0   ;;  %s562_s0 = inlined_call_operand.vmem [shape: f32[16,32], index: 0, kind: input, shape index: {}]   ;;  %s563_s1 = inlined_call_operand.vmem [shape: bf16[32,32], index: 1, kind: input, shape index: {}]   ;;  %s564_s2 = inlined_call_operand.vmem [shape: f32[1,32], index: 2, kind: input, shape index: {}]   ;;  %s565_s3 = inlined_call_operand.vmem [shape: f32[16,32], index: 3, kind: input, shape index: {}]   ;;  %s566_s4 = inlined_call_operand.vmem [shape: f32[1,32], index: 4, kind: input, shape index: {}]   ;;  %s567_s5 = inlined_call_operand.vmem [shape: f32[1,32], index: 5, kind: input, shape index: {}]   ;;  %s568_s6 = inlined_call_operand.vmem [shape: f32[16,32], index: 6, kind: output, shape index: {}]  }
   0x1 LB: > { %s432_s22 = sadd.s32 4294967295, %s479_s21   ;;  %p436_p0 = scmp.ge.s32.totalorder %s479_s21, 1  ;;  %s479_s21 = sphi %s518_s21, %s16_s21  }
   0x2   : > { %p220_p1 = scmp.lt.s32.totalorder %s479_s21, 3 }
   0x4   : > { %p221_p2 = pnand %p436_p0, %p220_p1 }
   0x5   : > { %v469_v0 = vld [vmem:[%s563_s1] sm:$0xff] (!%p221_p2)   ;;  %v481_v1 = vmov (!%p221_p2), 0.0   ;;  %v470_v2 = vld [vmem:[%s563_s1 + $0x8] sm:$0xff] (!%p221_p2)   ;;  %vm482_vm0 = vmmov (!%p221_p2), 0   ;;  %p252_p3 = scmp.lt.s32.totalorder (!%p221_p2), %s432_s22, 1  ;;  %vm290_vm1 = vcmask (!%p221_p2), 261120  }
   0x6   : > { %224 = sbr.rel (%p221_p2) target bundleno = 549 (0x225), region = 44  ;;  %451 = vmatprep.subr.bf16.mxu0 (!%p221_p2), %v481_v1  ;;  %455 = vmatprep.mubr.msk.bf16.mxu0 (!%p221_p2), %vm482_vm0, %v481_v1  ;;  %v440_v5 = vld [vmem:[%s564_s2] ss:$0 sm:$0xff] (!%p221_p2) }
   0x7   : > { %452 = vmatpush3.bf16.msra.mxu0 (!%p221_p2), %v469_v0  ;;  %v444_v23 = vld [vmem:[%s566_s4] ss:$0 sm:$0xff] (!%p221_p2) }
   0x8   : > { %453 = vmatprep.subr.bf16.mxu0 (!%p221_p2), %v481_v1  ;;  %v445_v25 = vld [vmem:[%s567_s5] ss:$0 sm:$0xff] (!%p221_p2) }
   0xb   : > { %454 = vmatpush3.bf16.msra.mxu0 (!%p221_p2), %v470_v2 }
   0xd   : > { %s570_s22 = smov (!%p252_p3, %s432_s22), 1 }
   0xe   : > { %s532_s27 = sshll.u32 %s570_s22, 3 }
   0xf   : > { %s255_s30 = scalar_lea.vmem %s562_s0, %s532_s27  ;;  %s259_s9 = scalar_lea.vmem %s565_s3, %s532_s27 }
  0x10   : > { %v265_v3 = vld [vmem:[%s255_s30] sm:$0xff]  ;;  %s263_s18 = scalar_lea.vmem %s568_s6, %s532_s27 }
  0x11   : > { %v266_v4 = vpack.c.bf16 %v265_v3, %v265_v3  ;;  %v334_v7 = vld [vmem:[%s259_s9] sm:$0xff] }
  0x13   : > { %456 = vmatmul.mubr.msk.bf16.vlgmr.msra.gmra.mrb[0].mxu0 %vm290_vm1, %v266_v4 }
  0xe6   : > { %v328_v6 = vpop.f32.mrb[0].mxu0 }
  0xe7   : > { %v329_v8 = vadd.f32 %v440_v5, %v328_v6  ;;  %v457_v9 = vpop.f32.mrb[1].mxu0 }
  0xe8   : > { %v331_v10 = vpop.f32.mrb[2].mxu0 }
  0xe9   : > { %v458_v11 = vpop.f32.mrb[3].mxu0  ;;  %v335_v12 = vadd.f32 %v334_v7, %v329_v8 }
  0xeb   : > { %v336_v13 = vsel %vm290_vm1, %v335_v12, 0.0 }
  0xec   : > { %337 = vadd.xlane.f32.xlu0 %v336_v13 }
 0x179   : > { %v338_v14 = vpop.xlane.xlu0 %337 }
 0x17a   : > { %v340_v15 = vmul.f32 0.03125, %v338_v14 }
 0x17c   : > { %v341_v16 = vsub.f32 %v335_v12, %v340_v15 }
 0x17e   : > { %v342_v17 = vmul.f32 %v341_v16, %v341_v16 }
 0x180   : > { %v343_v18 = vsel %vm290_vm1, %v342_v17, 0.0 }
 0x181   : > { %344 = vadd.xlane.f32.xlu0 %v343_v18 }
 0x20e   : > { %v345_v19 = vpop.xlane.xlu0 %344 }
 0x20f   : > { %v346_v20 = vmul.f32 0.03125, %v345_v19 }
 0x211   : > { %v347_v21 = vadd.f32 1e-05, %v346_v20 }
 0x213   : > { %471 = vrsqrt.f32 %v347_v21 }
 0x21d   : > { %v472_v22 = vpop.eup %471 }
 0x21e   : > { %v349_v24 = vmul.f32 %v472_v22, %v341_v16 }
 0x220   : > { %v357_v26 = vmul.f32 %v444_v23, %v349_v24 }
 0x222   : > { %v365_v27 = vadd.f32 %v445_v25, %v357_v26 }
 0x224   : > { %366 = vst.msk [vmem:[%s263_s18] sm:$0xff] %vm290_vm1, %v365_v27 }
 0x225 PF: > { %s16_s21 = sadd.s32 1, %s479_s21  }
 0x226   : > { %p13_p4 = scmp.ge.s32.totalorder %s16_s21, 4  }
 0x228   :  { %15 = sbr.rel (!%p13_p4) target bundleno = 1 (0x1), region = 77 }

// kernel: transformer_forward.19
= control target key start
LH: loop header
LB: loop body
LE: loop exit
PB: predicated region body
PF: predicated region fallthrough
CT: control target
= control target key end

     0   :  { %s631_s24 = smov 0   ;;  %s689_s0 = inlined_call_operand.vmem [shape: f32[16,32], index: 0, kind: input, shape index: {}]   ;;  %s690_s1 = inlined_call_operand.vmem [shape: bf16[32,64], index: 1, kind: input, shape index: {}]   ;;  %s691_s2 = inlined_call_operand.vmem [shape: f32[1,64], index: 2, kind: input, shape index: {}]   ;;  %s692_s3 = inlined_call_operand.vmem [shape: bf16[64,32], index: 3, kind: input, shape index: {}]   ;;  %s693_s4 = inlined_call_operand.vmem [shape: f32[1,32], index: 4, kind: input, shape index: {}]   ;;  %s694_s5 = inlined_call_operand.vmem [shape: f32[1,32], index: 5, kind: input, shape index: {}]   ;;  %s695_s6 = inlined_call_operand.vmem [shape: f32[1,32], index: 6, kind: input, shape index: {}]   ;;  %s696_s7 = inlined_call_operand.vmem [shape: f32[16,32], index: 7, kind: output, shape index: {}]  }
   0x1 LB: > { %s514_s25 = sadd.s32 4294967295, %s587_s24   ;;  %p518_p0 = scmp.ge.s32.totalorder %s587_s24, 1  ;;  %s587_s24 = sphi %s631_s24, %s17_s24  }
   0x2   : > { %p236_p1 = scmp.lt.s32.totalorder %s587_s24, 3 }
   0x4   : > { %p237_p2 = pnand %p518_p0, %p236_p1 }
   0x5   : > { %v573_v0 = vld [vmem:[%s690_s1] sm:$0xff] (!%p237_p2)   ;;  %v589_v1 = vmov (!%p237_p2), 0.0   ;;  %v574_v2 = vld [vmem:[%s690_s1 + $0x8] sm:$0xff] (!%p237_p2)   ;;  %vm590_vm0 = vmmov (!%p237_p2), 0   ;;  %p266_p3 = scmp.lt.s32.totalorder (!%p237_p2), %s514_s25, 1  ;;  %vm300_vm1 = vcmask (!%p237_p2), 261120  }
   0x6   : > { %240 = sbr.rel (%p237_p2) target bundleno = 767 (0x2ff), region = 48  ;;  %543 = vmatprep.subr.bf16.mxu0 (!%p237_p2), %v589_v1  ;;  %551 = vmatprep.subr.bf16.mxu1 (!%p237_p2), %v589_v1  ;;  %v575_v3 = vld [vmem:[%s692_s3] sm:$0xff] (!%p237_p2)   ;;  %v576_v4 = vld [vmem:[%s692_s3 + $0x8] sm:$0xff] (!%p237_p2)   ;;  %v577_v7 = vld [vmem:[%s692_s3 + $0x10] sm:$0xff] (!%p237_p2)   ;;  %vm385_vm2 = vcmask (!%p237_p2), 523264  }
   0x7   : > { %544 = vmatpush3.bf16.msra.mxu0 (!%p237_p2), %v573_v0  ;;  %547 = vmatprep.mubr.msk.bf16.mxu0 (!%p237_p2), %vm590_vm0, %v589_v1  ;;  %v578_v8 = vld [vmem:[%s692_s3 + $0x18] sm:$0xff] (!%p237_p2)   ;;  %v521_v9 = vld [vmem:[%s691_s2] ss:$0 sm:$0xff] (!%p237_p2) }
   0x8   : > { %545 = vmatprep.subr.bf16.mxu0 (!%p237_p2), %v589_v1  ;;  %559 = vmatprep.mubr.msk.bf16.mxu1 (!%p237_p2), %vm590_vm0, %v589_v1  ;;  %v525_v17 = vld [vmem:[%s693_s4] ss:$0 sm:$0xff] (!%p237_p2) }
   0x9   : > { %552 = vmatpush3.bf16.msra.mxu1 (!%p237_p2), %v575_v3  ;;  %v531_v34 = vld [vmem:[%s694_s5] ss:$0 sm:$0xff] (!%p237_p2) }
   0xa   : > { %553 = vmatprep.subr.bf16.mxu1 (!%p237_p2), %v589_v1  ;;  %v532_v36 = vld [vmem:[%s695_s6] ss:$0 sm:$0xff] (!%p237_p2) }
   0xb   : > { %546 = vmatpush3.bf16.msra.mxu0 (!%p237_p2), %v574_v2 }
   0xd   : > { %s698_s25 = smov (!%p266_p3, %s514_s25), 1  ;;  %554 = vmatpush3.bf16.msra.mxu1 %v576_v4 }
   0xe   : > { %s519_s11 = sshll.u32 %s698_s25, 3  ;;  %555 = vmatprep.subr.bf16.mxu1 %v589_v1 }
   0xf   : > { %s269_s14 = scalar_lea.vmem %s689_s0, %s519_s11  ;;  %s273_s8 = scalar_lea.vmem %s696_s7, %s519_s11 }
  0x10   : > { %v275_v5 = vld [vmem:[%s269_s14] sm:$0xff] }
  0x11   : > { %v276_v6 = vpack.c.bf16 %v275_v5, %v275_v5  ;;  %556 = vmatpush3.bf16.msra.mxu1 %v577_v7 }
  0x12   : > { %557 = vmatprep.subr.bf16.mxu1 %v589_v1 }
  0x13   : > { %548 = vmatmul.mubr.msk.bf16.vlgmr.msra.gmra.mrb[0].mxu0 %vm300_vm1, %v276_v6 }
  0x15   : > { %558 = vmatpush3.bf16.msra.mxu1 %v578_v8 }
  0xe6   : > { %v338_v10 = vpop.f32.mrb[0].mxu0 }
  0xe7   : > { %v339_v11 = vadd.f32 %v521_v9, %v338_v10  ;;  %v549_v12 = vpop.f32.mrb[1].mxu0 }
  0xe8   : > { %v341_v13 = vpop.f32.mrb[2].mxu0 }
  0xe9   : > { %v344_v14 = vmax.f32 %v339_v11, 0.0  ;;  %v550_v15 = vpop.f32.mrb[3].mxu0 }
  0xeb   : > { %v345_v16 = vpack.c.bf16 %v344_v14, %v344_v14 }
  0xed   : > { %560 = vmatmul.mubr.msk.bf16.vlgmr.msra.gmra.mrb[0].mxu1 %vm385_vm2, %v345_v16 }
 0x1c0   : > { %v423_v18 = vpop.f32.mrb[0].mxu1 }
 0x1c1   : > { %v424_v19 = vadd.f32 %v525_v17, %v423_v18  ;;  %v561_v20 = vpop.f32.mrb[1].mxu1 }
 0x1c2   : > { %v426_v21 = vpop.f32.mrb[2].mxu1 }
 0x1c3   : > { %v562_v22 = vpop.f32.mrb[3].mxu1  ;;  %v429_v23 = vadd.f32 %v424_v19, %v275_v5 }
 0x1c5   : > { %v430_v24 = vsel %vm300_vm1, %v429_v23, 0.0 }
 0x1c6   : > { %431 = vadd.xlane.f32.xlu0 %v430_v24 }
 0x253   : > { %v432_v25 = vpop.xlane.xlu0 %431 }
 0x254   : > { %v434_v26 = vmul.f32 0.03125, %v432_v25 }
 0x256   : > { %v435_v27 = vsub.f32 %v429_v23, %v434_v26 }
 0x258   : > { %v436_v28 = vmul.f32 %v435_v27, %v435_v27 }
 0x25a   : > { %v437_v29 = vsel %vm300_vm1, %v436_v28, 0.0 }
 0x25b   : > { %438 = vadd.xlane.f32.xlu0 %v437_v29 }
 0x2e8   : > { %v439_v30 = vpop.xlane.xlu0 %438 }
 0x2e9   : > { %v440_v31 = vmul.f32 0.03125, %v439_v30 }
 0x2eb   : > { %v441_v32 = vadd.f32 1e-05, %v440_v31 }
 0x2ed   : > { %579 = vrsqrt.f32 %v441_v32 }
 0x2f7   : > { %v580_v33 = vpop.eup %579 }
 0x2f8   : > { %v443_v35 = vmul.f32 %v580_v33, %v435_v27 }
 0x2fa   : > { %v451_v37 = vmul.f32 %v531_v34, %v443_v35 }
 0x2fc   : > { %v459_v38 = vadd.f32 %v532_v36, %v451_v37 }
 0x2fe   : > { %460 = vst.msk [vmem:[%s273_s8] sm:$0xff] %vm300_vm1, %v459_v38 }
 0x2ff PF: > { %s17_s24 = sadd.s32 1, %s587_s24  }
 0x300   : > { %p14_p4 = scmp.ge.s32.totalorder %s17_s24, 4  }
 0x302   :  { %16 = sbr.rel (!%p14_p4) target bundleno = 1 (0x1), region = 78 }

// kernel: transformer_forward.17
= control target key start
LH: loop header
LB: loop body
LE: loop exit
PB: predicated region body
PF: predicated region fallthrough
CT: control target
= control target key end

     0   :  { %s1003_s15 = smov 0   ;;  %s1127_s0 = inlined_call_operand.vmem [shape: f32[2,8,32], index: 0, kind: input, shape index: {}]   ;;  %s1128_s1 = inlined_call_operand.vmem [shape: bf16[32,96], index: 1, kind: input, shape index: {}]   ;;  %s1129_s2 = inlined_call_operand.vmem [shape: f32[1,96], index: 2, kind: input, shape index: {}]   ;;  %s1130_s3 = inlined_call_operand.vmem [shape: s32[2,1,8], index: 3, kind: input, shape index: {}]   ;;  %s1131_s4 = inlined_call_operand.vmem [shape: f32[2,8,32], index: 4, kind: output, shape index: {}]  }
   0x1 LB: > { %s826_s16 = sadd.s32 4294967295, %s965_s15   ;;  %p830_p0 = scmp.ge.s32.totalorder %s965_s15, 1  ;;  %s965_s15 = sphi %s1003_s15, %s14_s15  }
   0x2   : > { %p169_p1 = scmp.lt.s32.totalorder %s965_s15, 3 }
   0x4   : > { %p170_p2 = pnand %p830_p0, %p169_p1 }
   0x5   : > { %v941_v0 = vld [vmem:[%s1128_s1] sm:$0xff] (!%p170_p2)   ;;  %v967_v1 = vmov (!%p170_p2), 0.0   ;;  %v942_v2 = vld [vmem:[%s1128_s1 + $0x8] sm:$0xff] (!%p170_p2)   ;;  %vm968_vm0 = vmmov (!%p170_p2), 0   ;;  %p196_p3 = scmp.lt.s32.totalorder (!%p170_p2), %s826_s16, 1  ;;  %vm233_vm1 = vcmask (!%p170_p2), 261120   ;;  %v495_v26 = vlaneseq (!%p170_p2) }
   0x6   : > { %173 = sbr.rel (%p170_p2) target bundleno = 1340 (0x53c), region = 36  ;;  %866 = vmatprep.subr.bf16.mxu0 (!%p170_p2), %v967_v1  ;;  %874 = vmatprep.subr.bf16.mxu1 (!%p170_p2), %v967_v1  ;;  %v833_v5 = vld [vmem:[%s1129_s2] ss:$0 sm:$0xff] (!%p170_p2)  ;;  %s969_s27 = smov (!%p170_p2), 104   ;;  %vm296_vm2 = vcmask (!%p170_p2), 64512   ;;  %v973_v30 = vmov (!%p170_p2), 0  }
   0x7   : > { %867 = vmatpush3.bf16.msra.mxu0 (!%p170_p2), %v941_v0  ;;  %870 = vmatprep.mubr.msk.bf16.mxu0 (!%p170_p2), %vm968_vm0, %v967_v1  ;;  %s970_s28 = smov (!%p170_p2), 120   ;;  %s971_s29 = smov (!%p170_p2), 112   ;;  %v496_v28 = vshrl.u32 (!%p170_p2), %v495_v26, 7  ;;  %vm557_vm5 = vcmask (!%p170_p2), 1043456   ;;  %vm750_vm6 = vcmask (!%p170_p2), 130112   ;;  %vm756_vm7 = vcmask (!%p170_p2), 195712  }
   0x8   : > { %868 = vmatprep.subr.bf16.mxu0 (!%p170_p2), %v967_v1  ;;  %876 = vmatprep.mubr.msk.bf16.mxu1 (!%p170_p2), %vm968_vm0, %v967_v1  ;;  %s972_s30 = smov (!%p170_p2), 96   ;;  %s974_s8 = smov (!%p170_p2), 64   ;;  %vm762_vm8 = vcmask (!%p170_p2), 261312  }
   0x9   : > { %v497_v29 = vsub.s32 (!%p170_p2), 0, %v496_v28  ;;  %s975_s12 = smov (!%p170_p2), 8   ;;  %s976_s13 = smov (!%p170_p2), 16  }
   0xa   : > { %s977_s14 = smov (!%p170_p2), 24  }
   0xb   : > { %869 = vmatpush3.bf16.msra.mxu0 (!%p170_p2), %v942_v2 }
   0xc   : > { %880 = vmatprep.subr.bf16.mxu0 (!%p170_p2), %v967_v1 }
   0xd   : > { %s1133_s16 = smov (!%p196_p3, %s826_s16), 1 }
   0xe   : > { %s831_s21 = sshll.u32 %s1133_s16, 3  ;;  %s202_s7 = scalar_lea.vmem %s1130_s3, %s1133_s16 }
   0xf   : > { %s199_s24 = scalar_lea.vmem %s1127_s0, %s831_s21  ;;  %v277_v27 = vld [vmem:[%s202_s7] sm:$0x1]  ;;  %s1117_s11 = scalar_lea.vmem %s1131_s4, %s831_s21 }
  0x10   : > { %v208_v3 = vld [vmem:[%s199_s24] sm:$0xff]  ;;  %vm278_vm3 = vcmp.ne.s32.totalorder %v277_v27, 0 }
  0x11   : > { %v209_v4 = vpack.c.bf16 %v208_v3, %v208_v3  ;;  %v494_v31 = vsel %vm278_vm3, 1, %v973_v30 }
  0x12   : > { %v498_v32 = vrot.slane %v494_v31, %v497_v29 }
  0x13   : > { %871 = vmatmul.mubr.msk.bf16.vlgmr.msra.gmra.mrb[0].mxu0 %vm233_vm1, %v209_v4 }
  0x14   : > { %882 = vmatprep.mubr.msk.bf16.mxu0 %vm968_vm0, %v967_v1  ;;  %vm499_vm4 = vcmp.eq.s32.totalorder %v498_v32, 1 }
  0xe6   : > { %v271_v6 = vpop.f32.mrb[0].mxu0 }
  0xe7   : > { %v272_v7 = vadd.f32 %v833_v5, %v271_v6  ;;  %v872_v8 = vpop.f32.mrb[1].mxu0 }
  0xe8   : > { %v274_v9 = vpop.f32.mrb[2].mxu0 }
  0xe9   : > { %286 = vrot.lane.b32.xlu1 %v272_v7, %s969_s27  ;;  %280 = vrot.lane.b32.xlu0 %v272_v7, %s970_s28  ;;  %v873_v10 = vpop.f32.mrb[3].mxu0  ;;  %v1038_v11 = vpack.c.bf16 %v272_v7, %v272_v7 }
  0xed   : > { %283 = vrot.lane.b32.xlu0 %v272_v7, %s971_s29  ;;  %294 = vrot.lane.b32.xlu1 %v1038_v11, %s972_s30 }
 0x15b   : > { %v287_v12 = vpop.permute.xlu1 %286  ;;  %v281_v13 = vpop.permute.xlu0 %280 }
 0x15c   : > { %v1041_v14 = vpack.c.bf16 %v281_v13, %v281_v13  ;;  %v1044_v17 = vpack.c.bf16 %v287_v12, %v287_v12 }
 0x15e   : > { %344 = vrot.lane.b32.xlu0 %v1041_v14, %s972_s30 }
 0x15f   : > { %v284_v15 = vpop.permute.xlu0 %283  ;;  %v295_v16 = vpop.permute.xlu1 %294 }
 0x160   : > { %v1046_v18 = vpack.c.bf16 %v284_v15, %v284_v15  ;;  %v301_v19 = vsel %vm296_vm2, %v295_v16, 0 }
 0x161   : > { %875 = vmatpush3.bf16.xpose.msra.mxu1 %v301_v19 }
 0x162   : > { %442 = vrot.lane.b32.xlu0 %v1044_v17, %s972_s30  ;;  %393 = vrot.lane.b32.xlu1 %v1046_v18, %s972_s30 }
 0x163   : > { %886 = vmatprep.subr.bf16.mxu1 %v967_v1 }
 0x168   : > { %877 = vmatmul.mubr.msk.bf16.vlgmr.msra.gmra.mrb[0].mxu1 %vm296_vm2, %v1038_v11 }
 0x169   : > { %888 = vmatprep.mubr.msk.bf16.mxu1 %vm968_vm0, %v967_v1 }
 0x1d0   : > { %v345_v20 = vpop.permute.xlu0 %344 }
 0x1d1   : > { %v350_v21 = vsel %vm296_vm2, %v345_v20, 0 }
 0x1d2   : > { %881 = vmatpush3.bf16.xpose.msra.mxu0 %v350_v21 }
 0x1d3   : > { %892 = vmatprep.subr.bf16.mxu0 %v967_v1 }
 0x1d4   : > { %v394_v22 = vpop.permute.xlu1 %393  ;;  %v443_v24 = vpop.permute.xlu0 %442 }
 0x1d5   : > { %v399_v23 = vsel %vm296_vm2, %v394_v22, 0  ;;  %v448_v25 = vsel %vm296_vm2, %v443_v24, 0 }
 0x1d6   : > { %887 = vmatpush3.bf16.xpose.msra.mxu1 %v399_v23 }
 0x1d7   : > { %898 = vmatprep.subr.bf16.mxu1 %v967_v1 }
 0x1d9   : > { %883 = vmatmul.mubr.msk.bf16.vlgmr.msra.gmra.mrb[4].mxu0 %vm296_vm2, %v1041_v14 }
 0x1da   : > { %893 = vmatpush3.bf16.xpose.msra.mxu0 %v448_v25  ;;  %894 = vmatprep.mubr.msk.bf16.mxu0 %vm968_vm0, %v967_v1 }
 0x1db   : > { %904 = vmatprep.subr.bf16.mxu0 %v967_v1 }
 0x1dd   : > { %889 = vmatmul.mubr.msk.bf16.vlgmr.msra.gmra.mrb[4].mxu1 %vm296_vm2, %v1046_v18 }
 0x1de   : > { %900 = vmatprep.mubr.msk.bf16.mxu1 %vm968_vm0, %v967_v1 }
 0x1e1   : > { %895 = vmatmul.mubr.msk.bf16.vlgmr.msra.gmra.mrb[8].mxu0 %vm296_vm2, %v1044_v17 }
 0x1e2   : > { %906 = vmatprep.mubr.msk.bf16.mxu0 %vm968_vm0, %v967_v1 }
 0x23b   : > { %v337_v33 = vpop.f32.mrb[0].mxu1 }
 0x23c   : > { %v490_v34 = vmul.f32 0.35355338, %v337_v33  ;;  %v878_v35 = vpop.f32.mrb[1].mxu1 }
 0x23d   : > { %v340_v36 = vpop.f32.mrb[2].mxu1 }
 0x23e   : > { %v879_v37 = vpop.f32.mrb[3].mxu1  ;;  %v500_v38 = vsel %vm499_vm4, %v490_v34, -1e+09 }
 0x23f   : > { %v504_v39 = vsel %vm296_vm2, %v500_v38, -inf }
 0x240   : > { %505 = vmax.xlane.f32.xlu1 %v504_v39 }
 0x2ac   : > { %v386_v40 = vpop.f32.mrb[4].mxu0 }
 0x2ad   : > { %v491_v41 = vmul.f32 0.35355338, %v386_v40  ;;  %v884_v42 = vpop.f32.mrb[5].mxu0 }
 0x2ae   : > { %v389_v43 = vpop.f32.mrb[6].mxu0 }
 0x2af   : > { %v885_v44 = vpop.f32.mrb[7].mxu0  ;;  %v501_v45 = vsel %vm499_vm4, %v491_v41, -1e+09 }
 0x2b0   : > { %v435_v46 = vpop.f32.mrb[4].mxu1  ;;  %v507_v47 = vsel %vm296_vm2, %v501_v45, -inf }
 0x2b1   : > { %v492_v48 = vmul.f32 0.35355338, %v435_v46  ;;  %v890_v49 = vpop.f32.mrb[5].mxu1  ;;  %508 = vmax.xlane.f32.xlu0 %v507_v47 }
 0x2b2   : > { %v438_v50 = vpop.f32.mrb[6].mxu1 }
 0x2b3   : > { %v891_v51 = vpop.f32.mrb[7].mxu1  ;;  %v502_v52 = vsel %vm499_vm4, %v492_v48, -1e+09 }
 0x2b4   : > { %v484_v53 = vpop.f32.mrb[8].mxu0  ;;  %v510_v54 = vsel %vm296_vm2, %v502_v52, -inf }
 0x2b5   : > { %v493_v55 = vmul.f32 0.35355338, %v484_v53  ;;  %511 = vmax.xlane.f32.xlu0 %v510_v54  ;;  %v896_v56 = vpop.f32.mrb[9].mxu0 }
 0x2b6   : > { %v487_v57 = vpop.f32.mrb[10].mxu0 }
 0x2b7   : > { %v897_v58 = vpop.f32.mrb[11].mxu0  ;;  %v503_v59 = vsel %vm499_vm4, %v493_v55, -1e+09 }
 0x2b8   : > { %v513_v60 = vsel %vm296_vm2, %v503_v59, -inf }
 0x2b9   : > { %514 = vmax.xlane.f32.xlu1 %v513_v60 }
 0x2ca   : > { %601 = vrot.lane.b32.xlu1 %v1041_v14, %s974_s8 }
 0x2cb   : > { %552 = vrot.lane.b32.xlu0 %v1038_v11, %s974_s8 }
 0x2cd   : > { %v506_v61 = vpop.xlane.xlu1 %505 }
 0x2ce   : > { %v516_v62 = vsub.f32 %v500_v38, %v506_v61 }
 0x2d0   : > { %v520_v63 = vmul.f32 1.442695, %v516_v62 }
 0x2d2   : > { %943 = vpow2.f32 %v520_v63 }
 0x2dc   : > { %v944_v0 = vpop.eup %943 }
 0x2dd   : > { %v528_v2 = vsel %vm296_vm2, %v944_v0, 0.0 }
 0x2ea   : > { %529 = vadd.xlane.f32.xlu0 %v528_v2 }
 0x33e   : > { %v509_v3 = vpop.xlane.xlu0 %508 }
 0x33f   : > { %v517_v4 = vsub.f32 %v501_v45, %v509_v3 }
 0x341   : > { %v522_v5 = vmul.f32 1.442695, %v517_v4 }
 0x342   : > { %v512_v6 = vpop.xlane.xlu0 %511 }
 0x343   : > { %945 = vpow2.f32 %v522_v5  ;;  %v518_v7 = vsub.f32 %v502_v52, %v512_v6 }
 0x345   : > { %v524_v8 = vmul.f32 1.442695, %v518_v7 }
 0x346   : > { %v553_v9 = vpop.permute.xlu0 %552  ;;  %v515_v10 = vpop.xlane.xlu1 %514 }
 0x347   : > { %947 = vpow2.f32 %v524_v8  ;;  %v559_v11 = vsel %vm557_vm5, %v553_v9, 0  ;;  %v519_v12 = vsub.f32 %v503_v59, %v515_v10 }
 0x348   : > { %899 = vmatpush3.bf16.msra.mxu1 %v559_v11 }
 0x349   : > { %v526_v13 = vmul.f32 1.442695, %v519_v12  ;;  %910 = vmatprep.subr.bf16.mxu1 %v967_v1 }
 0x34a   : > { %v602_v14 = vpop.permute.xlu1 %601 }
 0x34b   : > { %949 = vpow2.f32 %v526_v13  ;;  %v607_v15 = vsel %vm557_vm5, %v602_v14, 0 }
 0x34c   : > { %905 = vmatpush3.bf16.msra.mxu0 %v607_v15 }
 0x34d   : > { %v946_v16 = vpop.eup %945  ;;  %916 = vmatprep.subr.bf16.mxu0 %v967_v1 }
 0x34e   : > { %v531_v19 = vsel %vm296_vm2, %v946_v16, 0.0 }
 0x34f   : > { %532 = vadd.xlane.f32.xlu1 %v531_v19 }
 0x351   : > { %v948_v20 = vpop.eup %947 }
 0x352   : > { %v534_v21 = vsel %vm296_vm2, %v948_v20, 0.0 }
 0x353   : > { %535 = vadd.xlane.f32.xlu0 %v534_v21 }
 0x355   : > { %v950_v22 = vpop.eup %949 }
 0x356   : > { %v537_v23 = vsel %vm296_vm2, %v950_v22, 0.0 }
 0x357   : > { %538 = vadd.xlane.f32.xlu1 %v537_v23 }
 0x368   : > { %649 = vrot.lane.b32.xlu1 %v1046_v18, %s974_s8 }
 0x369   : > { %697 = vrot.lane.b32.xlu0 %v1044_v17, %s974_s8 }
 0x377   : > { %v530_v24 = vpop.xlane.xlu0 %529 }
 0x378   : > { %951 = vrcp.f32 %v530_v24 }
 0x382   : > { %v952_v25 = vpop.eup %951 }
 0x383   : > { %v544_v26 = vmul.f32 %v952_v25, %v944_v0 }
 0x385   : > { %v548_v27 = vpack.c.bf16 %v544_v26, %v544_v26 }
 0x387   : > { %901 = vmatmul.mubr.msk.bf16.vlgmr.msra.gmra.mrb[8].mxu1 %vm296_vm2, %v548_v27 }
 0x388   : > { %912 = vmatprep.mubr.msk.bf16.mxu1 %vm968_vm0, %v967_v1 }
 0x3dc   : > { %v533_v28 = vpop.xlane.xlu1 %532 }
 0x3dd   : > { %953 = vrcp.f32 %v533_v28 }
 0x3e0   : > { %v536_v29 = vpop.xlane.xlu0 %535 }
 0x3e1   : > { %955 = vrcp.f32 %v536_v29 }
 0x3e4   : > { %v539_v30 = vpop.xlane.xlu1 %538  ;;  %v698_v17 = vpop.permute.xlu0 %697 }
 0x3e5   : > { %957 = vrcp.f32 %v539_v30  ;;  %v703_v37 = vsel %vm557_vm5, %v698_v17, 0 }
 0x3e7   : > { %v954_v18 = vpop.eup %953 }
 0x3e8   : > { %v545_v31 = vmul.f32 %v954_v18, %v946_v16  ;;  %v650_v32 = vpop.permute.xlu1 %649 }
 0x3e9   : > { %v655_v33 = vsel %vm557_vm5, %v650_v32, 0 }
 0x3ea   : > { %911 = vmatpush3.bf16.msra.mxu1 %v655_v33  ;;  %v549_v34 = vpack.c.bf16 %v545_v31, %v545_v31 }
 0x3eb   : > { %v956_v35 = vpop.eup %955 }
 0x3ec   : > { %v546_v36 = vmul.f32 %v956_v35, %v948_v20  ;;  %907 = vmatmul.mubr.msk.bf16.vlgmr.msra.gmra.mrb[12].mxu0 %vm296_vm2, %v549_v34 }
 0x3ed   : > { %917 = vmatpush3.bf16.msra.mxu0 %v703_v37  ;;  %918 = vmatprep.mubr.msk.bf16.mxu0 %vm968_vm0, %v967_v1 }
 0x3ee   : > { %v550_v38 = vpack.c.bf16 %v546_v36, %v546_v36 }
 0x3ef   : > { %v958_v39 = vpop.eup %957 }
 0x3f0   : > { %v547_v40 = vmul.f32 %v958_v39, %v950_v22  ;;  %913 = vmatmul.mubr.msk.bf16.vlgmr.msra.gmra.mrb[12].mxu1 %vm296_vm2, %v550_v38 }
 0x3f2   : > { %v551_v41 = vpack.c.bf16 %v547_v40, %v547_v40 }
 0x3f4   : > { %919 = vmatmul.mubr.msk.bf16.vlgmr.msra.gmra.mrb[16].mxu0 %vm296_vm2, %v551_v41 }
 0x45a   : > { %v595_v42 = vpop.f32.mrb[8].mxu1 }
 0x45b   : > { %745 = vst.msk [vmem:[%s1117_s11] sm:$0xff] %vm296_vm2, %v595_v42  ;;  %v902_v43 = vpop.f32.mrb[9].mxu1 }
 0x45c   : > { %v598_v1 = vpop.f32.mrb[10].mxu1 }
 0x45d   : > { %v903_v44 = vpop.f32.mrb[11].mxu1 }
 0x4bf   : > { %v643_v45 = vpop.f32.mrb[12].mxu0 }
 0x4c0   : > { %747 = vrot.lane.b32.xlu1 %v643_v45, %s975_s12  ;;  %v908_v46 = vpop.f32.mrb[13].mxu0 }
 0x4c1   : > { %v646_v47 = vpop.f32.mrb[14].mxu0 }
 0x4c2   : > { %v909_v48 = vpop.f32.mrb[15].mxu0 }
 0x4c3   : > { %v691_v49 = vpop.f32.mrb[12].mxu1 }
 0x4c4   : > { %753 = vrot.lane.b32.xlu0 %v691_v49, %s976_s13  ;;  %v914_v50 = vpop.f32.mrb[13].mxu1 }
 0x4c5   : > { %v694_v51 = vpop.f32.mrb[14].mxu1 }
 0x4c6   : > { %v915_v52 = vpop.f32.mrb[15].mxu1 }
 0x4c7   : > { %v739_v53 = vpop.f32.mrb[16].mxu0 }
 0x4c8   : > { %759 = vrot.lane.b32.xlu1 %v739_v53, %s977_s14  ;;  %v920_v54 = vpop.f32.mrb[17].mxu0 }
 0x4c9   : > { %v742_v55 = vpop.f32.mrb[18].mxu0 }
 0x4ca   : > { %v921_v56 = vpop.f32.mrb[19].mxu0 }
 0x532   : > { %v748_v57 = vpop.permute.xlu1 %747 }
 0x533   : > { %751 = vst.msk [vmem:[%s1117_s11] sm:$0xff] %vm750_vm6, %v748_v57 }
 0x536   : > { %v754_v58 = vpop.permute.xlu0 %753 }
 0x537   : > { %757 = vst.msk [vmem:[%s1117_s11] sm:$0xff] %vm756_vm7, %v754_v58 }
 0x53a   : > { %v760_v59 = vpop.permute.xlu1 %759 }
 0x53b   : > { %763 = vst.msk [vmem:[%s1117_s11] sm:$0xff] %vm762_vm8, %v760_v59 }
 0x53c PF: > { %s14_s15 = sadd.s32 1, %s965_s15  }
 0x53d   : > { %p11_p4 = scmp.ge.s32.totalorder %s14_s15, 4  }
 0x53f   :  { %13 = sbr.rel (!%p11_p4) target bundleno = 1 (0x1), region = 69 }

// kernel: transformer_forward.23
= control target key start
LH: loop header
LB: loop body
LE: loop exit
PB: predicated region body
PF: predicated region fallthrough
CT: control target
= control target key end

     0   :  { %s1011_s15 = smov 0   ;;  %s1143_s0 = inlined_call_operand.vmem [shape: f32[2,8,32], index: 0, kind: input, shape index: {}]   ;;  %s1144_s1 = inlined_call_operand.vmem [shape: bf16[32,96], index: 1, kind: input, shape index: {}]   ;;  %s1145_s2 = inlined_call_operand.vmem [shape: f32[1,96], index: 2, kind: input, shape index: {}]   ;;  %s1146_s3 = inlined_call_operand.vmem [shape: s32[2,1,8], index: 3, kind: input, shape index: {}]   ;;  %s1147_s4 = inlined_call_operand.vmem [shape: f32[2,8,32], index: 4, kind: output, shape index: {}]  }
   0x1 LB: > { %s834_s16 = sadd.s32 4294967295, %s973_s15   ;;  %p838_p0 = scmp.ge.s32.totalorder %s973_s15, 1  ;;  %s973_s15 = sphi %s1011_s15, %s14_s15  }
   0x2   : > { %p169_p1 = scmp.lt.s32.totalorder %s973_s15, 3 }
   0x4   : > { %p170_p2 = pnand %p838_p0, %p169_p1 }
   0x5   : > { %v949_v0 = vld [vmem:[%s1144_s1] sm:$0xff] (!%p170_p2)   ;;  %v975_v1 = vmov (!%p170_p2), 0.0   ;;  %v950_v2 = vld [vmem:[%s1144_s1 + $0x8] sm:$0xff] (!%p170_p2)   ;;  %vm976_vm0 = vmmov (!%p170_p2), 0   ;;  %p196_p3 = scmp.lt.s32.totalorder (!%p170_p2), %s834_s16, 1  ;;  %vm233_vm1 = vcmask (!%p170_p2), 261120   ;;  %v279_v26 = vlaneseq (!%p170_p2) }
   0x6   : > { %173 = sbr.rel (%p170_p2) target bundleno = 1340 (0x53c), region = 36  ;;  %874 = vmatprep.subr.bf16.mxu0 (!%p170_p2), %v975_v1  ;;  %882 = vmatprep.subr.bf16.mxu1 (!%p170_p2), %v975_v1  ;;  %v841_v5 = vld [vmem:[%s1145_s2] ss:$0 sm:$0xff] (!%p170_p2)  ;;  %s977_s27 = smov (!%p170_p2), 104   ;;  %vm308_vm2 = vcmask (!%p170_p2), 64512   ;;  %v981_v30 = vmov (!%p170_p2), 0  }
   0x7   : > { %875 = vmatpush3.bf16.msra.mxu0 (!%p170_p2), %v949_v0  ;;  %878 = vmatprep.mubr.msk.bf16.mxu0 (!%p170_p2), %vm976_vm0, %v975_v1  ;;  %s978_s28 = smov (!%p170_p2), 120   ;;  %s979_s29 = smov (!%p170_p2), 112   ;;  %v280_v28 = vshrl.u32 (!%p170_p2), %v279_v26, 7  ;;  %v282_v32 = vand.u32 (!%p170_p2), 127, %v279_v26  ;;  %vm565_vm7 = vcmask (!%p170_p2), 1043456   ;;  %vm758_vm8 = vcmask (!%p170_p2), 130112  }
   0x8   : > { %876 = vmatprep.subr.bf16.mxu0 (!%p170_p2), %v975_v1  ;;  %884 = vmatprep.mubr.msk.bf16.mxu1 (!%p170_p2), %vm976_vm0, %v975_v1  ;;  %s980_s30 = smov (!%p170_p2), 96   ;;  %s982_s8 = smov (!%p170_p2), 64   ;;  %vm764_vm9 = vcmask (!%p170_p2), 195712   ;;  %vm770_vm10 = vcmask (!%p170_p2), 261312  }
   0x9   : > { %v287_v29 = vsub.s32 (!%p170_p2), 0, %v280_v28  ;;  %vm283_vm4 = vcmp.le.s32.totalorder (!%p170_p2), %v282_v32, %v280_v28  ;;  %s983_s12 = smov (!%p170_p2), 8   ;;  %s984_s13 = smov (!%p170_p2), 16  }
   0xa   : > { %s985_s14 = smov (!%p170_p2), 24  }
   0xb   : > { %877 = vmatpush3.bf16.msra.mxu0 (!%p170_p2), %v950_v2 }
   0xc   : > { %888 = vmatprep.subr.bf16.mxu0 (!%p170_p2), %v975_v1 }
   0xd   : > { %s1151_s16 = smov (!%p196_p3, %s834_s16), 1 }
   0xe   : > { %s839_s21 = sshll.u32 %s1151_s16, 3  ;;  %s202_s7 = scalar_lea.vmem %s1146_s3, %s1151_s16 }
   0xf   : > { %s199_s24 = scalar_lea.vmem %s1143_s0, %s839_s21  ;;  %v277_v27 = vld [vmem:[%s202_s7] sm:$0x1]  ;;  %s1133_s11 = scalar_lea.vmem %s1147_s4, %s839_s21 }
  0x10   : > { %v208_v3 = vld [vmem:[%s199_s24] sm:$0xff]  ;;  %vm278_vm3 = vcmp.ne.s32.totalorder %v277_v27, 0 }
  0x11   : > { %v209_v4 = vpack.c.bf16 %v208_v3, %v208_v3  ;;  %v284_v31 = vsel %vm278_vm3, 1, %v981_v30 }
  0x12   : > { %v288_v33 = vrot.slane %v284_v31, %v287_v29 }
  0x13   : > { %879 = vmatmul.mubr.msk.bf16.vlgmr.msra.gmra.mrb[0].mxu0 %vm233_vm1, %v209_v4 }
  0x14   : > { %890 = vmatprep.mubr.msk.bf16.mxu0 %vm976_vm0, %v975_v1  ;;  %vm289_vm5 = vcmp.eq.s32.totalorder %v288_v33, 1 }
  0x15   : > { %vm1086_vm6 = vmand %vm289_vm5, %vm283_vm4 }
  0xe6   : > { %v271_v6 = vpop.f32.mrb[0].mxu0 }
  0xe7   : > { %v272_v7 = vadd.f32 %v841_v5, %v271_v6  ;;  %v880_v8 = vpop.f32.mrb[1].mxu0 }
  0xe8   : > { %v274_v9 = vpop.f32.mrb[2].mxu0 }
  0xe9   : > { %298 = vrot.lane.b32.xlu1 %v272_v7, %s977_s27  ;;  %292 = vrot.lane.b32.xlu0 %v272_v7, %s978_s28  ;;  %v881_v10 = vpop.f32.mrb[3].mxu0  ;;  %v1046_v11 = vpack.c.bf16 %v272_v7, %v272_v7 }
  0xed   : > { %295 = vrot.lane.b32.xlu0 %v272_v7, %s979_s29  ;;  %306 = vrot.lane.b32.xlu1 %v1046_v11, %s980_s30 }
 0x15b   : > { %v299_v12 = vpop.permute.xlu1 %298  ;;  %v293_v13 = vpop.permute.xlu0 %292 }
 0x15c   : > { %v1049_v14 = vpack.c.bf16 %v293_v13, %v293_v13  ;;  %v1052_v17 = vpack.c.bf16 %v299_v12, %v299_v12 }
 0x15e   : > { %356 = vrot.lane.b32.xlu0 %v1049_v14, %s980_s30 }
 0x15f   : > { %v296_v15 = vpop.permute.xlu0 %295  ;;  %v307_v16 = vpop.permute.xlu1 %306 }
 0x160   : > { %v1054_v18 = vpack.c.bf16 %v296_v15, %v296_v15  ;;  %v313_v19 = vsel %vm308_vm2, %v307_v16, 0 }
 0x161   : > { %883 = vmatpush3.bf16.xpose.msra.mxu1 %v313_v19 }
 0x162   : > { %454 = vrot.lane.b32.xlu0 %v1052_v17, %s980_s30  ;;  %405 = vrot.lane.b32.xlu1 %v1054_v18, %s980_s30 }
 0x163   : > { %894 = vmatprep.subr.bf16.mxu1 %v975_v1 }
 0x168   : > { %885 = vmatmul.mubr.msk.bf16.vlgmr.msra.gmra.mrb[0].mxu1 %vm308_vm2, %v1046_v11 }
 0x169   : > { %896 = vmatprep.mubr.msk.bf16.mxu1 %vm976_vm0, %v975_v1 }
 0x1d0   : > { %v357_v20 = vpop.permute.xlu0 %356 }
 0x1d1   : > { %v362_v21 = vsel %vm308_vm2, %v357_v20, 0 }
 0x1d2   : > { %889 = vmatpush3.bf16.xpose.msra.mxu0 %v362_v21 }
 0x1d3   : > { %900 = vmatprep.subr.bf16.mxu0 %v975_v1 }
 0x1d4   : > { %v406_v22 = vpop.permute.xlu1 %405  ;;  %v455_v24 = vpop.permute.xlu0 %454 }
 0x1d5   : > { %v411_v23 = vsel %vm308_vm2, %v406_v22, 0  ;;  %v460_v25 = vsel %vm308_vm2, %v455_v24, 0 }
 0x1d6   : > { %895 = vmatpush3.bf16.xpose.msra.mxu1 %v411_v23 }
 0x1d7   : > { %906 = vmatprep.subr.bf16.mxu1 %v975_v1 }
 0x1d9   : > { %891 = vmatmul.mubr.msk.bf16.vlgmr.msra.gmra.mrb[4].mxu0 %vm308_vm2, %v1049_v14 }
 0x1da   : > { %901 = vmatpush3.bf16.xpose.msra.mxu0 %v460_v25  ;;  %902 = vmatprep.mubr.msk.bf16.mxu0 %vm976_vm0, %v975_v1 }
 0x1db   : > { %912 = vmatprep.subr.bf16.mxu0 %v975_v1 }
 0x1dd   : > { %897 = vmatmul.mubr.msk.bf16.vlgmr.msra.gmra.mrb[4].mxu1 %vm308_vm2, %v1054_v18 }
 0x1de   : > { %908 = vmatprep.mubr.msk.bf16.mxu1 %vm976_vm0, %v975_v1 }
 0x1e1   : > { %903 = vmatmul.mubr.msk.bf16.vlgmr.msra.gmra.mrb[8].mxu0 %vm308_vm2, %v1052_v17 }
 0x1e2   : > { %914 = vmatprep.mubr.msk.bf16.mxu0 %vm976_vm0, %v975_v1 }
 0x23b   : > { %v349_v34 = vpop.f32.mrb[0].mxu1 }
 0x23c   : > { %v502_v36 = vmul.f32 0.35355338, %v349_v34  ;;  %v886_v37 = vpop.f32.mrb[1].mxu1 }
 0x23d   : > { %v352_v38 = vpop.f32.mrb[2].mxu1 }
 0x23e   : > { %v887_v39 = vpop.f32.mrb[3].mxu1  ;;  %v508_v40 = vsel %vm1086_vm6, %v502_v36, -1e+09 }
 0x23f   : > { %v512_v41 = vsel %vm308_vm2, %v508_v40, -inf }
 0x240   : > { %513 = vmax.xlane.f32.xlu1 %v512_v41 }
 0x2ac   : > { %v398_v42 = vpop.f32.mrb[4].mxu0 }
 0x2ad   : > { %v503_v43 = vmul.f32 0.35355338, %v398_v42  ;;  %v892_v44 = vpop.f32.mrb[5].mxu0 }
 0x2ae   : > { %v401_v45 = vpop.f32.mrb[6].mxu0 }
 0x2af   : > { %v893_v46 = vpop.f32.mrb[7].mxu0  ;;  %v509_v47 = vsel %vm1086_vm6, %v503_v43, -1e+09 }
 0x2b0   : > { %v447_v48 = vpop.f32.mrb[4].mxu1  ;;  %v515_v49 = vsel %vm308_vm2, %v509_v47, -inf }
 0x2b1   : > { %v504_v50 = vmul.f32 0.35355338, %v447_v48  ;;  %v898_v51 = vpop.f32.mrb[5].mxu1  ;;  %516 = vmax.xlane.f32.xlu0 %v515_v49 }
 0x2b2   : > { %v450_v52 = vpop.f32.mrb[6].mxu1 }
 0x2b3   : > { %v899_v53 = vpop.f32.mrb[7].mxu1  ;;  %v510_v54 = vsel %vm1086_vm6, %v504_v50, -1e+09 }
 0x2b4   : > { %v496_v55 = vpop.f32.mrb[8].mxu0  ;;  %v518_v56 = vsel %vm308_vm2, %v510_v54, -inf }
 0x2b5   : > { %v505_v57 = vmul.f32 0.35355338, %v496_v55  ;;  %519 = vmax.xlane.f32.xlu0 %v518_v56  ;;  %v904_v58 = vpop.f32.mrb[9].mxu0 }
 0x2b6   : > { %v499_v59 = vpop.f32.mrb[10].mxu0 }
 0x2b7   : > { %v905_v60 = vpop.f32.mrb[11].mxu0  ;;  %v511_v61 = vsel %vm1086_vm6, %v505_v57, -1e+09 }
 0x2b8   : > { %v521_v62 = vsel %vm308_vm2, %v511_v61, -inf }
 0x2b9   : > { %522 = vmax.xlane.f32.xlu1 %v521_v62 }
 0x2ca   : > { %609 = vrot.lane.b32.xlu1 %v1049_v14, %s982_s8 }
 0x2cb   : > { %560 = vrot.lane.b32.xlu0 %v1046_v11, %s982_s8 }
 0x2cd   : > { %v514_v63 = vpop.xlane.xlu1 %513 }
 0x2ce   : > { %v524_v0 = vsub.f32 %v508_v40, %v514_v63 }
 0x2d0   : > { %v528_v2 = vmul.f32 1.442695, %v524_v0 }
 0x2d2   : > { %951 = vpow2.f32 %v528_v2 }
 0x2dc   : > { %v952_v3 = vpop.eup %951 }
 0x2dd   : > { %v536_v4 = vsel %vm308_vm2, %v952_v3, 0.0 }
 0x2ea   : > { %537 = vadd.xlane.f32.xlu0 %v536_v4 }
 0x33e   : > { %v517_v5 = vpop.xlane.xlu0 %516 }
 0x33f   : > { %v525_v6 = vsub.f32 %v509_v47, %v517_v5 }
 0x341   : > { %v530_v7 = vmul.f32 1.442695, %v525_v6 }
 0x342   : > { %v520_v8 = vpop.xlane.xlu0 %519 }
 0x343   : > { %953 = vpow2.f32 %v530_v7  ;;  %v526_v9 = vsub.f32 %v510_v54, %v520_v8 }
 0x345   : > { %v532_v10 = vmul.f32 1.442695, %v526_v9 }
 0x346   : > { %v561_v12 = vpop.permute.xlu0 %560  ;;  %v523_v13 = vpop.xlane.xlu1 %522 }
 0x347   : > { %955 = vpow2.f32 %v532_v10  ;;  %v567_v11 = vsel %vm565_vm7, %v561_v12, 0  ;;  %v527_v14 = vsub.f32 %v511_v61, %v523_v13 }
 0x348   : > { %907 = vmatpush3.bf16.msra.mxu1 %v567_v11 }
 0x349   : > { %v534_v15 = vmul.f32 1.442695, %v527_v14  ;;  %918 = vmatprep.subr.bf16.mxu1 %v975_v1 }
 0x34a   : > { %v610_v16 = vpop.permute.xlu1 %609 }
 0x34b   : > { %957 = vpow2.f32 %v534_v15  ;;  %v615_v19 = vsel %vm565_vm7, %v610_v16, 0 }
 0x34c   : > { %913 = vmatpush3.bf16.msra.mxu0 %v615_v19 }
 0x34d   : > { %v954_v20 = vpop.eup %953  ;;  %924 = vmatprep.subr.bf16.mxu0 %v975_v1 }
 0x34e   : > { %v539_v21 = vsel %vm308_vm2, %v954_v20, 0.0 }
 0x34f   : > { %540 = vadd.xlane.f32.xlu1 %v539_v21 }
 0x351   : > { %v956_v22 = vpop.eup %955 }
 0x352   : > { %v542_v23 = vsel %vm308_vm2, %v956_v22, 0.0 }
 0x353   : > { %543 = vadd.xlane.f32.xlu0 %v542_v23 }
 0x355   : > { %v958_v24 = vpop.eup %957 }
 0x356   : > { %v545_v25 = vsel %vm308_vm2, %v958_v24, 0.0 }
 0x357   : > { %546 = vadd.xlane.f32.xlu1 %v545_v25 }
 0x368   : > { %657 = vrot.lane.b32.xlu1 %v1054_v18, %s982_s8 }
 0x369   : > { %705 = vrot.lane.b32.xlu0 %v1052_v17, %s982_s8 }
 0x377   : > { %v538_v26 = vpop.xlane.xlu0 %537 }
 0x378   : > { %959 = vrcp.f32 %v538_v26 }
 0x382   : > { %v960_v27 = vpop.eup %959 }
 0x383   : > { %v552_v28 = vmul.f32 %v960_v27, %v952_v3 }
 0x385   : > { %v556_v29 = vpack.c.bf16 %v552_v28, %v552_v28 }
 0x387   : > { %909 = vmatmul.mubr.msk.bf16.vlgmr.msra.gmra.mrb[8].mxu1 %vm308_vm2, %v556_v29 }
 0x388   : > { %920 = vmatprep.mubr.msk.bf16.mxu1 %vm976_vm0, %v975_v1 }
 0x3dc   : > { %v541_v30 = vpop.xlane.xlu1 %540 }
 0x3dd   : > { %961 = vrcp.f32 %v541_v30 }
 0x3e0   : > { %v544_v31 = vpop.xlane.xlu0 %543 }
 0x3e1   : > { %963 = vrcp.f32 %v544_v31 }
 0x3e4   : > { %v547_v32 = vpop.xlane.xlu1 %546  ;;  %v706_v17 = vpop.permute.xlu0 %705 }
 0x3e5   : > { %965 = vrcp.f32 %v547_v32  ;;  %v711_v39 = vsel %vm565_vm7, %v706_v17, 0 }
 0x3e7   : > { %v962_v18 = vpop.eup %961 }
 0x3e8   : > { %v553_v33 = vmul.f32 %v962_v18, %v954_v20  ;;  %v658_v34 = vpop.permute.xlu1 %657 }
 0x3e9   : > { %v663_v35 = vsel %vm565_vm7, %v658_v34, 0 }
 0x3ea   : > { %919 = vmatpush3.bf16.msra.mxu1 %v663_v35  ;;  %v557_v36 = vpack.c.bf16 %v553_v33, %v553_v33 }
 0x3eb   : > { %v964_v37 = vpop.eup %963 }
 0x3ec   : > { %v554_v38 = vmul.f32 %v964_v37, %v956_v22  ;;  %915 = vmatmul.mubr.msk.bf16.vlgmr.msra.gmra.mrb[12].mxu0 %vm308_vm2, %v557_v36 }
 0x3ed   : > { %925 = vmatpush3.bf16.msra.mxu0 %v711_v39  ;;  %926 = vmatprep.mubr.msk.bf16.mxu0 %vm976_vm0, %v975_v1 }
 0x3ee   : > { %v558_v40 = vpack.c.bf16 %v554_v38, %v554_v38 }
 0x3ef   : > { %v966_v41 = vpop.eup %965 }
 0x3f0   : > { %v555_v42 = vmul.f32 %v966_v41, %v958_v24  ;;  %921 = vmatmul.mubr.msk.bf16.vlgmr.msra.gmra.mrb[12].mxu1 %vm308_vm2, %v558_v40 }
 0x3f2   : > { %v559_v43 = vpack.c.bf16 %v555_v42, %v555_v42 }
 0x3f4   : > { %927 = vmatmul.mubr.msk.bf16.vlgmr.msra.gmra.mrb[16].mxu0 %vm308_vm2, %v559_v43 }
 0x45a   : > { %v603_v44 = vpop.f32.mrb[8].mxu1 }
 0x45b   : > { %753 = vst.msk [vmem:[%s1133_s11] sm:$0xff] %vm308_vm2, %v603_v44  ;;  %v910_v45 = vpop.f32.mrb[9].mxu1 }
 0x45c   : > { %v606_v1 = vpop.f32.mrb[10].mxu1 }
 0x45d   : > { %v911_v46 = vpop.f32.mrb[11].mxu1 }
 0x4bf   : > { %v651_v47 = vpop.f32.mrb[12].mxu0 }
 0x4c0   : > { %755 = vrot.lane.b32.xlu1 %v651_v47, %s983_s12  ;;  %v916_v48 = vpop.f32.mrb[13].mxu0 }
 0x4c1   : > { %v654_v49 = vpop.f32.mrb[14].mxu0 }
 0x4c2   : > { %v917_v50 = vpop.f32.mrb[15].mxu0 }
 0x4c3   : > { %v699_v51 = vpop.f32.mrb[12].mxu1 }
 0x4c4   : > { %761 = vrot.lane.b32.xlu0 %v699_v51, %s984_s13  ;;  %v922_v52 = vpop.f32.mrb[13].mxu1 }
 0x4c5   : > { %v702_v53 = vpop.f32.mrb[14].mxu1 }
 0x4c6   : > { %v923_v54 = vpop.f32.mrb[15].mxu1 }
 0x4c7   : > { %v747_v55 = vpop.f32.mrb[16].mxu0 }
 0x4c8   : > { %767 = vrot.lane.b32.xlu1 %v747_v55, %s985_s14  ;;  %v928_v56 = vpop.f32.mrb[17].mxu0 }
 0x4c9   : > { %v750_v57 = vpop.f32.mrb[18].mxu0 }
 0x4ca   : > { %v929_v58 = vpop.f32.mrb[19].mxu0 }
 0x532   : > { %v756_v59 = vpop.permute.xlu1 %755 }
 0x533   : > { %759 = vst.msk [vmem:[%s1133_s11] sm:$0xff] %vm758_vm8, %v756_v59 }
 0x536   : > { %v762_v60 = vpop.permute.xlu0 %761 }
 0x537   : > { %765 = vst.msk [vmem:[%s1133_s11] sm:$0xff] %vm764_vm9, %v762_v60 }
 0x53a   : > { %v768_v61 = vpop.permute.xlu1 %767 }
 0x53b   : > { %771 = vst.msk [vmem:[%s1133_s11] sm:$0xff] %vm770_vm10, %v768_v61 }
 0x53c PF: > { %s14_s15 = sadd.s32 1, %s973_s15  }
 0x53d   : > { %p11_p4 = scmp.ge.s32.totalorder %s14_s15, 4  }
 0x53f   :  { %13 = sbr.rel (!%p11_p4) target bundleno = 1 (0x1), region = 69 }

// kernel: transformer_forward.25
= control target key start
LH: loop header
LB: loop body
LE: loop exit
PB: predicated region body
PF: predicated region fallthrough
CT: control target
= control target key end

     0   :  { %s1218_s24 = smov 0   ;;  %s1355_s0 = inlined_call_operand.vmem [shape: f32[2,8,32], index: 0, kind: input, shape index: {}]   ;;  %s1356_s1 = inlined_call_operand.vmem [shape: f32[2,8,32], index: 1, kind: input, shape index: {}]   ;;  %s1357_s2 = inlined_call_operand.vmem [shape: bf16[32,32], index: 2, kind: input, shape index: {}]   ;;  %s1358_s3 = inlined_call_operand.vmem [shape: f32[1,32], index: 3, kind: input, shape index: {}]   ;;  %s1359_s4 = inlined_call_operand.vmem [shape: bf16[32,64], index: 4, kind: input, shape index: {}]   ;;  %s1360_s5 = inlined_call_operand.vmem [shape: f32[1,64], index: 5, kind: input, shape index: {}]   ;;  %s1361_s6 = inlined_call_operand.vmem [shape: s32[2,1,8], index: 6, kind: input, shape index: {}]   ;;  %s1362_s7 = inlined_call_operand.vmem [shape: f32[2,8,32], index: 7, kind: output, shape index: {}]  }
   0x1 LB: > { %s1010_s25 = sadd.s32 4294967295, %s1166_s24   ;;  %p1014_p0 = scmp.ge.s32.totalorder %s1166_s24, 1  ;;  %s1166_s24 = sphi %s1218_s24, %s17_s24  }
   0x2   : > { %p253_p1 = scmp.lt.s32.totalorder %s1166_s24, 3 }
   0x4   : > { %p254_p2 = pnand %p1014_p0, %p253_p1 }
   0x5   : > { %v1140_v0 = vld [vmem:[%s1357_s2] sm:$0xff] (!%p254_p2)   ;;  %v1168_v1 = vmov (!%p254_p2), 0.0   ;;  %v1142_v3 = vld [vmem:[%s1357_s2 + $0x8] sm:$0xff] (!%p254_p2)   ;;  %vm1169_vm0 = vmmov (!%p254_p2), 0   ;;  %p290_p3 = scmp.lt.s32.totalorder (!%p254_p2), %s1010_s25, 1  ;;  %vm333_vm1 = vcmask (!%p254_p2), 261120   ;;  %v663_v39 = vlaneseq (!%p254_p2) }
   0x6   : > { %257 = sbr.rel (%p254_p2) target bundleno = 1227 (0x4cb), region = 48  ;;  %1058 = vmatprep.subr.bf16.mxu0 (!%p254_p2), %v1168_v1  ;;  %1066 = vmatprep.subr.bf16.mxu1 (!%p254_p2), %v1168_v1  ;;  %v1141_v2 = vld [vmem:[%s1359_s4] sm:$0xff] (!%p254_p2)   ;;  %v1143_v4 = vld [vmem:[%s1359_s4 + $0x8] sm:$0xff] (!%p254_p2)   ;;  %vm473_vm2 = vcmask (!%p254_p2), 64512   ;;  %s1170_s22 = smov (!%p254_p2), 120   ;;  %v1173_v43 = vmov (!%p254_p2), 0  }
   0x7   : > { %1059 = vmatpush3.bf16.msra.mxu0 (!%p254_p2), %v1140_v0  ;;  %1062 = vmatprep.mubr.msk.bf16.mxu0 (!%p254_p2), %vm1169_vm0, %v1168_v1  ;;  %v1018_v9 = vld [vmem:[%s1358_s3] ss:$0 sm:$0xff] (!%p254_p2)  ;;  %s1171_s23 = smov (!%p254_p2), 112   ;;  %s1172_s26 = smov (!%p254_p2), 104   ;;  %v664_v41 = vshrl.u32 (!%p254_p2), %v663_v39, 7  ;;  %vm726_vm5 = vcmask (!%p254_p2), 1043456  }
   0x8   : > { %1067 = vmatpush3.bf16.msra.mxu1 (!%p254_p2), %v1141_v2  ;;  %1060 = vmatprep.subr.bf16.mxu0 (!%p254_p2), %v1168_v1  ;;  %v1022_v10 = vld [vmem:[%s1360_s5] ss:$0 sm:$0xff] (!%p254_p2)  ;;  %s1175_s10 = smov (!%p254_p2), 8   ;;  %s1176_s12 = smov (!%p254_p2), 16   ;;  %vm922_vm6 = vcmask (!%p254_p2), 130112   ;;  %vm928_vm7 = vcmask (!%p254_p2), 195712  }
   0x9   : > { %1068 = vmatprep.subr.bf16.mxu1 (!%p254_p2), %v1168_v1  ;;  %1070 = vmatprep.mubr.msk.bf16.mxu1 (!%p254_p2), %vm1169_vm0, %v1168_v1  ;;  %v665_v42 = vsub.s32 (!%p254_p2), 0, %v664_v41  ;;  %vm934_vm8 = vcmask (!%p254_p2), 261312  }
   0xb   : > { %1061 = vmatpush3.bf16.msra.mxu0 (!%p254_p2), %v1142_v3 }
   0xc   : > { %1069 = vmatpush3.bf16.msra.mxu1 (!%p254_p2), %v1143_v4  ;;  %1074 = vmatprep.subr.bf16.mxu0 (!%p254_p2), %v1168_v1 }
   0xd   : > { %s1364_s25 = smov (!%p290_p3, %s1010_s25), 1  ;;  %1080 = vmatprep.subr.bf16.mxu1 %v1168_v1 }
   0xe   : > { %s1249_s11 = sshll.u32 %s1364_s25, 3  ;;  %s300_s29 = scalar_lea.vmem %s1361_s6, %s1364_s25 }
   0xf   : > { %s293_s14 = scalar_lea.vmem %s1355_s0, %s1249_s11  ;;  %s297_s17 = scalar_lea.vmem %s1356_s1, %s1249_s11  ;;  %v443_v40 = vld [vmem:[%s300_s29] sm:$0x1] }
  0x10   : > { %v306_v5 = vld [vmem:[%s293_s14] sm:$0xff]  ;;  %vm444_vm3 = vcmp.ne.s32.totalorder %v443_v40, 0  ;;  %s1174_s25 = smov 96   ;;  %s1345_s9 = scalar_lea.vmem %s1362_s7, %s1249_s11 }
  0x11   : > { %v308_v6 = vld [vmem:[%s297_s17] sm:$0xff]  ;;  %v307_v7 = vpack.c.bf16 %v306_v5, %v306_v5  ;;  %v662_v44 = vsel %vm444_vm3, 1, %v1173_v43  ;;  %s1177_s11 = smov 24  }
  0x12   : > { %v309_v8 = vpack.c.bf16 %v308_v6, %v308_v6  ;;  %v666_v45 = vrot.slane %v662_v44, %v665_v42 }
  0x13   : > { %1063 = vmatmul.mubr.msk.bf16.vlgmr.msra.gmra.mrb[0].mxu0 %vm333_vm1, %v307_v7 }
  0x14   : > { %1071 = vmatmul.mubr.msk.bf16.vlgmr.msra.gmra.mrb[0].mxu1 %vm333_vm1, %v309_v8  ;;  %1076 = vmatprep.mubr.msk.bf16.mxu0 %vm1169_vm0, %v1168_v1  ;;  %vm667_vm4 = vcmp.eq.s32.totalorder %v666_v45, 1 }
  0x15   : > { %1082 = vmatprep.mubr.msk.bf16.mxu1 %vm1169_vm0, %v1168_v1 }
  0xe6   : > { %v371_v11 = vpop.f32.mrb[0].mxu0 }
  0xe7   : > { %v437_v12 = vpop.f32.mrb[0].mxu1  ;;  %v372_v13 = vadd.f32 %v1018_v9, %v371_v11  ;;  %v1064_v16 = vpop.f32.mrb[1].mxu0 }
  0xe8   : > { %v438_v14 = vadd.f32 %v1022_v10, %v437_v12  ;;  %v1072_v15 = vpop.f32.mrb[1].mxu1  ;;  %v374_v18 = vpop.f32.mrb[2].mxu0 }
  0xe9   : > { %v440_v17 = vpop.f32.mrb[2].mxu1  ;;  %446 = vrot.lane.b32.xlu1 %v372_v13, %s1170_s22  ;;  %v1065_v20 = vpop.f32.mrb[3].mxu0  ;;  %v455_v23 = vpack.c.bf16 %v372_v13, %v372_v13 }
  0xea   : > { %460 = vrot.lane.b32.xlu0 %v438_v14, %s1170_s22  ;;  %v1073_v19 = vpop.f32.mrb[3].mxu1  ;;  %v1271_v21 = vpack.c.bf16 %v438_v14, %v438_v14 }
  0xec   : > { %v478_v22 = vsel %vm473_vm2, %v1271_v21, 0 }
  0xed   : > { %1075 = vmatpush3.bf16.xpose.msra.mxu0 %v478_v22  ;;  %466 = vrot.lane.b32.xlu1 %v438_v14, %s1172_s26 }
  0xee   : > { %463 = vrot.lane.b32.xlu0 %v438_v14, %s1171_s23  ;;  %1086 = vmatprep.subr.bf16.mxu0 %v1168_v1 }
  0xf1   : > { %452 = vrot.lane.b32.xlu1 %v372_v13, %s1172_s26 }
  0xf2   : > { %449 = vrot.lane.b32.xlu0 %v372_v13, %s1171_s23 }
  0xf4   : > { %1077 = vmatmul.mubr.msk.bf16.vlgmr.msra.gmra.mrb[4].mxu0 %vm473_vm2, %v455_v23 }
  0xf5   : > { %1088 = vmatprep.mubr.msk.bf16.mxu0 %vm1169_vm0, %v1168_v1 }
 0x15b   : > { %v447_v25 = vpop.permute.xlu1 %446 }
 0x15c   : > { %v461_v24 = vpop.permute.xlu0 %460  ;;  %v456_v33 = vpack.c.bf16 %v447_v25, %v447_v25 }
 0x15d   : > { %v1279_v26 = vpack.c.bf16 %v461_v24, %v461_v24 }
 0x15f   : > { %v524_v27 = vsel %vm473_vm2, %v1279_v26, 0  ;;  %v467_v29 = vpop.permute.xlu1 %466 }
 0x160   : > { %1081 = vmatpush3.bf16.xpose.msra.mxu1 %v524_v27  ;;  %v464_v28 = vpop.permute.xlu0 %463  ;;  %v1288_v32 = vpack.c.bf16 %v467_v29, %v467_v29 }
 0x161   : > { %v1283_v30 = vpack.c.bf16 %v464_v28, %v464_v28  ;;  %1092 = vmatprep.subr.bf16.mxu1 %v1168_v1 }
 0x162   : > { %v616_v35 = vsel %vm473_vm2, %v1288_v32, 0 }
 0x163   : > { %v570_v31 = vsel %vm473_vm2, %v1283_v30, 0  ;;  %v453_v37 = vpop.permute.xlu1 %452 }
 0x164   : > { %1087 = vmatpush3.bf16.xpose.msra.mxu0 %v570_v31  ;;  %v450_v34 = vpop.permute.xlu0 %449  ;;  %v458_v38 = vpack.c.bf16 %v453_v37, %v453_v37 }
 0x165   : > { %1098 = vmatprep.subr.bf16.mxu0 %v1168_v1  ;;  %v457_v36 = vpack.c.bf16 %v450_v34, %v450_v34 }
 0x167   : > { %1083 = vmatmul.mubr.msk.bf16.vlgmr.msra.gmra.mrb[4].mxu1 %vm473_vm2, %v456_v33 }
 0x168   : > { %1093 = vmatpush3.bf16.xpose.msra.mxu1 %v616_v35  ;;  %1094 = vmatprep.mubr.msk.bf16.mxu1 %vm1169_vm0, %v1168_v1 }
 0x169   : > { %1104 = vmatprep.subr.bf16.mxu1 %v1168_v1 }
 0x16b   : > { %1089 = vmatmul.mubr.msk.bf16.vlgmr.msra.gmra.mrb[8].mxu0 %vm473_vm2, %v457_v36 }
 0x16c   : > { %1100 = vmatprep.mubr.msk.bf16.mxu0 %vm1169_vm0, %v1168_v1 }
 0x16f   : > { %1095 = vmatmul.mubr.msk.bf16.vlgmr.msra.gmra.mrb[8].mxu1 %vm473_vm2, %v458_v38 }
 0x170   : > { %1106 = vmatprep.mubr.msk.bf16.mxu1 %vm1169_vm0, %v1168_v1 }
 0x1c7   : > { %v514_v46 = vpop.f32.mrb[4].mxu0 }
 0x1c8   : > { %v658_v47 = vmul.f32 0.35355338, %v514_v46  ;;  %v1078_v48 = vpop.f32.mrb[5].mxu0 }
 0x1c9   : > { %v517_v49 = vpop.f32.mrb[6].mxu0 }
 0x1ca   : > { %v1079_v50 = vpop.f32.mrb[7].mxu0  ;;  %v668_v51 = vsel %vm667_vm4, %v658_v47, -1e+09 }
 0x1cb   : > { %v672_v52 = vsel %vm473_vm2, %v668_v51, -inf }
 0x1cc   : > { %673 = vmax.xlane.f32.xlu0 %v672_v52 }
 0x23a   : > { %v560_v53 = vpop.f32.mrb[4].mxu1 }
 0x23b   : > { %v659_v54 = vmul.f32 0.35355338, %v560_v53  ;;  %v1084_v55 = vpop.f32.mrb[5].mxu1 }
 0x23c   : > { %v563_v56 = vpop.f32.mrb[6].mxu1 }
 0x23d   : > { %v1085_v57 = vpop.f32.mrb[7].mxu1  ;;  %v669_v58 = vsel %vm667_vm4, %v659_v54, -1e+09 }
 0x23e   : > { %v606_v59 = vpop.f32.mrb[8].mxu0  ;;  %v675_v60 = vsel %vm473_vm2, %v669_v58, -inf }
 0x23f   : > { %v660_v61 = vmul.f32 0.35355338, %v606_v59  ;;  %676 = vmax.xlane.f32.xlu1 %v675_v60  ;;  %v1090_v62 = vpop.f32.mrb[9].mxu0 }
 0x240   : > { %v609_v63 = vpop.f32.mrb[10].mxu0 }
 0x241   : > { %v1091_v0 = vpop.f32.mrb[11].mxu0  ;;  %v670_v2 = vsel %vm667_vm4, %v660_v61, -1e+09 }
 0x242   : > { %v652_v3 = vpop.f32.mrb[8].mxu1  ;;  %v678_v4 = vsel %vm473_vm2, %v670_v2, -inf }
 0x243   : > { %v661_v5 = vmul.f32 0.35355338, %v652_v3  ;;  %v1096_v6 = vpop.f32.mrb[9].mxu1  ;;  %679 = vmax.xlane.f32.xlu0 %v678_v4 }
 0x244   : > { %v655_v7 = vpop.f32.mrb[10].mxu1 }
 0x245   : > { %v1097_v8 = vpop.f32.mrb[11].mxu1  ;;  %v671_v9 = vsel %vm667_vm4, %v661_v5, -1e+09 }
 0x246   : > { %v681_v10 = vsel %vm473_vm2, %v671_v9, -inf }
 0x247   : > { %682 = vmax.xlane.f32.xlu0 %v681_v10 }
 0x250   : > { %721 = vrot.lane.b32.xlu1 %v1271_v21, %s1174_s25 }
 0x259   : > { %v674_v11 = vpop.xlane.xlu0 %673 }
 0x25a   : > { %v684_v12 = vsub.f32 %v668_v51, %v674_v11 }
 0x25c   : > { %v688_v13 = vmul.f32 1.442695, %v684_v12 }
 0x25e   : > { %1144 = vpow2.f32 %v688_v13 }
 0x268   : > { %v1145_v14 = vpop.eup %1144 }
 0x269   : > { %v696_v15 = vsel %vm473_vm2, %v1145_v14, 0.0 }
 0x274   : > { %697 = vadd.xlane.f32.xlu1 %v696_v15 }
 0x2cc   : > { %v677_v16 = vpop.xlane.xlu1 %676 }
 0x2cd   : > { %v685_v17 = vsub.f32 %v669_v58, %v677_v16 }
 0x2cf   : > { %v690_v18 = vmul.f32 1.442695, %v685_v17 }
 0x2d0   : > { %v722_v19 = vpop.permute.xlu1 %721  ;;  %v680_v20 = vpop.xlane.xlu0 %679 }
 0x2d1   : > { %1146 = vpow2.f32 %v690_v18  ;;  %v728_v22 = vsel %vm726_vm5, %v722_v19, 0  ;;  %v686_v23 = vsub.f32 %v670_v2, %v680_v20 }
 0x2d2   : > { %1099 = vmatpush3.bf16.msra.mxu0 %v728_v22 }
 0x2d3   : > { %v692_v21 = vmul.f32 1.442695, %v686_v23  ;;  %1110 = vmatprep.subr.bf16.mxu0 %v1168_v1 }
 0x2d4   : > { %v683_v24 = vpop.xlane.xlu0 %682 }
 0x2d5   : > { %1148 = vpow2.f32 %v692_v21  ;;  %v687_v25 = vsub.f32 %v671_v9, %v683_v24 }
 0x2d7   : > { %v694_v27 = vmul.f32 1.442695, %v687_v25 }
 0x2d9   : > { %1150 = vpow2.f32 %v694_v27 }
 0x2db   : > { %v1147_v28 = vpop.eup %1146 }
 0x2dc   : > { %v699_v29 = vsel %vm473_vm2, %v1147_v28, 0.0 }
 0x2dd   : > { %700 = vadd.xlane.f32.xlu0 %v699_v29 }
 0x2df   : > { %v1149_v31 = vpop.eup %1148 }
 0x2e0   : > { %v702_v33 = vsel %vm473_vm2, %v1149_v31, 0.0 }
 0x2e1   : > { %703 = vadd.xlane.f32.xlu1 %v702_v33 }
 0x2e3   : > { %v1151_v34 = vpop.eup %1150 }
 0x2e4   : > { %v705_v35 = vsel %vm473_vm2, %v1151_v34, 0.0 }
 0x2e5   : > { %706 = vadd.xlane.f32.xlu0 %v705_v35 }
 0x2f2   : > { %820 = vrot.lane.b32.xlu1 %v1283_v30, %s1174_s25 }
 0x2f6   : > { %869 = vrot.lane.b32.xlu1 %v1288_v32, %s1174_s25 }
 0x2fb   : > { %771 = vrot.lane.b32.xlu0 %v1279_v26, %s1174_s25 }
 0x301   : > { %v698_v36 = vpop.xlane.xlu1 %697 }
 0x302   : > { %1152 = vrcp.f32 %v698_v36 }
 0x30c   : > { %v1153_v37 = vpop.eup %1152 }
 0x30d   : > { %v712_v38 = vmul.f32 %v1153_v37, %v1145_v14 }
 0x30f   : > { %v716_v39 = vpack.c.bf16 %v712_v38, %v712_v38 }
 0x311   : > { %1101 = vmatmul.mubr.msk.bf16.vlgmr.msra.gmra.mrb[12].mxu0 %vm473_vm2, %v716_v39 }
 0x312   : > { %1112 = vmatprep.mubr.msk.bf16.mxu0 %vm1169_vm0, %v1168_v1 }
 0x36a   : > { %v701_v40 = vpop.xlane.xlu0 %700 }
 0x36b   : > { %1154 = vrcp.f32 %v701_v40 }
 0x36e   : > { %v704_v41 = vpop.xlane.xlu1 %703 }
 0x36f   : > { %1156 = vrcp.f32 %v704_v41 }
 0x372   : > { %v821_v30 = vpop.permute.xlu1 %820  ;;  %v707_v42 = vpop.xlane.xlu0 %706 }
 0x373   : > { %v826_v32 = vsel %vm726_vm5, %v821_v30, 0  ;;  %1158 = vrcp.f32 %v707_v42 }
 0x374   : > { %1111 = vmatpush3.bf16.msra.mxu0 %v826_v32 }
 0x375   : > { %v1155_v26 = vpop.eup %1154 }
 0x376   : > { %v713_v43 = vmul.f32 %v1155_v26, %v1147_v28  ;;  %v772_v44 = vpop.permute.xlu0 %771  ;;  %v870_v46 = vpop.permute.xlu1 %869 }
 0x377   : > { %v777_v45 = vsel %vm726_vm5, %v772_v44, 0  ;;  %v875_v50 = vsel %vm726_vm5, %v870_v46, 0 }
 0x378   : > { %1105 = vmatpush3.bf16.msra.mxu1 %v777_v45  ;;  %v717_v47 = vpack.c.bf16 %v713_v43, %v713_v43 }
 0x379   : > { %v1157_v48 = vpop.eup %1156  ;;  %1116 = vmatprep.subr.bf16.mxu1 %v1168_v1 }
 0x37a   : > { %v714_v49 = vmul.f32 %v1157_v48, %v1149_v31 }
 0x37b   : > { %1107 = vmatmul.mubr.msk.bf16.vlgmr.msra.gmra.mrb[12].mxu1 %vm473_vm2, %v717_v47 }
 0x37c   : > { %1117 = vmatpush3.bf16.msra.mxu1 %v875_v50  ;;  %v718_v51 = vpack.c.bf16 %v714_v49, %v714_v49  ;;  %1118 = vmatprep.mubr.msk.bf16.mxu1 %vm1169_vm0, %v1168_v1 }
 0x37d   : > { %v1159_v52 = vpop.eup %1158 }
 0x37e   : > { %v715_v53 = vmul.f32 %v1159_v52, %v1151_v34  ;;  %1113 = vmatmul.mubr.msk.bf16.vlgmr.msra.gmra.mrb[16].mxu0 %vm473_vm2, %v718_v51 }
 0x380   : > { %v719_v54 = vpack.c.bf16 %v715_v53, %v715_v53 }
 0x383   : > { %1119 = vmatmul.mubr.msk.bf16.vlgmr.msra.gmra.mrb[16].mxu1 %vm473_vm2, %v719_v54 }
 0x3e4   : > { %v764_v55 = vpop.f32.mrb[12].mxu0 }
 0x3e5   : > { %917 = vst.msk [vmem:[%s1345_s9] sm:$0xff] %vm473_vm2, %v764_v55  ;;  %v1102_v56 = vpop.f32.mrb[13].mxu0 }
 0x3e6   : > { %v767_v57 = vpop.f32.mrb[14].mxu0 }
 0x3e7   : > { %v1103_v58 = vpop.f32.mrb[15].mxu0 }
 0x44e   : > { %v813_v1 = vpop.f32.mrb[12].mxu1 }
 0x44f   : > { %919 = vrot.lane.b32.xlu0 %v813_v1, %s1175_s10  ;;  %v1108_v59 = vpop.f32.mrb[13].mxu1 }
 0x450   : > { %v816_v60 = vpop.f32.mrb[14].mxu1 }
 0x451   : > { %v1109_v61 = vpop.f32.mrb[15].mxu1  ;;  %v862_v62 = vpop.f32.mrb[16].mxu0 }
 0x452   : > { %925 = vrot.lane.b32.xlu1 %v862_v62, %s1176_s12  ;;  %v1114_v63 = vpop.f32.mrb[17].mxu0 }
 0x453   : > { %v865_v0 = vpop.f32.mrb[18].mxu0 }
 0x454   : > { %v1115_v2 = vpop.f32.mrb[19].mxu0 }
 0x456   : > { %v911_v3 = vpop.f32.mrb[16].mxu1 }
 0x457   : > { %931 = vrot.lane.b32.xlu0 %v911_v3, %s1177_s11  ;;  %v1120_v4 = vpop.f32.mrb[17].mxu1 }
 0x458   : > { %v914_v5 = vpop.f32.mrb[18].mxu1 }
 0x459   : > { %v1121_v6 = vpop.f32.mrb[19].mxu1 }
 0x4c1   : > { %v920_v7 = vpop.permute.xlu0 %919 }
 0x4c2   : > { %923 = vst.msk [vmem:[%s1345_s9] sm:$0xff] %vm922_vm6, %v920_v7 }
 0x4c4   : > { %v926_v8 = vpop.permute.xlu1 %925 }
 0x4c5   : > { %929 = vst.msk [vmem:[%s1345_s9] sm:$0xff] %vm928_vm7, %v926_v8 }
 0x4c9   : > { %v932_v9 = vpop.permute.xlu0 %931 }
 0x4ca   : > { %935 = vst.msk [vmem:[%s1345_s9] sm:$0xff] %vm934_vm8, %v932_v9 }
 0x4cb PF: > { %s17_s24 = sadd.s32 1, %s1166_s24  }
 0x4cc   : > { %p14_p4 = scmp.ge.s32.totalorder %s17_s24, 4  }
 0x4ce   :  { %16 = sbr.rel (!%p14_p4) target bundleno = 1 (0x1), region = 84 }

// kernel: transformer_forward.33
= control target key start
LH: loop header
LB: loop body
LE: loop exit
PB: predicated region body
PF: predicated region fallthrough
CT: control target
= control target key end

     0   :  { %8 = vsyncpa [#allocation4], 0  ;;  %s764_s0 = inlined_call_operand.vmem [shape: f32[16,32], index: 0, kind: input, shape index: {}]   ;;  %s765_s1 = inlined_call_operand.vmem [shape: bf16[32,32], index: 1, kind: input, shape index: {}]   ;;  %s766_s2 = inlined_call_operand.vmem [shape: f32[1,32], index: 2, kind: input, shape index: {}]   ;;  %s767_s3 = inlined_call_operand.hbm [shape: f32[16,32], index: 3, kind: output, shape index: {}]  }
   0x1   :  { %10 = vsyncpa [#allocation4 + $0x1], 0  ;;  %s639_s12 = smov 0   ;;  %s641_s13 = smov 0  }
   0x2   :  { %s643_s14 = smov 0   ;;  %s645_s15 = smov 0  }
   0x3   :  { %s647_s16 = smov 0   ;;  %s649_s17 = smov 0  }
   0x4 LB: > { %s449_s18 = sadd.s32 4294967295, %s614_s17   ;;  %s450_s19 = sadd.s32 4294967294, %s614_s17   ;;  %s614_s17 = sphi %s649_s17, %s16_s17   ;;  %s610_s16 = sphi %s647_s16, %s774_s16   ;;  %s606_s15 = sphi %s645_s15, %s773_s15   ;;  %s602_s14 = sphi %s643_s14, %s772_s14   ;;  %s598_s13 = sphi %s641_s13, %s771_s13   ;;  %s594_s12 = sphi %s639_s12, %s770_s12  }
   0x5   : > { %s35_s20 = sadd.s32 1, %s610_s16  ;;  %s126_s21 = sadd.s32 1, %s602_s14 }
   0x6   : > { %p37_p0 = scmp.ge.s32.totalorder %s35_s20, 2  ;;  %p136_p1 = scmp.ne.s32.totalorder %s602_s14, %s598_s13 }
   0x7   : > { %p137_p2 = scmp.eq.s32.totalorder %s449_s18, 1  ;;  %p142_p3 = scmp.ne.s32.totalorder %s598_s13, %s594_s12 }
   0x8   : > { %s776_s20 = smov (%p37_p0, %s35_s20), 0  ;;  %p143_p5 = scmp.eq.s32.totalorder %s450_s19, 1 }
   0x9   : > { %p679_p4 = por %p137_p2, %p136_p1  ;;  %s121_s23 = ssub.s32 %s610_s16, %s776_s20 }
   0xa   : > { %p455_p6 = scmp.ge.s32.totalorder %s614_s17, 1  ;;  %p124_p7 = scmp.eq.s32.totalorder %s121_s23, 0 }
   0xb   : > { %p686_p8 = por %p143_p5, %p142_p3  ;;  %p189_p9 = scmp.lt.s32.totalorder %s614_s17, 3 }
   0xc   : > { %s692_s25 = scalar_select %p124_p7, %s602_s14, %s126_s21  }
   0xd   : > { %p190_p10 = pnand %p455_p6, %p189_p9 }
   0xe   : > { %v534_v0 = vld [vmem:[%s765_s1] sm:$0xff] (!%p190_p10)   ;;  %v616_v1 = vmov (!%p190_p10), 0.0   ;;  %v535_v2 = vld [vmem:[%s765_s1 + $0x8] sm:$0xff] (!%p190_p10)   ;;  %vm617_vm0 = vmmov (!%p190_p10), 0   ;;  %p226_p11 = scmp.lt.s32.totalorder (!%p190_p10), %s606_s15, 1  ;;  %vm250_vm1 = vcmask (!%p190_p10), 261120  }
   0xf   : > { %193 = sbr.rel (%p190_p10) target bundleno = 267 (0x10b), region = 32  ;;  %469 = vmatprep.subr.bf16.mxu0 (!%p190_p10), %v616_v1  ;;  %473 = vmatprep.mubr.msk.bf16.mxu0 (!%p190_p10), %vm617_vm0, %v616_v1  ;;  %251 = vst.msk [vmem:[#allocation2] sm:$0xff] (!%p190_p10), %vm250_vm1, %v616_v1  ;;  %s223_s8 = sand.u32 (!%p190_p10), 1, %s598_s13   ;;  %v461_v11 = vld [vmem:[%s766_s2] ss:$0 sm:$0xff] (!%p190_p10) }
  0x10   : > { %470 = vmatpush3.bf16.msra.mxu0 (!%p190_p10), %v534_v0  ;;  %s456_s9 = sshll.u32 (!%p190_p10), %s223_s8, 3  ;;  %s463_s18 = sshll.u32 (!%p190_p10), %s606_s15, 7 }
  0x11   : > { %471 = vmatprep.subr.bf16.mxu0 (!%p190_p10), %v616_v1  ;;  %s225_s19 = scalar_lea.vmem (!%p190_p10), [#allocation3], %s456_s9  ;;  %s716_s27 = scalar_lea.hbm (!%p190_p10), %s767_s3, %s463_s18 }
  0x12   : > { %s345_s21 = sshll.u32 (!%p190_p10), %s225_s19, 4  ;;  %s331_s28 = scalar_lea.sflag (!%p190_p10), [#allocation4], %s223_s8  ;;  %s718_s21 = int_to_ptr.vmem [resolvable:$true] %s345_s21 }
  0x13   : > { %s536_s29 = scalar_lea.vmem (!%p190_p10), %s718_s21, 128 }
  0x14   : > { %472 = vmatpush3.bf16.msra.mxu0 (!%p190_p10), %v535_v2  ;;  %p537_p12 = scmp.ne.s32.totalorder (!%p190_p10), %s718_s21, %s536_s29 }
  0x16   : > { %s227_s30 = scalar_select %p226_p11, %s606_s15, 1  ;;  %v252_v5 = vld [vmem:[#allocation2] sm:$0xff] }
  0x17   : > { %p538_p13 = pnand %p537_p12, %p679_p4  ;;  %s618_s15 = smov [#allocation3]  }
  0x18   : > { %s457_s4 = sshll.u32 %s227_s30, 3  ;;  %s540_s30 = sshll.u32 %s618_s15, 4  ;;  %s541_s30 = int_to_ptr.vmem [resolvable:$false] %s540_s30 }
  0x19   : > { %s232_s7 = scalar_lea.vmem %s764_s0, %s457_s4  ;;  %p539_p0 = pneg %p538_p13 }
  0x1a   : > { %v253_v3 = vld [vmem:[%s232_s7] sm:$0xff]  ;;  %s542_s4 = scalar_lea.vmem %s541_s30, 256  ;;  %p543_p1 = scmp.lt.s32.totalorder %s718_s21, %s541_s30 }
  0x1b   : > { %v254_v4 = vpack.c.bf16 %v253_v3, %v253_v3  ;;  %p544_p2 = scmp.lt.s32.totalorder %s542_s4, %s536_s29 }
  0x1d   : > { %474 = vmatmul.mubr.msk.bf16.vlgmr.msra.gmra.mrb[0].mxu0 %vm250_vm1, %v254_v4  ;;  %p545_p3 = por %p544_p2, %p543_p1 }
  0x1f   : > { %p546_p5 = pnand %p545_p3, %p539_p0 }
  0xf0   : > { %v309_v6 = vpop.f32.mrb[0].mxu0 }
  0xf1   : > { %v315_v7 = vadd.f32 %v309_v6, %v252_v5  ;;  %v475_v8 = vpop.f32.mrb[1].mxu0 }
  0xf2   : > { %v312_v9 = vpop.f32.mrb[2].mxu0 }
  0xf3   : > { %316 = vst.msk [vmem:[#allocation2] sm:$0xff] %vm250_vm1, %v315_v7  ;;  %v476_v10 = vpop.f32.mrb[3].mxu0 }
  0xfa   : > { %v320_v12 = vld [vmem:[#allocation2] sm:$0xff] }
  0xfb   : > { %v328_v13 = vadd.f32 %v461_v11, %v320_v12 }
  0xfd   : > { %329 = vst.msk [vmem:[%s225_s19] sm:$0xff] %vm250_vm1, %v328_v13 }
  0xfe   : > { %549 = shalt.err (!%p546_p5)
}
  0xff   : > { %s550_s5 = scalar_lea.hbm %s716_s27, 128  ;;  %s554_s8 = scalar_lea.hbm %s767_s3, 256 }
 0x100   : > { %p551_p6 = scmp.ne.s32.totalorder %s716_s27, %s550_s5  ;;  %p555_p10 = scmp.lt.u32.totalorder %s716_s27, %s767_s3 }
 0x101   : > { %p556_p11 = scmp.lt.u32.totalorder %s554_s8, %s550_s5  ;;  %p558_p13 = scmp.lt.u32.totalorder %s550_s5, %s716_s27 }
 0x102   : > { %p552_p7 = pnand %p551_p6, %p679_p4 }
 0x103   : > { %p557_p12 = por %p556_p11, %p555_p10 }
 0x104   : > { %p553_p9 = pneg %p552_p7 }
 0x105   : > { %p559_p0 = por %p558_p13, %p557_p12 }
 0x107   : > { %p560_p1 = pnand %p559_p0, %p553_p9 }
 0x109   : > { %563 = shalt.err (!%p560_p1)
}
 0x10a   : > { %477 = dma.vmem_to_hbm [thread:$0]  (%p679_p4), %s718_s21, 128, %s716_s27, %s331_s28  }
 0x10b PF: > { %p483_p2 = scmp.ge.s32.totalorder %s614_s17, 2  ;;  %s357_s11 = sand.u32 1, %s594_s12  }
 0x10c   : > { %s358_s18 = scalar_lea.sflag [#allocation4], %s357_s11 }
 0x10d   : > { %p480_p3 = pnand %p483_p2, %p686_p8 }
 0x10f   : > { %589 = dma.done.wait (!%p480_p3), %s358_s18, 128  }
 0x110   : > { %591 = vsyncadd (!%p480_p3), %s358_s18, 4294967168  ;;  %s16_s17 = sadd.s32 1, %s614_s17   ;;  %s770_s12 = smov %s598_s13 }
 0x111   : > { %p13_p5 = scmp.ge.s32.totalorder %s16_s17, 4   ;;  %s771_s13 = smov %s602_s14 }
 0x112   : > { %s772_s14 = smov %s692_s25  ;;  %s773_s15 = smov %s610_s16 }
 0x113   : > { %s774_s16 = smov %s776_s20  ;;  %15 = sbr.rel (!%p13_p5) target bundleno = 4 (0x4), region = 81 }
 0x11a   :  { %363 = vsyncpa [#allocation4], 1 }
 0x11b   :  { %365 = vsyncpa [#allocation4 + $0x1], 1 }

</bundles_post_ra>
